<compile_context>
chip_gen: v6e
topology: v6e:2x2x1
jax: 0.10.0
libtpu: 0.0.40
codegen_flags: <defaults>
</compile_context>

<pallas_src>
import functools

import jax
import jax.numpy as jnp
from jax.experimental import pallas as pl
from jax.experimental.pallas import tpu as pltpu

_EPS = 1e-5          # PyTorch BatchNorm2d default eps
EXPANSION = 4


def _vmem_limit_bytes():
    """Per-generation VMEM cap: ~3/4 of physical (64 MiB v7x, 128 MiB v5e/v6e)."""
    cap = 64 * 1024 * 1024
    try:
        info = pltpu.get_tpu_info()
        cap = int(getattr(info, "vmem_capacity_bytes", cap) or cap)
    except Exception:
        pass
    return int(min(cap * 3 // 4, 112 * 1024 * 1024))


_VMEM_LIMIT = _vmem_limit_bytes()


# ----------------------------------------------------------------------------
# In-kernel helpers
# ----------------------------------------------------------------------------
def _bn_train(a, gamma, beta, inv_m, eps):
    """Training-mode BatchNorm over axis 0 of a flattened (M, C) activation.

    Two-pass: mean first, then variance of the centered values (robust to
    cancellation), biased variance as PyTorch uses for normalization.
    """
    mean = jnp.sum(a, axis=0, keepdims=True) * inv_m
    c = a - mean
    var = jnp.sum(c * c, axis=0, keepdims=True) * inv_m
    return c * (jax.lax.rsqrt(var + eps) * gamma) + beta


# ----------------------------------------------------------------------------
# Fully fused Bottleneck kernel
# ----------------------------------------------------------------------------
def _bottleneck_kernel(*refs, N, H, W, stride, planes, has_sc, eps):
    S = stride
    Hp, Wp = H // S, W // S          # per-phase spatial extent
    Ho, Wo = Hp, Wp                  # conv2 output extent (k=3, pad=1)
    M1 = N * H * W                   # rows entering conv1
    M2 = N * Ho * Wo                 # rows after the strided 3x3
    cout = EXPANSION * planes

    it = iter(refs)
    x_ref = next(it)
    w1_ref, g1_ref, b1_ref = next(it), next(it), next(it)
    w2_ref, g2_ref, b2_ref = next(it), next(it), next(it)
    w3_ref, g3_ref, b3_ref = next(it), next(it), next(it)
    if has_sc:
        wsc_ref, gsc_ref, bsc_ref = next(it), next(it), next(it)
    o_ref = next(it)
    pad_ref = next(it)               # VMEM (S*S*N, Hp+2, Wp+2, planes) f32

    x_f32 = x_ref[...]                         # (M1, cin) f32, phase-major rows
    x_bf = x_f32.astype(jnp.bfloat16)

    # ---- conv1 (1x1) + BN1 + ReLU (bf16 MXU operands, f32 epilogue) -------
    a1 = jnp.dot(x_bf, w1_ref[...], preferred_element_type=jnp.float32)
    a1 = jnp.maximum(_bn_train(a1, g1_ref[...], b1_ref[...], 1.0 / M1, eps), 0.0)

    # ---- zero-padded, phase-decomposed conv1 output, kept in VMEM ---------
    pad_ref[...] = jnp.zeros_like(pad_ref)
    pad_ref[:, 1:1 + Hp, 1:1 + Wp, :] = a1.reshape(S * S * N, Hp, Wp, planes)

    # ---- in-kernel im2col: 9 contiguous taps -> one (M2, 9*planes) slab ---
    taps = []
    for dh in range(3):
        for dw in range(3):
            ph, pw = (dh - 1) % S, (dw - 1) % S           # source phase
            r0 = 1 + (dh - 1 - ph) // S                   # row start in pad buf
            c0 = 1 + (dw - 1 - pw) // S                   # col start in pad buf
            base = (ph * S + pw) * N                      # phase block offset
            taps.append(pad_ref[base:base + N, r0:r0 + Ho, c0:c0 + Wo, :])
    cols = jnp.concatenate(taps, axis=-1)                 # (N, Ho, Wo, 9*planes)
    cols = cols.reshape(M2, 9 * planes).astype(jnp.bfloat16)

    # ---- conv2 (3x3 as a single deep K=9*planes matmul) + BN2 + ReLU ------
    a2 = jnp.dot(cols, w2_ref[...], preferred_element_type=jnp.float32)
    a2 = jnp.maximum(_bn_train(a2, g2_ref[...], b2_ref[...], 1.0 / M2, eps), 0.0)

    # ---- conv3 (1x1) + BN3 (no ReLU before the residual add) --------------
    a3 = jnp.dot(a2.astype(jnp.bfloat16), w3_ref[...],
                 preferred_element_type=jnp.float32)
    a3 = _bn_train(a3, g3_ref[...], b3_ref[...], 1.0 / M2, eps)

    # ---- shortcut branch ---------------------------------------------------
    if has_sc:
        # strided 1x1 conv input == phase-(0,0) rows == first M2 rows of x
        r = jnp.dot(x_bf[0:M2, :], wsc_ref[...],
                    preferred_element_type=jnp.float32)
        r = _bn_train(r, gsc_ref[...], bsc_ref[...], 1.0 / M2, eps)
    else:
        r = x_f32                                          # identity (f32, exact)

    o_ref[...] = jnp.maximum(a3 + r, 0.0).astype(o_ref.dtype)


# ----------------------------------------------------------------------------
# Wrapper: layout + single pallas_call
# ----------------------------------------------------------------------------
def bottleneck_forward(x_nchw, p):
    stride = p["stride"]
    planes = p["planes"]
    cout = EXPANSION * planes
    N, cin, H, W = x_nchw.shape
    assert H % stride == 0 and W % stride == 0, "spatial dims must divide stride"
    S = stride
    Hp, Wp = H // S, W // S
    Ho, Wo = Hp, Wp
    M1 = N * H * W
    M2 = N * Ho * Wo
    has_sc = p["wsc"] is not None

    # Single layout pass: NCHW -> phase-major rows (h%S, w%S, n, i, j) x channels.
    # (For S == 1 this is just the plain NCHW -> NHWC flatten.)
    xr = x_nchw.astype(jnp.float32).reshape(N, cin, Hp, S, Wp, S)
    xr = jnp.transpose(xr, (3, 5, 0, 2, 4, 1))            # (ph, pw, N, i, j, C)
    x_rows = xr.reshape(M1, cin)

    inputs = [x_rows,
              p["w1"], p["g1"], p["b1"],
              p["w2"], p["g2"], p["b2"],
              p["w3"], p["g3"], p["b3"]]
    if has_sc:
        inputs += [p["wsc"], p["gsc"], p["bsc"]]

    def _full2d(arr):
        return pl.BlockSpec(arr.shape, lambda i: (0, 0))

    in_specs = [_full2d(a) for a in inputs]

    flops = 2 * (M1 * cin * planes            # conv1
                 + M2 * 9 * planes * planes   # conv2
                 + M2 * planes * cout)        # conv3
    if has_sc:
        flops += 2 * M2 * cin * cout
    bytes_accessed = sum(int(a.size) * a.dtype.itemsize for a in inputs) \
        + M2 * cout * 4
    cost = pl.CostEstimate(flops=int(flops), transcendentals=0,
                           bytes_accessed=int(bytes_accessed))

    kern = functools.partial(_bottleneck_kernel, N=N, H=H, W=W, stride=S,
                             planes=planes, has_sc=has_sc, eps=_EPS)

    out = pl.pallas_call(
        kern,
        out_shape=jax.ShapeDtypeStruct((M2, cout), jnp.float32),
        grid=(1,),
        in_specs=in_specs,
        out_specs=pl.BlockSpec((M2, cout), lambda i: (0, 0)),
        scratch_shapes=[
            pltpu.VMEM((S * S * N, Hp + 2, Wp + 2, planes), jnp.float32)],
        compiler_params=pltpu.CompilerParams(
            dimension_semantics=("arbitrary",),
            vmem_limit_bytes=_VMEM_LIMIT),
        cost_estimate=cost,
    )(*inputs)

    out = out.reshape(N, Ho, Wo, cout)
    return jnp.transpose(out, (0, 3, 1, 2))               # back to NCHW


# ----------------------------------------------------------------------------
# Deterministic parameter init (weights stored bf16, HWIO flattened to (K, C))
# ----------------------------------------------------------------------------
def _he_conv(key, kh, kw, cin, cout):
    std = (2.0 / (kh * kw * cin)) ** 0.5
    return jax.random.normal(key, (kh, kw, cin, cout), jnp.float32) * std


def init_params(key, in_planes, planes, stride):
    out_planes = EXPANSION * planes
    ks = jax.random.split(key, 4)
    p = {
        "stride": stride,
        "in_planes": in_planes,
        "planes": planes,
        "w1": _he_conv(ks[0], 1, 1, in_planes, planes)
        .reshape(in_planes, planes).astype(jnp.bfloat16),
        "g1": jnp.ones((1, planes), jnp.float32),
        "b1": jnp.zeros((1, planes), jnp.float32),
        # rows ordered (kh, kw, cin) to match the in-kernel tap order
        "w2": _he_conv(ks[1], 3, 3, planes, planes)
        .reshape(9 * planes, planes).astype(jnp.bfloat16),
        "g2": jnp.ones((1, planes), jnp.float32),
        "b2": jnp.zeros((1, planes), jnp.float32),
        "w3": _he_conv(ks[2], 1, 1, planes, out_planes)
        .reshape(planes, out_planes).astype(jnp.bfloat16),
        "g3": jnp.ones((1, out_planes), jnp.float32),
        "b3": jnp.zeros((1, out_planes), jnp.float32),
        "wsc": None,
    }
    if stride != 1 or in_planes != out_planes:
        p["wsc"] = _he_conv(ks[3], 1, 1, in_planes, out_planes) \
            .reshape(in_planes, out_planes).astype(jnp.bfloat16)
        p["gsc"] = jnp.ones((1, out_planes), jnp.float32)
        p["bsc"] = jnp.zeros((1, out_planes), jnp.float32)
    return p


if __name__ == "__main__":
    key = jax.random.PRNGKey(0)
    k_p1, k_x1, k_p2, k_x2 = jax.random.split(key, 4)

    # Case 1: projection shortcut (stride=2, channel expansion 64 -> 128)
    p1 = init_params(k_p1, in_planes=64, planes=32, stride=2)
    x1 = jax.random.normal(k_x1, (2, 64, 16, 16), jnp.float32)      # NCHW
    y1 = jax.block_until_ready(bottleneck_forward(x1, p1))
    assert y1.shape == (2, 128, 8, 8) and y1.dtype == jnp.float32
    assert bool(jnp.all(jnp.isfinite(y1)))

    # Case 2: identity shortcut (stride=1, in_planes == 4*planes)
    p2 = init_params(k_p2, in_planes=128, planes=32, stride=1)
    x2 = jax.random.normal(k_x2, (2, 128, 8, 8), jnp.float32)       # NCHW
    y2 = jax.block_until_ready(bottleneck_forward(x2, p2))
    assert y2.shape == (2, 128, 8, 8) and y2.dtype == jnp.float32
    assert bool(jnp.all(jnp.isfinite(y2)))

    print("KERNEL_OK")
</pallas_src>

<mosaic_0001>
module attributes {stable_mosaic.version = 11 : i64} {
  func.func @_bottleneck_kernel(%arg0: i32, %arg1: memref<512x64xf32, #tpu.memory_space<vmem>>, %arg2: memref<64x32xbf16, #tpu.memory_space<vmem>>, %arg3: memref<1x32xf32, #tpu.memory_space<vmem>>, %arg4: memref<1x32xf32, #tpu.memory_space<vmem>>, %arg5: memref<288x32xbf16, #tpu.memory_space<vmem>>, %arg6: memref<1x32xf32, #tpu.memory_space<vmem>>, %arg7: memref<1x32xf32, #tpu.memory_space<vmem>>, %arg8: memref<32x128xbf16, #tpu.memory_space<vmem>>, %arg9: memref<1x128xf32, #tpu.memory_space<vmem>>, %arg10: memref<1x128xf32, #tpu.memory_space<vmem>>, %arg11: memref<64x128xbf16, #tpu.memory_space<vmem>>, %arg12: memref<1x128xf32, #tpu.memory_space<vmem>>, %arg13: memref<1x128xf32, #tpu.memory_space<vmem>>, %arg14: memref<128x128xf32, #tpu.memory_space<vmem>>, %arg15: memref<8x10x10x32xf32, #tpu.memory_space<vmem>>) attributes {dimension_semantics = [#tpu.dimension_semantics<arbitrary>], iteration_bounds = array<i64: 1>, scalar_prefetch = 0 : i64, scratch_operands = 1 : i64, tpu.core_type = #tpu.core_type<tc>, window_params = [{pipeline_mode = #tpu.pipeline_mode<synchronous>, transform_indices = @transform_0, window_bounds = array<i64: 512, 64>}, {pipeline_mode = #tpu.pipeline_mode<synchronous>, transform_indices = @transform_1, window_bounds = array<i64: 64, 32>}, {pipeline_mode = #tpu.pipeline_mode<synchronous>, transform_indices = @transform_2, window_bounds = array<i64: 1, 32>}, {pipeline_mode = #tpu.pipeline_mode<synchronous>, transform_indices = @transform_3, window_bounds = array<i64: 1, 32>}, {pipeline_mode = #tpu.pipeline_mode<synchronous>, transform_indices = @transform_4, window_bounds = array<i64: 288, 32>}, {pipeline_mode = #tpu.pipeline_mode<synchronous>, transform_indices = @transform_5, window_bounds = array<i64: 1, 32>}, {pipeline_mode = #tpu.pipeline_mode<synchronous>, transform_indices = @transform_6, window_bounds = array<i64: 1, 32>}, {pipeline_mode = #tpu.pipeline_mode<synchronous>, transform_indices = @transform_7, window_bounds = array<i64: 32, 128>}, {pipeline_mode = #tpu.pipeline_mode<synchronous>, transform_indices = @transform_8, window_bounds = array<i64: 1, 128>}, {pipeline_mode = #tpu.pipeline_mode<synchronous>, transform_indices = @transform_9, window_bounds = array<i64: 1, 128>}, {pipeline_mode = #tpu.pipeline_mode<synchronous>, transform_indices = @transform_10, window_bounds = array<i64: 64, 128>}, {pipeline_mode = #tpu.pipeline_mode<synchronous>, transform_indices = @transform_11, window_bounds = array<i64: 1, 128>}, {pipeline_mode = #tpu.pipeline_mode<synchronous>, transform_indices = @transform_12, window_bounds = array<i64: 1, 128>}, {pipeline_mode = #tpu.pipeline_mode<synchronous>, transform_indices = @transform_13, window_bounds = array<i64: 128, 128>}]} {
    %c0 = arith.constant 0 : index
    %c0_0 = arith.constant 0 : index
    %0 = vector.load %arg1[%c0, %c0_0] : memref<512x64xf32, #tpu.memory_space<vmem>>, vector<512x64xf32>
    %1 = arith.truncf %0 : vector<512x64xf32> to vector<512x64xbf16>
    %c0_1 = arith.constant 0 : index
    %c0_2 = arith.constant 0 : index
    %2 = vector.load %arg2[%c0_1, %c0_2] : memref<64x32xbf16, #tpu.memory_space<vmem>>, vector<64x32xbf16>
    %cst = arith.constant dense<0.000000e+00> : vector<512x32xf32>
    %3 = tpu.matmul %1, %2, %cst {dimension_numbers = #tpu.dot_dimension_numbers<[1], [0], [0], [1], [0, 0, 1, 1], [], []>} : vector<512x64xbf16>, vector<64x32xbf16>, vector<512x32xf32> -> vector<512x32xf32>
    %c0_3 = arith.constant 0 : index
    %c0_4 = arith.constant 0 : index
    %4 = vector.load %arg3[%c0_3, %c0_4] : memref<1x32xf32, #tpu.memory_space<vmem>>, vector<1x32xf32>
    %c0_5 = arith.constant 0 : index
    %c0_6 = arith.constant 0 : index
    %5 = vector.load %arg4[%c0_5, %c0_6] : memref<1x32xf32, #tpu.memory_space<vmem>>, vector<1x32xf32>
    %cst_7 = arith.constant dense<0.000000e+00> : vector<32xf32>
    %6 = vector.multi_reduction <add>, %3, %cst_7 [0] : vector<512x32xf32> to vector<32xf32>
    %7 = vector.shape_cast %6 : vector<32xf32> to vector<1x32xf32>
    %cst_8 = arith.constant 0.001953125 : f32
    %8 = vector.broadcast %cst_8 : f32 to vector<1x32xf32>
    %9 = arith.mulf %7, %8 : vector<1x32xf32>
    %10 = vector.broadcast %9 : vector<1x32xf32> to vector<512x32xf32>
    %11 = arith.subf %3, %10 : vector<512x32xf32>
    %12 = arith.mulf %11, %11 : vector<512x32xf32>
    %cst_9 = arith.constant dense<0.000000e+00> : vector<32xf32>
    %13 = vector.multi_reduction <add>, %12, %cst_9 [0] : vector<512x32xf32> to vector<32xf32>
    %14 = vector.shape_cast %13 : vector<32xf32> to vector<1x32xf32>
    %cst_10 = arith.constant 0.001953125 : f32
    %15 = vector.broadcast %cst_10 : f32 to vector<1x32xf32>
    %16 = arith.mulf %14, %15 : vector<1x32xf32>
    %cst_11 = arith.constant 9.99999974E-6 : f32
    %17 = vector.broadcast %cst_11 : f32 to vector<1x32xf32>
    %18 = arith.addf %16, %17 : vector<1x32xf32>
    %19 = math.rsqrt %18 : vector<1x32xf32>
    %20 = arith.mulf %19, %4 : vector<1x32xf32>
    %21 = vector.broadcast %20 : vector<1x32xf32> to vector<512x32xf32>
    %22 = arith.mulf %11, %21 : vector<512x32xf32>
    %23 = vector.broadcast %5 : vector<1x32xf32> to vector<512x32xf32>
    %24 = arith.addf %22, %23 : vector<512x32xf32>
    %cst_12 = arith.constant 0.000000e+00 : f32
    %25 = vector.broadcast %cst_12 : f32 to vector<512x32xf32>
    %26 = arith.maximumf %24, %25 : vector<512x32xf32>
    %cst_13 = arith.constant 0.000000e+00 : f32
    %27 = vector.broadcast %cst_13 : f32 to vector<8x10x10x32xf32>
    %c0_14 = arith.constant 0 : index
    %c0_15 = arith.constant 0 : index
    %c0_16 = arith.constant 0 : index
    %c0_17 = arith.constant 0 : index
    %28 = vector.load %arg15[%c0_14, %c0_15, %c0_16, %c0_17] : memref<8x10x10x32xf32, #tpu.memory_space<vmem>>, vector<8x10x10x32xf32>
    tpu.vector_store %arg15[%c0_14, %c0_15, %c0_16, %c0_17], %27 {strides = array<i32>} : memref<8x10x10x32xf32, #tpu.memory_space<vmem>>, vector<8x10x10x32xf32>,
    %29 = vector.shape_cast %26 : vector<512x32xf32> to vector<8x8x8x32xf32>
    %c0_18 = arith.constant 0 : index
    %c1 = arith.constant 1 : index
    %c1_19 = arith.constant 1 : index
    %c0_20 = arith.constant 0 : index
    %30 = vector.load %arg15[%c0_18, %c1, %c1_19, %c0_20] : memref<8x10x10x32xf32, #tpu.memory_space<vmem>>, vector<8x8x8x32xf32>
    tpu.vector_store %arg15[%c0_18, %c1, %c1_19, %c0_20], %29 {strides = array<i32>} : memref<8x10x10x32xf32, #tpu.memory_space<vmem>>, vector<8x8x8x32xf32>,
    %c6 = arith.constant 6 : index
    %c0_21 = arith.constant 0 : index
    %c0_22 = arith.constant 0 : index
    %c0_23 = arith.constant 0 : index
    %31 = vector.load %arg15[%c6, %c0_21, %c0_22, %c0_23] : memref<8x10x10x32xf32, #tpu.memory_space<vmem>>, vector<2x8x8x32xf32>
    %c4 = arith.constant 4 : index
    %c0_24 = arith.constant 0 : index
    %c1_25 = arith.constant 1 : index
    %c0_26 = arith.constant 0 : index
    %32 = vector.load %arg15[%c4, %c0_24, %c1_25, %c0_26] : memref<8x10x10x32xf32, #tpu.memory_space<vmem>>, vector<2x8x8x32xf32>
    %c6_27 = arith.constant 6 : index
    %c0_28 = arith.constant 0 : index
    %c1_29 = arith.constant 1 : index
    %c0_30 = arith.constant 0 : index
    %33 = vector.load %arg15[%c6_27, %c0_28, %c1_29, %c0_30] : memref<8x10x10x32xf32, #tpu.memory_space<vmem>>, vector<2x8x8x32xf32>
    %c2 = arith.constant 2 : index
    %c1_31 = arith.constant 1 : index
    %c0_32 = arith.constant 0 : index
    %c0_33 = arith.constant 0 : index
    %34 = vector.load %arg15[%c2, %c1_31, %c0_32, %c0_33] : memref<8x10x10x32xf32, #tpu.memory_space<vmem>>, vector<2x8x8x32xf32>
    %c0_34 = arith.constant 0 : index
    %c1_35 = arith.constant 1 : index
    %c1_36 = arith.constant 1 : index
    %c0_37 = arith.constant 0 : index
    %35 = vector.load %arg15[%c0_34, %c1_35, %c1_36, %c0_37] : memref<8x10x10x32xf32, #tpu.memory_space<vmem>>, vector<2x8x8x32xf32>
    %c2_38 = arith.constant 2 : index
    %c1_39 = arith.constant 1 : index
    %c1_40 = arith.constant 1 : index
    %c0_41 = arith.constant 0 : index
    %36 = vector.load %arg15[%c2_38, %c1_39, %c1_40, %c0_41] : memref<8x10x10x32xf32, #tpu.memory_space<vmem>>, vector<2x8x8x32xf32>
    %c6_42 = arith.constant 6 : index
    %c1_43 = arith.constant 1 : index
    %c0_44 = arith.constant 0 : index
    %c0_45 = arith.constant 0 : index
    %37 = vector.load %arg15[%c6_42, %c1_43, %c0_44, %c0_45] : memref<8x10x10x32xf32, #tpu.memory_space<vmem>>, vector<2x8x8x32xf32>
    %c4_46 = arith.constant 4 : index
    %c1_47 = arith.constant 1 : index
    %c1_48 = arith.constant 1 : index
    %c0_49 = arith.constant 0 : index
    %38 = vector.load %arg15[%c4_46, %c1_47, %c1_48, %c0_49] : memref<8x10x10x32xf32, #tpu.memory_space<vmem>>, vector<2x8x8x32xf32>
    %c6_50 = arith.constant 6 : index
    %c1_51 = arith.constant 1 : index
    %c1_52 = arith.constant 1 : index
    %c0_53 = arith.constant 0 : index
    %39 = vector.load %arg15[%c6_50, %c1_51, %c1_52, %c0_53] : memref<8x10x10x32xf32, #tpu.memory_space<vmem>>, vector<2x8x8x32xf32>
    %40 = tpu.concatenate %31, %32, %33, %34, %35, %36, %37, %38, %39 in 3 : vector<2x8x8x32xf32>, vector<2x8x8x32xf32>, vector<2x8x8x32xf32>, vector<2x8x8x32xf32>, vector<2x8x8x32xf32>, vector<2x8x8x32xf32>, vector<2x8x8x32xf32>, vector<2x8x8x32xf32>, vector<2x8x8x32xf32> -> vector<2x8x8x288xf32>
    %41 = vector.shape_cast %40 : vector<2x8x8x288xf32> to vector<128x288xf32>
    %42 = arith.truncf %41 : vector<128x288xf32> to vector<128x288xbf16>
    %c0_54 = arith.constant 0 : index
    %c0_55 = arith.constant 0 : index
    %43 = vector.load %arg5[%c0_54, %c0_55] : memref<288x32xbf16, #tpu.memory_space<vmem>>, vector<288x32xbf16>
    %cst_56 = arith.constant dense<0.000000e+00> : vector<128x32xf32>
    %44 = tpu.matmul %42, %43, %cst_56 {dimension_numbers = #tpu.dot_dimension_numbers<[1], [0], [0], [1], [0, 0, 1, 1], [], []>} : vector<128x288xbf16>, vector<288x32xbf16>, vector<128x32xf32> -> vector<128x32xf32>
    %c0_57 = arith.constant 0 : index
    %c0_58 = arith.constant 0 : index
    %45 = vector.load %arg6[%c0_57, %c0_58] : memref<1x32xf32, #tpu.memory_space<vmem>>, vector<1x32xf32>
    %c0_59 = arith.constant 0 : index
    %c0_60 = arith.constant 0 : index
    %46 = vector.load %arg7[%c0_59, %c0_60] : memref<1x32xf32, #tpu.memory_space<vmem>>, vector<1x32xf32>
    %cst_61 = arith.constant dense<0.000000e+00> : vector<32xf32>
    %47 = vector.multi_reduction <add>, %44, %cst_61 [0] : vector<128x32xf32> to vector<32xf32>
    %48 = vector.shape_cast %47 : vector<32xf32> to vector<1x32xf32>
    %cst_62 = arith.constant 7.812500e-03 : f32
    %49 = vector.broadcast %cst_62 : f32 to vector<1x32xf32>
    %50 = arith.mulf %48, %49 : vector<1x32xf32>
    %51 = vector.broadcast %50 : vector<1x32xf32> to vector<128x32xf32>
    %52 = arith.subf %44, %51 : vector<128x32xf32>
    %53 = arith.mulf %52, %52 : vector<128x32xf32>
    %cst_63 = arith.constant dense<0.000000e+00> : vector<32xf32>
    %54 = vector.multi_reduction <add>, %53, %cst_63 [0] : vector<128x32xf32> to vector<32xf32>
    %55 = vector.shape_cast %54 : vector<32xf32> to vector<1x32xf32>
    %cst_64 = arith.constant 7.812500e-03 : f32
    %56 = vector.broadcast %cst_64 : f32 to vector<1x32xf32>
    %57 = arith.mulf %55, %56 : vector<1x32xf32>
    %cst_65 = arith.constant 9.99999974E-6 : f32
    %58 = vector.broadcast %cst_65 : f32 to vector<1x32xf32>
    %59 = arith.addf %57, %58 : vector<1x32xf32>
    %60 = math.rsqrt %59 : vector<1x32xf32>
    %61 = arith.mulf %60, %45 : vector<1x32xf32>
    %62 = vector.broadcast %61 : vector<1x32xf32> to vector<128x32xf32>
    %63 = arith.mulf %52, %62 : vector<128x32xf32>
    %64 = vector.broadcast %46 : vector<1x32xf32> to vector<128x32xf32>
    %65 = arith.addf %63, %64 : vector<128x32xf32>
    %cst_66 = arith.constant 0.000000e+00 : f32
    %66 = vector.broadcast %cst_66 : f32 to vector<128x32xf32>
    %67 = arith.maximumf %65, %66 : vector<128x32xf32>
    %68 = arith.truncf %67 : vector<128x32xf32> to vector<128x32xbf16>
    %c0_67 = arith.constant 0 : index
    %c0_68 = arith.constant 0 : index
    %69 = vector.load %arg8[%c0_67, %c0_68] : memref<32x128xbf16, #tpu.memory_space<vmem>>, vector<32x128xbf16>
    %cst_69 = arith.constant dense<0.000000e+00> : vector<128x128xf32>
    %70 = tpu.matmul %68, %69, %cst_69 {dimension_numbers = #tpu.dot_dimension_numbers<[1], [0], [0], [1], [0, 0, 1, 1], [], []>} : vector<128x32xbf16>, vector<32x128xbf16>, vector<128x128xf32> -> vector<128x128xf32>
    %c0_70 = arith.constant 0 : index
    %c0_71 = arith.constant 0 : index
    %71 = vector.load %arg9[%c0_70, %c0_71] : memref<1x128xf32, #tpu.memory_space<vmem>>, vector<1x128xf32>
    %c0_72 = arith.constant 0 : index
    %c0_73 = arith.constant 0 : index
    %72 = vector.load %arg10[%c0_72, %c0_73] : memref<1x128xf32, #tpu.memory_space<vmem>>, vector<1x128xf32>
    %cst_74 = arith.constant dense<0.000000e+00> : vector<128xf32>
    %73 = vector.multi_reduction <add>, %70, %cst_74 [0] : vector<128x128xf32> to vector<128xf32>
    %74 = vector.shape_cast %73 : vector<128xf32> to vector<1x128xf32>
    %cst_75 = arith.constant 7.812500e-03 : f32
    %75 = vector.broadcast %cst_75 : f32 to vector<1x128xf32>
    %76 = arith.mulf %74, %75 : vector<1x128xf32>
    %77 = vector.broadcast %76 : vector<1x128xf32> to vector<128x128xf32>
    %78 = arith.subf %70, %77 : vector<128x128xf32>
    %79 = arith.mulf %78, %78 : vector<128x128xf32>
    %cst_76 = arith.constant dense<0.000000e+00> : vector<128xf32>
    %80 = vector.multi_reduction <add>, %79, %cst_76 [0] : vector<128x128xf32> to vector<128xf32>
    %81 = vector.shape_cast %80 : vector<128xf32> to vector<1x128xf32>
    %cst_77 = arith.constant 7.812500e-03 : f32
    %82 = vector.broadcast %cst_77 : f32 to vector<1x128xf32>
    %83 = arith.mulf %81, %82 : vector<1x128xf32>
    %cst_78 = arith.constant 9.99999974E-6 : f32
    %84 = vector.broadcast %cst_78 : f32 to vector<1x128xf32>
    %85 = arith.addf %83, %84 : vector<1x128xf32>
    %86 = math.rsqrt %85 : vector<1x128xf32>
    %87 = arith.mulf %86, %71 : vector<1x128xf32>
    %88 = vector.broadcast %87 : vector<1x128xf32> to vector<128x128xf32>
    %89 = arith.mulf %78, %88 : vector<128x128xf32>
    %90 = vector.broadcast %72 : vector<1x128xf32> to vector<128x128xf32>
    %91 = arith.addf %89, %90 : vector<128x128xf32>
    %92 = vector.extract_strided_slice %1 {offsets = [0, 0], sizes = [128, 64], strides = [1, 1]} : vector<512x64xbf16> to vector<128x64xbf16>
    %c0_79 = arith.constant 0 : index
    %c0_80 = arith.constant 0 : index
    %93 = vector.load %arg11[%c0_79, %c0_80] : memref<64x128xbf16, #tpu.memory_space<vmem>>, vector<64x128xbf16>
    %cst_81 = arith.constant dense<0.000000e+00> : vector<128x128xf32>
    %94 = tpu.matmul %92, %93, %cst_81 {dimension_numbers = #tpu.dot_dimension_numbers<[1], [0], [0], [1], [0, 0, 1, 1], [], []>} : vector<128x64xbf16>, vector<64x128xbf16>, vector<128x128xf32> -> vector<128x128xf32>
    %c0_82 = arith.constant 0 : index
    %c0_83 = arith.constant 0 : index
    %95 = vector.load %arg12[%c0_82, %c0_83] : memref<1x128xf32, #tpu.memory_space<vmem>>, vector<1x128xf32>
    %c0_84 = arith.constant 0 : index
    %c0_85 = arith.constant 0 : index
    %96 = vector.load %arg13[%c0_84, %c0_85] : memref<1x128xf32, #tpu.memory_space<vmem>>, vector<1x128xf32>
    %cst_86 = arith.constant dense<0.000000e+00> : vector<128xf32>
    %97 = vector.multi_reduction <add>, %94, %cst_86 [0] : vector<128x128xf32> to vector<128xf32>
    %98 = vector.shape_cast %97 : vector<128xf32> to vector<1x128xf32>
    %cst_87 = arith.constant 7.812500e-03 : f32
    %99 = vector.broadcast %cst_87 : f32 to vector<1x128xf32>
    %100 = arith.mulf %98, %99 : vector<1x128xf32>
    %101 = vector.broadcast %100 : vector<1x128xf32> to vector<128x128xf32>
    %102 = arith.subf %94, %101 : vector<128x128xf32>
    %103 = arith.mulf %102, %102 : vector<128x128xf32>
    %cst_88 = arith.constant dense<0.000000e+00> : vector<128xf32>
    %104 = vector.multi_reduction <add>, %103, %cst_88 [0] : vector<128x128xf32> to vector<128xf32>
    %105 = vector.shape_cast %104 : vector<128xf32> to vector<1x128xf32>
    %cst_89 = arith.constant 7.812500e-03 : f32
    %106 = vector.broadcast %cst_89 : f32 to vector<1x128xf32>
    %107 = arith.mulf %105, %106 : vector<1x128xf32>
    %cst_90 = arith.constant 9.99999974E-6 : f32
    %108 = vector.broadcast %cst_90 : f32 to vector<1x128xf32>
    %109 = arith.addf %107, %108 : vector<1x128xf32>
    %110 = math.rsqrt %109 : vector<1x128xf32>
    %111 = arith.mulf %110, %95 : vector<1x128xf32>
    %112 = vector.broadcast %111 : vector<1x128xf32> to vector<128x128xf32>
    %113 = arith.mulf %102, %112 : vector<128x128xf32>
    %114 = vector.broadcast %96 : vector<1x128xf32> to vector<128x128xf32>
    %115 = arith.addf %113, %114 : vector<128x128xf32>
    %116 = arith.addf %91, %115 : vector<128x128xf32>
    %cst_91 = arith.constant 0.000000e+00 : f32
    %117 = vector.broadcast %cst_91 : f32 to vector<128x128xf32>
    %118 = arith.maximumf %116, %117 : vector<128x128xf32>
    %c0_92 = arith.constant 0 : index
    %c0_93 = arith.constant 0 : index
    %119 = vector.load %arg14[%c0_92, %c0_93] : memref<128x128xf32, #tpu.memory_space<vmem>>, vector<128x128xf32>
    tpu.vector_store %arg14[%c0_92, %c0_93], %118 {strides = array<i32>} : memref<128x128xf32, #tpu.memory_space<vmem>>, vector<128x128xf32>,
    return
  }
  func.func @transform_0(%arg0: i32) -> (i32, i32) {
    %c0_i32 = arith.constant 0 : i32
    %c0_i32_0 = arith.constant 0 : i32
    %c0_i32_1 = arith.constant 0 : i32
    return %c0_i32, %c0_i32_0 : i32, i32
  }
  func.func @transform_1(%arg0: i32) -> (i32, i32) {
    %c0_i32 = arith.constant 0 : i32
    %c0_i32_0 = arith.constant 0 : i32
    %c0_i32_1 = arith.constant 0 : i32
    return %c0_i32, %c0_i32_0 : i32, i32
  }
  func.func @transform_2(%arg0: i32) -> (i32, i32) {
    %c0_i32 = arith.constant 0 : i32
    %c0_i32_0 = arith.constant 0 : i32
    %c0_i32_1 = arith.constant 0 : i32
    return %c0_i32, %c0_i32_0 : i32, i32
  }
  func.func @transform_3(%arg0: i32) -> (i32, i32) {
    %c0_i32 = arith.constant 0 : i32
    %c0_i32_0 = arith.constant 0 : i32
    %c0_i32_1 = arith.constant 0 : i32
    return %c0_i32, %c0_i32_0 : i32, i32
  }
  func.func @transform_4(%arg0: i32) -> (i32, i32) {
    %c0_i32 = arith.constant 0 : i32
    %c0_i32_0 = arith.constant 0 : i32
    %c0_i32_1 = arith.constant 0 : i32
    return %c0_i32, %c0_i32_0 : i32, i32
  }
  func.func @transform_5(%arg0: i32) -> (i32, i32) {
    %c0_i32 = arith.constant 0 : i32
    %c0_i32_0 = arith.constant 0 : i32
    %c0_i32_1 = arith.constant 0 : i32
    return %c0_i32, %c0_i32_0 : i32, i32
  }
  func.func @transform_6(%arg0: i32) -> (i32, i32) {
    %c0_i32 = arith.constant 0 : i32
    %c0_i32_0 = arith.constant 0 : i32
    %c0_i32_1 = arith.constant 0 : i32
    return %c0_i32, %c0_i32_0 : i32, i32
  }
  func.func @transform_7(%arg0: i32) -> (i32, i32) {
    %c0_i32 = arith.constant 0 : i32
    %c0_i32_0 = arith.constant 0 : i32
    %c0_i32_1 = arith.constant 0 : i32
    return %c0_i32, %c0_i32_0 : i32, i32
  }
  func.func @transform_8(%arg0: i32) -> (i32, i32) {
    %c0_i32 = arith.constant 0 : i32
    %c0_i32_0 = arith.constant 0 : i32
    %c0_i32_1 = arith.constant 0 : i32
    return %c0_i32, %c0_i32_0 : i32, i32
  }
  func.func @transform_9(%arg0: i32) -> (i32, i32) {
    %c0_i32 = arith.constant 0 : i32
    %c0_i32_0 = arith.constant 0 : i32
    %c0_i32_1 = arith.constant 0 : i32
    return %c0_i32, %c0_i32_0 : i32, i32
  }
  func.func @transform_10(%arg0: i32) -> (i32, i32) {
    %c0_i32 = arith.constant 0 : i32
    %c0_i32_0 = arith.constant 0 : i32
    %c0_i32_1 = arith.constant 0 : i32
    return %c0_i32, %c0_i32_0 : i32, i32
  }
  func.func @transform_11(%arg0: i32) -> (i32, i32) {
    %c0_i32 = arith.constant 0 : i32
    %c0_i32_0 = arith.constant 0 : i32
    %c0_i32_1 = arith.constant 0 : i32
    return %c0_i32, %c0_i32_0 : i32, i32
  }
  func.func @transform_12(%arg0: i32) -> (i32, i32) {
    %c0_i32 = arith.constant 0 : i32
    %c0_i32_0 = arith.constant 0 : i32
    %c0_i32_1 = arith.constant 0 : i32
    return %c0_i32, %c0_i32_0 : i32, i32
  }
  func.func @transform_13(%arg0: i32) -> (i32, i32) {
    %c0_i32 = arith.constant 0 : i32
    %c0_i32_0 = arith.constant 0 : i32
    %c0_i32_1 = arith.constant 0 : i32
    return %c0_i32, %c0_i32_0 : i32, i32
  }
}

</mosaic_0001>

<bundles_post_ra>
// kernel: tpu_custom_call.1
= control target key start
LH: loop header
LB: loop body
LE: loop exit
PB: predicated region body
PF: predicated region fallthrough
CT: control target
= control target key end

     0   :  { %vm174_vm0 = vcmask 523264   ;;  %s6625_s0 = inlined_call_operand.vmem [shape: f32[512,64], index: 0, kind: input, shape index: {}]   ;;  %s6626_s1 = inlined_call_operand.vmem [shape: bf16[64,32], index: 1, kind: input, shape index: {}]   ;;  %s6627_s2 = inlined_call_operand.vmem [shape: f32[1,32], index: 2, kind: input, shape index: {}]   ;;  %s6628_s3 = inlined_call_operand.vmem [shape: f32[1,32], index: 3, kind: input, shape index: {}]   ;;  %s6629_s4 = inlined_call_operand.vmem [shape: bf16[288,32], index: 4, kind: input, shape index: {}]   ;;  %s6630_s5 = inlined_call_operand.vmem [shape: f32[1,32], index: 5, kind: input, shape index: {}]   ;;  %s6631_s6 = inlined_call_operand.vmem [shape: f32[1,32], index: 6, kind: input, shape index: {}]   ;;  %s6632_s7 = inlined_call_operand.vmem [shape: bf16[32,128], index: 7, kind: input, shape index: {}]   ;;  %s6633_s8 = inlined_call_operand.vmem [shape: f32[1,128], index: 8, kind: input, shape index: {}]   ;;  %s6634_s9 = inlined_call_operand.vmem [shape: f32[1,128], index: 9, kind: input, shape index: {}]   ;;  %s6635_s10 = inlined_call_operand.vmem [shape: bf16[64,128], index: 10, kind: input, shape index: {}]   ;;  %s6636_s11 = inlined_call_operand.vmem [shape: f32[1,128], index: 11, kind: input, shape index: {}]   ;;  %s6637_s12 = inlined_call_operand.vmem [shape: f32[1,128], index: 12, kind: input, shape index: {}]   ;;  %s6638_s13 = inlined_call_operand.hbm [shape: f32[128,128], index: 13, kind: output, shape index: {}]  }
   0x1   :  { %v3772_v0 = vld [vmem:[%s6626_s1 + $0x18] sm:$0xff]   ;;  %v3773_v1 = vld [vmem:[%s6626_s1 + $0x10] sm:$0xff]   ;;  %v3774_v2 = vld [vmem:[%s6626_s1 + $0x8] sm:$0xff]  }
   0x2   :  { %3381 = vmatprep.subr.bf16.mxu0 %v3772_v0  ;;  %v46_v3 = vld [vmem:[%s6625_s0] sm:$0xff]  ;;  %v47_v4 = vld [vmem:[%s6625_s0 + $0x8] sm:$0xff]  ;;  %v48_v7 = vld [vmem:[%s6625_s0 + $0x10] sm:$0xff] }
   0x3   :  { %3382 = vmatpush3.bf16.msra.mxu0 %v3772_v0  ;;  %v3922_v5 = vpack.c.bf16 %v47_v4, %v46_v3  ;;  %v3775_v6 = vld [vmem:[%s6626_s1] sm:$0xff]   ;;  %v49_v8 = vld [vmem:[%s6625_s0 + $0x18] sm:$0xff]  ;;  %v51_v10 = vld [vmem:[%s6625_s0 + $0x28] sm:$0xff] }
   0x4   :  { %3383 = vmatprep.subr.bf16.mxu0 %v3773_v1  ;;  %v50_v9 = vld [vmem:[%s6625_s0 + $0x20] sm:$0xff]  ;;  %v3941_v11 = vpack.c.bf16 %v49_v8, %v48_v7  ;;  %v52_v13 = vld [vmem:[%s6625_s0 + $0x30] sm:$0xff]  ;;  %v53_v14 = vld [vmem:[%s6625_s0 + $0x38] sm:$0xff] }
   0x5   :  { %3389 = vmatprep.mubr.msk.bf16.mxu0 %vm174_vm0, %v3922_v5  ;;  %v3943_v12 = vpack.c.bf16 %v51_v10, %v50_v9  ;;  %v54_v15 = vld [vmem:[%s6625_s0 + $0x40] sm:$0xff]  ;;  %v55_v16 = vld [vmem:[%s6625_s0 + $0x48] sm:$0xff]  ;;  %v3961_v17 = vpack.c.bf16 %v53_v14, %v52_v13  ;;  %v56_v19 = vld [vmem:[%s6625_s0 + $0x50] sm:$0xff] }
   0x6   :  { %6686 = vst [vmem:[#allocation6_spill] sm:$0xff] %v3941_v11  ;;  %v3963_v18 = vpack.c.bf16 %v55_v16, %v54_v15  ;;  %v57_v20 = vld [vmem:[%s6625_s0 + $0x58] sm:$0xff]  ;;  %v58_v21 = vld [vmem:[%s6625_s0 + $0x60] sm:$0xff]  ;;  %v59_v22 = vld [vmem:[%s6625_s0 + $0x68] sm:$0xff] }
   0x7   :  { %3384 = vmatpush3.bf16.msra.mxu0 %v3773_v1  ;;  %6687 = vst [vmem:[#allocation7_spill] sm:$0xff] %v3943_v12  ;;  %6688 = vst [vmem:[#allocation8_spill] sm:$0xff] %v3961_v17  ;;  %v3981_v23 = vpack.c.bf16 %v57_v20, %v56_v19  ;;  %v3983_v24 = vpack.c.bf16 %v59_v22, %v58_v21  ;;  %v60_v25 = vld [vmem:[%s6625_s0 + $0x70] sm:$0xff]  ;;  %v61_v26 = vld [vmem:[%s6625_s0 + $0x78] sm:$0xff] }
   0x8   :  { %3385 = vmatprep.subr.bf16.mxu0 %v3774_v2  ;;  %6689 = vst [vmem:[#allocation9_spill] sm:$0xff] %v3963_v18  ;;  %v62_v27 = vld [vmem:[%s6625_s0 + $0x80] sm:$0xff]  ;;  %v63_v28 = vld [vmem:[%s6625_s0 + $0x88] sm:$0xff]  ;;  %v4001_v29 = vpack.c.bf16 %v61_v26, %v60_v25 }
   0x9   :  { %6690 = vst [vmem:[#allocation10_spill] sm:$0xff] %v3981_v23  ;;  %6691 = vst [vmem:[#allocation11_spill] sm:$0xff] %v3983_v24  ;;  %v118_v30 = vpack.c.bf16 %v63_v28, %v62_v27 }
   0xa   :  { %6692 = vst [vmem:[#allocation12_spill] sm:$0xff] %v4001_v29 }
   0xb   :  { %3386 = vmatpush3.bf16.msra.mxu0 %v3774_v2 }
   0xc   :  { %3387 = vmatprep.subr.bf16.mxu0 %v3775_v6 }
   0xf   :  { %3388 = vmatpush3.bf16.msra.mxu0 %v3775_v6 }
  0x12   :  { %3390 = vmatmul.mubr.msk.bf16.vlgmr.msra.gmra.mxu0 %vm174_vm0, %v3941_v11 }
  0x13   :  { %3393 = vmatprep.mubr.msk.bf16.mxu0 %vm174_vm0, %v3943_v12 }
  0x1a   :  { %3394 = vmatmul.mubr.msk.bf16.gmra.mxu0 %vm174_vm0, %v3961_v17 }
  0x1b   :  { %3397 = vmatprep.mubr.msk.bf16.mxu0 %vm174_vm0, %v3963_v18 }
  0x22   :  { %3398 = vmatmul.mubr.msk.bf16.gmra.mxu0 %vm174_vm0, %v3981_v23 }
  0x23   :  { %3401 = vmatprep.mubr.msk.bf16.mxu0 %vm174_vm0, %v3983_v24 }
  0x24   :  { %18 = vsyncpa [#allocation4], 0  ;;  %v64_v31 = vld [vmem:[%s6625_s0 + $0x90] sm:$0xff]  ;;  %v65_v32 = vld [vmem:[%s6625_s0 + $0x98] sm:$0xff]  ;;  %vm562_vm1 = vcmask 261120   ;;  %vm1165_vm2 = vcmask 254976  }
  0x25   :  { %v66_v33 = vld [vmem:[%s6625_s0 + $0xa0] sm:$0xff]  ;;  %v67_v34 = vld [vmem:[%s6625_s0 + $0xa8] sm:$0xff]  ;;  %v119_v35 = vpack.c.bf16 %v65_v32, %v64_v31  ;;  %v68_v37 = vld [vmem:[%s6625_s0 + $0xb0] sm:$0xff]  ;;  %v3830_v1 = vmov 0.0   ;;  %s3831_s20 = smov 64   ;;  %s3832_s28 = smov 32  }
  0x26   :  { %v120_v36 = vpack.c.bf16 %v67_v34, %v66_v33  ;;  %v69_v38 = vld [vmem:[%s6625_s0 + $0xb8] sm:$0xff]  ;;  %v70_v39 = vld [vmem:[%s6625_s0 + $0xc0] sm:$0xff]  ;;  %v71_v40 = vld [vmem:[%s6625_s0 + $0xc8] sm:$0xff]  ;;  %1171 = vst.msk [vmem:[#allocation2 + $0x30] sm:$0xff] %vm562_vm1, %v3830_v1  ;;  %s3833_s14 = smov 96   ;;  %vm1955_vm3 = vcmask 785408  }
  0x27   :  { %v121_v41 = vpack.c.bf16 %v69_v38, %v68_v37  ;;  %v122_v42 = vpack.c.bf16 %v71_v40, %v70_v39  ;;  %v72_v43 = vld [vmem:[%s6625_s0 + $0xd0] sm:$0xff]  ;;  %v73_v44 = vld [vmem:[%s6625_s0 + $0xd8] sm:$0xff]  ;;  %v74_v45 = vld [vmem:[%s6625_s0 + $0xe0] sm:$0xff]  ;;  %1172 = vst.msk [vmem:[#allocation2 + $0x38] sm:$0x3] %vm1165_vm2, %v3830_v1 }
  0x28   :  { %v75_v46 = vld [vmem:[%s6625_s0 + $0xe8] sm:$0xff]  ;;  %v123_v47 = vpack.c.bf16 %v73_v44, %v72_v43  ;;  %v76_v49 = vld [vmem:[%s6625_s0 + $0xf0] sm:$0xff]  ;;  %v77_v50 = vld [vmem:[%s6625_s0 + $0xf8] sm:$0xff]  ;;  %1167 = vst.msk [vmem:[#allocation2 + $0x10] sm:$0xff] %vm562_vm1, %v3830_v1 }
  0x29   :  { %v124_v48 = vpack.c.bf16 %v75_v46, %v74_v45  ;;  %v78_v51 = vld [vmem:[%s6625_s0 + $0x100] sm:$0xff]  ;;  %v79_v52 = vld [vmem:[%s6625_s0 + $0x108] sm:$0xff]  ;;  %v125_v53 = vpack.c.bf16 %v77_v50, %v76_v49  ;;  %v80_v55 = vld [vmem:[%s6625_s0 + $0x110] sm:$0xff]  ;;  %1168 = vst.msk [vmem:[#allocation2 + $0x18] sm:$0x3] %vm1165_vm2, %v3830_v1 }
  0x2a   :  { %3402 = vmatmul.mubr.msk.bf16.gmra.mxu0 %vm174_vm0, %v4001_v29  ;;  %v126_v54 = vpack.c.bf16 %v79_v52, %v78_v51  ;;  %v81_v56 = vld [vmem:[%s6625_s0 + $0x118] sm:$0xff]  ;;  %v82_v57 = vld [vmem:[%s6625_s0 + $0x120] sm:$0xff]  ;;  %v83_v58 = vld [vmem:[%s6625_s0 + $0x128] sm:$0xff]  ;;  %1169 = vst.msk [vmem:[#allocation2 + $0x20] sm:$0xff] %vm562_vm1, %v3830_v1 }
  0x2b   :  { %3405 = vmatprep.mubr.msk.bf16.mxu0 %vm174_vm0, %v118_v30  ;;  %v127_v59 = vpack.c.bf16 %v81_v56, %v80_v55  ;;  %v128_v60 = vpack.c.bf16 %v83_v58, %v82_v57  ;;  %v4079_v61 = vld [vmem:[%s6625_s0 + $0x130] sm:$0xff]  ;;  %v4084_v62 = vld [vmem:[%s6625_s0 + $0x138] sm:$0xff]  ;;  %v4089_v63 = vld [vmem:[%s6625_s0 + $0x140] sm:$0xff]  ;;  %1170 = vst.msk [vmem:[#allocation2 + $0x28] sm:$0x3] %vm1165_vm2, %v3830_v1 }
  0x2c   :  { %v4094_v0 = vld [vmem:[%s6625_s0 + $0x148] sm:$0xff]  ;;  %1173 = vst.msk [vmem:[#allocation2 + $0x40] sm:$0xff] %vm562_vm1, %v3830_v1  ;;  %1175 = vst.msk [vmem:[#allocation2 + $0x50] sm:$0xff] %vm562_vm1, %v3830_v1  ;;  %v129_v2 = vpack.c.bf16 %v4084_v62, %v4079_v61  ;;  %v88_v4 = vld [vmem:[%s6625_s0 + $0x150] sm:$0xff] }
  0x2d   :  { %1174 = vst.msk [vmem:[#allocation2 + $0x48] sm:$0x3] %vm1165_vm2, %v3830_v1  ;;  %1176 = vst.msk [vmem:[#allocation2 + $0x58] sm:$0x3] %vm1165_vm2, %v3830_v1  ;;  %v130_v3 = vpack.c.bf16 %v4094_v0, %v4089_v63  ;;  %v89_v6 = vld [vmem:[%s6625_s0 + $0x158] sm:$0xff]  ;;  %v90_v7 = vld [vmem:[%s6625_s0 + $0x160] sm:$0xff] }
  0x2e   :  { %1177 = vst.msk [vmem:[#allocation2 + $0x60] sm:$0xff] %vm562_vm1, %v3830_v1  ;;  %1179 = vst.msk [vmem:[#allocation2 + $0x70] sm:$0xff] %vm562_vm1, %v3830_v1  ;;  %v91_v8 = vld [vmem:[%s6625_s0 + $0x168] sm:$0xff]  ;;  %v131_v9 = vpack.c.bf16 %v89_v6, %v88_v4  ;;  %v92_v13 = vld [vmem:[%s6625_s0 + $0x170] sm:$0xff] }
  0x2f   :  { %1178 = vst.msk [vmem:[#allocation2 + $0x68] sm:$0x3] %vm1165_vm2, %v3830_v1  ;;  %1180 = vst.msk [vmem:[#allocation2 + $0x78] sm:$0x3] %vm1165_vm2, %v3830_v1  ;;  %v132_v10 = vpack.c.bf16 %v91_v8, %v90_v7  ;;  %v93_v14 = vld [vmem:[%s6625_s0 + $0x178] sm:$0xff]  ;;  %v94_v15 = vld [vmem:[%s6625_s0 + $0x180] sm:$0xff] }
  0x30   :  { %1181 = vst.msk [vmem:[#allocation2 + $0x80] sm:$0xff] %vm562_vm1, %v3830_v1  ;;  %1187 = vst.msk [vmem:[#allocation2 + $0xb0] sm:$0xff] %vm562_vm1, %v3830_v1  ;;  %v95_v16 = vld [vmem:[%s6625_s0 + $0x188] sm:$0xff]  ;;  %v133_v19 = vpack.c.bf16 %v93_v14, %v92_v13  ;;  %v96_v21 = vld [vmem:[%s6625_s0 + $0x190] sm:$0xff] }
  0x31   :  { %1182 = vst.msk [vmem:[#allocation2 + $0x88] sm:$0x3] %vm1165_vm2, %v3830_v1  ;;  %1188 = vst.msk [vmem:[#allocation2 + $0xb8] sm:$0x3] %vm1165_vm2, %v3830_v1  ;;  %v134_v20 = vpack.c.bf16 %v95_v16, %v94_v15  ;;  %v97_v22 = vld [vmem:[%s6625_s0 + $0x198] sm:$0xff]  ;;  %v98_v25 = vld [vmem:[%s6625_s0 + $0x1a0] sm:$0xff] }
  0x32   :  { %3406 = vmatmul.mubr.msk.bf16.gmra.mxu0 %vm174_vm0, %v119_v35  ;;  %1189 = vst.msk [vmem:[#allocation2 + $0xc0] sm:$0xff] %vm562_vm1, %v3830_v1  ;;  %1191 = vst.msk [vmem:[#allocation2 + $0xd0] sm:$0xff] %vm562_vm1, %v3830_v1  ;;  %v99_v26 = vld [vmem:[%s6625_s0 + $0x1a8] sm:$0xff]  ;;  %v135_v27 = vpack.c.bf16 %v97_v22, %v96_v21  ;;  %v100_v30 = vld [vmem:[%s6625_s0 + $0x1b0] sm:$0xff] }
  0x33   :  { %3409 = vmatprep.mubr.msk.bf16.mxu0 %vm174_vm0, %v120_v36  ;;  %1190 = vst.msk [vmem:[#allocation2 + $0xc8] sm:$0x3] %vm1165_vm2, %v3830_v1  ;;  %1192 = vst.msk [vmem:[#allocation2 + $0xd8] sm:$0x3] %vm1165_vm2, %v3830_v1  ;;  %v136_v28 = vpack.c.bf16 %v99_v26, %v98_v25  ;;  %v101_v31 = vld [vmem:[%s6625_s0 + $0x1b8] sm:$0xff]  ;;  %v102_v32 = vld [vmem:[%s6625_s0 + $0x1c0] sm:$0xff] }
  0x34   :  { %1193 = vst.msk [vmem:[#allocation2 + $0xe0] sm:$0xff] %vm562_vm1, %v3830_v1  ;;  %1195 = vst.msk [vmem:[#allocation2 + $0xf0] sm:$0xff] %vm562_vm1, %v3830_v1  ;;  %v103_v33 = vld [vmem:[%s6625_s0 + $0x1c8] sm:$0xff]  ;;  %v137_v34 = vpack.c.bf16 %v101_v31, %v100_v30  ;;  %v104_v36 = vld [vmem:[%s6625_s0 + $0x1d0] sm:$0xff] }
  0x35   :  { %1194 = vst.msk [vmem:[#allocation2 + $0xe8] sm:$0x3] %vm1165_vm2, %v3830_v1  ;;  %1196 = vst.msk [vmem:[#allocation2 + $0xf8] sm:$0x3] %vm1165_vm2, %v3830_v1  ;;  %v138_v35 = vpack.c.bf16 %v103_v33, %v102_v32  ;;  %v105_v37 = vld [vmem:[%s6625_s0 + $0x1d8] sm:$0xff]  ;;  %v106_v38 = vld [vmem:[%s6625_s0 + $0x1e0] sm:$0xff] }
  0x36   :  { %1197 = vst.msk [vmem:[#allocation2 + $0x100] sm:$0xff] %vm562_vm1, %v3830_v1  ;;  %1199 = vst.msk [vmem:[#allocation2 + $0x110] sm:$0xff] %vm562_vm1, %v3830_v1  ;;  %v107_v39 = vld [vmem:[%s6625_s0 + $0x1e8] sm:$0xff]  ;;  %v139_v40 = vpack.c.bf16 %v105_v37, %v104_v36  ;;  %v109_v43 = vld [vmem:[%s6625_s0 + $0x1f8] sm:$0xff] }
  0x37   :  { %1198 = vst.msk [vmem:[#allocation2 + $0x108] sm:$0x3] %vm1165_vm2, %v3830_v1  ;;  %1200 = vst.msk [vmem:[#allocation2 + $0x118] sm:$0x3] %vm1165_vm2, %v3830_v1 }
  0x38   :  { %1201 = vst.msk [vmem:[#allocation2 + $0x120] sm:$0xff] %vm562_vm1, %v3830_v1  ;;  %1207 = vst.msk [vmem:[#allocation2 + $0x150] sm:$0xff] %vm562_vm1, %v3830_v1 }
  0x39   :  { %1202 = vst.msk [vmem:[#allocation2 + $0x128] sm:$0x3] %vm1165_vm2, %v3830_v1  ;;  %1208 = vst.msk [vmem:[#allocation2 + $0x158] sm:$0x3] %vm1165_vm2, %v3830_v1 }
  0x3a   :  { %3410 = vmatmul.mubr.msk.bf16.gmra.mxu0 %vm174_vm0, %v121_v41  ;;  %1209 = vst.msk [vmem:[#allocation2 + $0x160] sm:$0xff] %vm562_vm1, %v3830_v1  ;;  %1211 = vst.msk [vmem:[#allocation2 + $0x170] sm:$0xff] %vm562_vm1, %v3830_v1  ;;  %v140_v41 = vpack.c.bf16 %v107_v39, %v106_v38 }
  0x3b   :  { %3413 = vmatprep.mubr.msk.bf16.mxu0 %vm174_vm0, %v122_v42  ;;  %1210 = vst.msk [vmem:[#allocation2 + $0x168] sm:$0x3] %vm1165_vm2, %v3830_v1  ;;  %1212 = vst.msk [vmem:[#allocation2 + $0x178] sm:$0x3] %vm1165_vm2, %v3830_v1  ;;  %v108_v42 = vld [vmem:[%s6625_s0 + $0x1f0] sm:$0xff] }
  0x3c   :  { %1213 = vst.msk [vmem:[#allocation2 + $0x180] sm:$0xff] %vm562_vm1, %v3830_v1  ;;  %1215 = vst.msk [vmem:[#allocation2 + $0x190] sm:$0xff] %vm562_vm1, %v3830_v1  ;;  %v141_v44 = vpack.c.bf16 %v109_v43, %v108_v42 }
  0x3d   :  { %1214 = vst.msk [vmem:[#allocation2 + $0x188] sm:$0x3] %vm1165_vm2, %v3830_v1  ;;  %1216 = vst.msk [vmem:[#allocation2 + $0x198] sm:$0x3] %vm1165_vm2, %v3830_v1 }
  0x3e   :  { %1217 = vst.msk [vmem:[#allocation2 + $0x1a0] sm:$0xff] %vm562_vm1, %v3830_v1  ;;  %1219 = vst.msk [vmem:[#allocation2 + $0x1b0] sm:$0xff] %vm562_vm1, %v3830_v1 }
  0x3f   :  { %1218 = vst.msk [vmem:[#allocation2 + $0x1a8] sm:$0x3] %vm1165_vm2, %v3830_v1  ;;  %1220 = vst.msk [vmem:[#allocation2 + $0x1b8] sm:$0x3] %vm1165_vm2, %v3830_v1 }
  0x40   :  { %1221 = vst.msk [vmem:[#allocation2 + $0x1c0] sm:$0xff] %vm562_vm1, %v3830_v1  ;;  %1227 = vst.msk [vmem:[#allocation2 + $0x1f0] sm:$0xff] %vm562_vm1, %v3830_v1 }
  0x41   :  { %1222 = vst.msk [vmem:[#allocation2 + $0x1c8] sm:$0x3] %vm1165_vm2, %v3830_v1  ;;  %1228 = vst.msk [vmem:[#allocation2 + $0x1f8] sm:$0x3] %vm1165_vm2, %v3830_v1 }
  0x42   :  { %3414 = vmatmul.mubr.msk.bf16.gmra.mxu0 %vm174_vm0, %v123_v47  ;;  %1229 = vst.msk [vmem:[#allocation2 + $0x200] sm:$0xff] %vm562_vm1, %v3830_v1  ;;  %1231 = vst.msk [vmem:[#allocation2 + $0x210] sm:$0xff] %vm562_vm1, %v3830_v1 }
  0x43   :  { %3417 = vmatprep.mubr.msk.bf16.mxu0 %vm174_vm0, %v124_v48  ;;  %1230 = vst.msk [vmem:[#allocation2 + $0x208] sm:$0x3] %vm1165_vm2, %v3830_v1  ;;  %1232 = vst.msk [vmem:[#allocation2 + $0x218] sm:$0x3] %vm1165_vm2, %v3830_v1 }
  0x44   :  { %1233 = vst.msk [vmem:[#allocation2 + $0x220] sm:$0xff] %vm562_vm1, %v3830_v1  ;;  %1235 = vst.msk [vmem:[#allocation2 + $0x230] sm:$0xff] %vm562_vm1, %v3830_v1 }
  0x45   :  { %1234 = vst.msk [vmem:[#allocation2 + $0x228] sm:$0x3] %vm1165_vm2, %v3830_v1  ;;  %1236 = vst.msk [vmem:[#allocation2 + $0x238] sm:$0x3] %vm1165_vm2, %v3830_v1 }
  0x46   :  { %1237 = vst.msk [vmem:[#allocation2 + $0x240] sm:$0xff] %vm562_vm1, %v3830_v1  ;;  %1239 = vst.msk [vmem:[#allocation2 + $0x250] sm:$0xff] %vm562_vm1, %v3830_v1 }
  0x47   :  { %1238 = vst.msk [vmem:[#allocation2 + $0x248] sm:$0x3] %vm1165_vm2, %v3830_v1  ;;  %1240 = vst.msk [vmem:[#allocation2 + $0x258] sm:$0x3] %vm1165_vm2, %v3830_v1 }
  0x48   :  { %1241 = vst.msk [vmem:[#allocation2 + $0x260] sm:$0xff] %vm562_vm1, %v3830_v1  ;;  %1245 = vst.msk [vmem:[#allocation2 + $0x280] sm:$0xff] %vm562_vm1, %v3830_v1 }
  0x49   :  { %1242 = vst.msk [vmem:[#allocation2 + $0x268] sm:$0x3] %vm1165_vm2, %v3830_v1  ;;  %1246 = vst.msk [vmem:[#allocation2 + $0x288] sm:$0x3] %vm1165_vm2, %v3830_v1 }
  0x4a   :  { %3418 = vmatmul.mubr.msk.bf16.gmra.mxu0 %vm174_vm0, %v125_v53  ;;  %1247 = vst.msk [vmem:[#allocation2 + $0x290] sm:$0xff] %vm562_vm1, %v3830_v1  ;;  %1249 = vst.msk [vmem:[#allocation2 + $0x2a0] sm:$0xff] %vm562_vm1, %v3830_v1 }
  0x4b   :  { %3421 = vmatprep.mubr.msk.bf16.mxu0 %vm174_vm0, %v126_v54  ;;  %1248 = vst.msk [vmem:[#allocation2 + $0x298] sm:$0x3] %vm1165_vm2, %v3830_v1  ;;  %1250 = vst.msk [vmem:[#allocation2 + $0x2a8] sm:$0x3] %vm1165_vm2, %v3830_v1 }
  0x4c   :  { %1251 = vst.msk [vmem:[#allocation2 + $0x2b0] sm:$0xff] %vm562_vm1, %v3830_v1  ;;  %1253 = vst.msk [vmem:[#allocation2 + $0x2c0] sm:$0xff] %vm562_vm1, %v3830_v1 }
  0x4d   :  { %1252 = vst.msk [vmem:[#allocation2 + $0x2b8] sm:$0x3] %vm1165_vm2, %v3830_v1  ;;  %1254 = vst.msk [vmem:[#allocation2 + $0x2c8] sm:$0x3] %vm1165_vm2, %v3830_v1 }
  0x4e   :  { %1255 = vst.msk [vmem:[#allocation2 + $0x2d0] sm:$0xff] %vm562_vm1, %v3830_v1  ;;  %1257 = vst.msk [vmem:[#allocation2 + $0x2e0] sm:$0xff] %vm562_vm1, %v3830_v1 }
  0x4f   :  { %1256 = vst.msk [vmem:[#allocation2 + $0x2d8] sm:$0x3] %vm1165_vm2, %v3830_v1  ;;  %1258 = vst.msk [vmem:[#allocation2 + $0x2e8] sm:$0x3] %vm1165_vm2, %v3830_v1 }
  0x50   :  { %1259 = vst.msk [vmem:[#allocation2 + $0x2f0] sm:$0xff] %vm562_vm1, %v3830_v1  ;;  %1261 = vst.msk [vmem:[#allocation2 + $0x300] sm:$0xff] %vm562_vm1, %v3830_v1 }
  0x51   :  { %1260 = vst.msk [vmem:[#allocation2 + $0x2f8] sm:$0x3] %vm1165_vm2, %v3830_v1  ;;  %1262 = vst.msk [vmem:[#allocation2 + $0x308] sm:$0x3] %vm1165_vm2, %v3830_v1 }
  0x52   :  { %3422 = vmatmul.mubr.msk.bf16.gmra.mxu0 %vm174_vm0, %v127_v59  ;;  %1265 = vst.msk [vmem:[#allocation2 + $0x320] sm:$0xff] %vm562_vm1, %v3830_v1  ;;  %1267 = vst.msk [vmem:[#allocation2 + $0x330] sm:$0xff] %vm562_vm1, %v3830_v1 }
  0x53   :  { %3425 = vmatprep.mubr.msk.bf16.mxu0 %vm174_vm0, %v128_v60  ;;  %1266 = vst.msk [vmem:[#allocation2 + $0x328] sm:$0x3] %vm1165_vm2, %v3830_v1  ;;  %1268 = vst.msk [vmem:[#allocation2 + $0x338] sm:$0x3] %vm1165_vm2, %v3830_v1 }
  0x54   :  { %1269 = vst.msk [vmem:[#allocation2 + $0x340] sm:$0xff] %vm562_vm1, %v3830_v1  ;;  %1271 = vst.msk [vmem:[#allocation2 + $0x350] sm:$0xff] %vm562_vm1, %v3830_v1 }
  0x55   :  { %1270 = vst.msk [vmem:[#allocation2 + $0x348] sm:$0x3] %vm1165_vm2, %v3830_v1  ;;  %1272 = vst.msk [vmem:[#allocation2 + $0x358] sm:$0x3] %vm1165_vm2, %v3830_v1 }
  0x56   :  { %1273 = vst.msk [vmem:[#allocation2 + $0x360] sm:$0xff] %vm562_vm1, %v3830_v1  ;;  %1275 = vst.msk [vmem:[#allocation2 + $0x370] sm:$0xff] %vm562_vm1, %v3830_v1 }
  0x57   :  { %1274 = vst.msk [vmem:[#allocation2 + $0x368] sm:$0x3] %vm1165_vm2, %v3830_v1  ;;  %1276 = vst.msk [vmem:[#allocation2 + $0x378] sm:$0x3] %vm1165_vm2, %v3830_v1 }
  0x58   :  { %1277 = vst.msk [vmem:[#allocation2 + $0x380] sm:$0xff] %vm562_vm1, %v3830_v1  ;;  %1279 = vst.msk [vmem:[#allocation2 + $0x390] sm:$0xff] %vm562_vm1, %v3830_v1 }
  0x59   :  { %1278 = vst.msk [vmem:[#allocation2 + $0x388] sm:$0x3] %vm1165_vm2, %v3830_v1  ;;  %1280 = vst.msk [vmem:[#allocation2 + $0x398] sm:$0x3] %vm1165_vm2, %v3830_v1 }
  0x5a   :  { %1281 = vst.msk [vmem:[#allocation2 + $0x3a0] sm:$0xff] %vm562_vm1, %v3830_v1  ;;  %1285 = vst.msk [vmem:[#allocation2 + $0x3c0] sm:$0xff] %vm562_vm1, %v3830_v1  ;;  %3426 = vmatmul.mubr.msk.bf16.gmra.mxu0 %vm174_vm0, %v129_v2 }
  0x5b   :  { %1282 = vst.msk [vmem:[#allocation2 + $0x3a8] sm:$0x3] %vm1165_vm2, %v3830_v1  ;;  %1286 = vst.msk [vmem:[#allocation2 + $0x3c8] sm:$0x3] %vm1165_vm2, %v3830_v1  ;;  %3429 = vmatprep.mubr.msk.bf16.mxu0 %vm174_vm0, %v130_v3 }
  0x5c   :  { %1287 = vst.msk [vmem:[#allocation2 + $0x3d0] sm:$0xff] %vm562_vm1, %v3830_v1  ;;  %1289 = vst.msk [vmem:[#allocation2 + $0x3e0] sm:$0xff] %vm562_vm1, %v3830_v1 }
  0x5d   :  { %1288 = vst.msk [vmem:[#allocation2 + $0x3d8] sm:$0x3] %vm1165_vm2, %v3830_v1  ;;  %1290 = vst.msk [vmem:[#allocation2 + $0x3e8] sm:$0x3] %vm1165_vm2, %v3830_v1 }
  0x5e   :  { %1291 = vst.msk [vmem:[#allocation2 + $0x3f0] sm:$0xff] %vm562_vm1, %v3830_v1  ;;  %1293 = vst.msk [vmem:[#allocation2 + $0x400] sm:$0xff] %vm562_vm1, %v3830_v1 }
  0x5f   :  { %1292 = vst.msk [vmem:[#allocation2 + $0x3f8] sm:$0x3] %vm1165_vm2, %v3830_v1  ;;  %1294 = vst.msk [vmem:[#allocation2 + $0x408] sm:$0x3] %vm1165_vm2, %v3830_v1 }
  0x60   :  { %1295 = vst.msk [vmem:[#allocation2 + $0x410] sm:$0xff] %vm562_vm1, %v3830_v1  ;;  %1297 = vst.msk [vmem:[#allocation2 + $0x420] sm:$0xff] %vm562_vm1, %v3830_v1 }
  0x61   :  { %1296 = vst.msk [vmem:[#allocation2 + $0x418] sm:$0x3] %vm1165_vm2, %v3830_v1  ;;  %1298 = vst.msk [vmem:[#allocation2 + $0x428] sm:$0x3] %vm1165_vm2, %v3830_v1 }
  0x62   :  { %1299 = vst.msk [vmem:[#allocation2 + $0x430] sm:$0xff] %vm562_vm1, %v3830_v1  ;;  %1301 = vst.msk [vmem:[#allocation2 + $0x440] sm:$0xff] %vm562_vm1, %v3830_v1  ;;  %3430 = vmatmul.mubr.msk.bf16.gmra.mxu0 %vm174_vm0, %v131_v9 }
  0x63   :  { %1300 = vst.msk [vmem:[#allocation2 + $0x438] sm:$0x3] %vm1165_vm2, %v3830_v1  ;;  %1302 = vst.msk [vmem:[#allocation2 + $0x448] sm:$0x3] %vm1165_vm2, %v3830_v1  ;;  %3433 = vmatprep.mubr.msk.bf16.mxu0 %vm174_vm0, %v132_v10 }
  0x64   :  { %1305 = vst.msk [vmem:[#allocation2 + $0x460] sm:$0xff] %vm562_vm1, %v3830_v1  ;;  %1307 = vst.msk [vmem:[#allocation2 + $0x470] sm:$0xff] %vm562_vm1, %v3830_v1 }
  0x65   :  { %1306 = vst.msk [vmem:[#allocation2 + $0x468] sm:$0x3] %vm1165_vm2, %v3830_v1  ;;  %1308 = vst.msk [vmem:[#allocation2 + $0x478] sm:$0x3] %vm1165_vm2, %v3830_v1 }
  0x66   :  { %1309 = vst.msk [vmem:[#allocation2 + $0x480] sm:$0xff] %vm562_vm1, %v3830_v1  ;;  %1311 = vst.msk [vmem:[#allocation2 + $0x490] sm:$0xff] %vm562_vm1, %v3830_v1 }
  0x67   :  { %1310 = vst.msk [vmem:[#allocation2 + $0x488] sm:$0x3] %vm1165_vm2, %v3830_v1  ;;  %1312 = vst.msk [vmem:[#allocation2 + $0x498] sm:$0x3] %vm1165_vm2, %v3830_v1 }
  0x68   :  { %1313 = vst.msk [vmem:[#allocation2 + $0x4a0] sm:$0xff] %vm562_vm1, %v3830_v1  ;;  %1315 = vst.msk [vmem:[#allocation2 + $0x4b0] sm:$0xff] %vm562_vm1, %v3830_v1 }
  0x69   :  { %1314 = vst.msk [vmem:[#allocation2 + $0x4a8] sm:$0x3] %vm1165_vm2, %v3830_v1  ;;  %1316 = vst.msk [vmem:[#allocation2 + $0x4b8] sm:$0x3] %vm1165_vm2, %v3830_v1 }
  0x6a   :  { %1317 = vst.msk [vmem:[#allocation2 + $0x4c0] sm:$0xff] %vm562_vm1, %v3830_v1  ;;  %1319 = vst.msk [vmem:[#allocation2 + $0x4d0] sm:$0xff] %vm562_vm1, %v3830_v1  ;;  %3434 = vmatmul.mubr.msk.bf16.gmra.mxu0 %vm174_vm0, %v133_v19 }
  0x6b   :  { %1318 = vst.msk [vmem:[#allocation2 + $0x4c8] sm:$0x3] %vm1165_vm2, %v3830_v1  ;;  %1320 = vst.msk [vmem:[#allocation2 + $0x4d8] sm:$0x3] %vm1165_vm2, %v3830_v1  ;;  %3437 = vmatprep.mubr.msk.bf16.mxu0 %vm174_vm0, %v134_v20 }
  0x6c   :  { %1321 = vst.msk [vmem:[#allocation2 + $0x4e0] sm:$0xff] %vm562_vm1, %v3830_v1 }
  0x6d   :  { %1322 = vst.msk [vmem:[#allocation2 + $0x4e8] sm:$0x3] %vm1165_vm2, %v3830_v1 }
  0x72   :  { %3438 = vmatmul.mubr.msk.bf16.gmra.mxu0 %vm174_vm0, %v135_v27 }
  0x73   :  { %3441 = vmatprep.mubr.msk.bf16.mxu0 %vm174_vm0, %v136_v28 }
  0x7a   :  { %3442 = vmatmul.mubr.msk.bf16.gmra.mxu0 %vm174_vm0, %v137_v34 }
  0x7b   :  { %3445 = vmatprep.mubr.msk.bf16.mxu0 %vm174_vm0, %v138_v35 }
  0x82   :  { %3446 = vmatmul.mubr.msk.bf16.gmra.mxu0 %vm174_vm0, %v139_v40 }
  0x83   :  { %3449 = vmatprep.mubr.msk.bf16.mxu0 %vm174_vm0, %v140_v41 }
  0x8a   :  { %3450 = vmatmul.mubr.msk.bf16.gmra.mxu0 %vm174_vm0, %v141_v44 }
  0x8b   :  { %3501 = vmatprep.mubr.msk.bf16.mxu0 %vm174_vm0, %v3922_v5 }
  0xd2   :  { %v4453_v45 = vpop.f32.mrf.mxu0 }
  0xd3   :  { %v566_v5 = vsel %vm562_vm1, %v4453_v45, 0.0 }
  0xd4   :  { %v4455_v46 = vpop.f32.mrf.mxu0 }
  0xd5   :  { %v563_v49 = vsel %vm562_vm1, %v4455_v46, 0.0 }
  0xd6   :  { %v4457_v47 = vpop.f32.mrf.mxu0 }
  0xd7   :  { %v568_v55 = vsel %vm562_vm1, %v4457_v47, 0.0 }
  0xd8   :  { %v4459_v48 = vpop.f32.mrf.mxu0 }
  0xd9   :  { %v564_v50 = vsel %vm562_vm1, %v4459_v48, 0.0 }
  0xda   :  { %v565_v51 = vadd.f32 %v564_v50, %v563_v49  ;;  %v4465_v52 = vpop.f32.mrf.mxu0 }
  0xdb   :  { %v574_v0 = vsel %vm562_vm1, %v4465_v52, 0.0 }
  0xdc   :  { %v567_v53 = vadd.f32 %v566_v5, %v565_v51  ;;  %v4469_v54 = vpop.f32.mrf.mxu0 }
  0xdd   :  { %v570_v58 = vsel %vm562_vm1, %v4469_v54, 0.0 }
  0xde   :  { %v569_v56 = vadd.f32 %v568_v55, %v567_v53  ;;  %v4473_v57 = vpop.f32.mrf.mxu0 }
  0xdf   :  { %v576_v3 = vsel %vm562_vm1, %v4473_v57, 0.0 }
  0xe0   :  { %v571_v59 = vadd.f32 %v570_v58, %v569_v56  ;;  %v4477_v60 = vpop.f32.mrf.mxu0 }
  0xe1   :  { %v572_v61 = vsel %vm562_vm1, %v4477_v60, 0.0 }
  0xe2   :  { %v573_v62 = vadd.f32 %v572_v61, %v571_v59  ;;  %v4481_v63 = vpop.f32.mrf.mxu0 }
  0xe3   :  { %v582_v15 = vsel %vm562_vm1, %v4481_v63, 0.0 }
  0xe4   :  { %v575_v1 = vadd.f32 %v574_v0, %v573_v62  ;;  %v4485_v2 = vpop.f32.mrf.mxu0 }
  0xe5   :  { %v578_v7 = vsel %vm562_vm1, %v4485_v2, 0.0 }
  0xe6   :  { %v577_v4 = vadd.f32 %v576_v3, %v575_v1  ;;  %v4489_v6 = vpop.f32.mrf.mxu0 }
  0xe7   :  { %v584_v20 = vsel %vm562_vm1, %v4489_v6, 0.0 }
  0xe8   :  { %v579_v8 = vadd.f32 %v578_v7, %v577_v4  ;;  %v4493_v9 = vpop.f32.mrf.mxu0 }
  0xe9   :  { %v580_v10 = vsel %vm562_vm1, %v4493_v9, 0.0 }
  0xea   :  { %v581_v13 = vadd.f32 %v580_v10, %v579_v8  ;;  %v4497_v14 = vpop.f32.mrf.mxu0 }
  0xeb   :  { %v590_v32 = vsel %vm562_vm1, %v4497_v14, 0.0 }
  0xec   :  { %v583_v16 = vadd.f32 %v582_v15, %v581_v13  ;;  %v4501_v19 = vpop.f32.mrf.mxu0 }
  0xed   :  { %v586_v25 = vsel %vm562_vm1, %v4501_v19, 0.0 }
  0xee   :  { %v585_v21 = vadd.f32 %v584_v20, %v583_v16  ;;  %v4505_v22 = vpop.f32.mrf.mxu0 }
  0xef   :  { %v592_v35 = vsel %vm562_vm1, %v4505_v22, 0.0 }
  0xf0   :  { %v587_v26 = vadd.f32 %v586_v25, %v585_v21  ;;  %v4509_v27 = vpop.f32.mrf.mxu0 }
  0xf1   :  { %v588_v28 = vsel %vm562_vm1, %v4509_v27, 0.0 }
  0xf2   :  { %v589_v30 = vadd.f32 %v588_v28, %v587_v26  ;;  %v4513_v31 = vpop.f32.mrf.mxu0 }
  0xf3   :  { %v598_v44 = vsel %vm562_vm1, %v4513_v31, 0.0 }
  0xf4   :  { %v591_v33 = vadd.f32 %v590_v32, %v589_v30  ;;  %v4517_v34 = vpop.f32.mrf.mxu0 }
  0xf5   :  { %v594_v38 = vsel %vm562_vm1, %v4517_v34, 0.0 }
  0xf6   :  { %v593_v36 = vadd.f32 %v592_v35, %v591_v33  ;;  %v4521_v37 = vpop.f32.mrf.mxu0 }
  0xf7   :  { %v600_v51 = vsel %vm562_vm1, %v4521_v37, 0.0 }
  0xf8   :  { %v595_v39 = vadd.f32 %v594_v38, %v593_v36  ;;  %v4525_v40 = vpop.f32.mrf.mxu0 }
  0xf9   :  { %v596_v41 = vsel %vm562_vm1, %v4525_v40, 0.0 }
  0xfa   :  { %v597_v42 = vadd.f32 %v596_v41, %v595_v39  ;;  %v4529_v43 = vpop.f32.mrf.mxu0 }
  0xfb   :  { %v606_v0 = vsel %vm562_vm1, %v4529_v43, 0.0 }
  0xfc   :  { %v599_v49 = vadd.f32 %v598_v44, %v597_v42  ;;  %v4533_v50 = vpop.f32.mrf.mxu0 }
  0xfd   :  { %v602_v55 = vsel %vm562_vm1, %v4533_v50, 0.0 }
  0xfe   :  { %v601_v5 = vadd.f32 %v600_v51, %v599_v49  ;;  %v4537_v53 = vpop.f32.mrf.mxu0 }
  0xff   :  { %v608_v4 = vsel %vm562_vm1, %v4537_v53, 0.0 }
 0x100   :  { %v603_v56 = vadd.f32 %v602_v55, %v601_v5  ;;  %v4541_v58 = vpop.f32.mrf.mxu0 }
 0x101   :  { %v604_v59 = vsel %vm562_vm1, %v4541_v58, 0.0 }
 0x102   :  { %v605_v61 = vadd.f32 %v604_v59, %v603_v56  ;;  %v4545_v62 = vpop.f32.mrf.mxu0 }
 0x103   :  { %v614_v25 = vsel %vm562_vm1, %v4545_v62, 0.0 }
 0x104   :  { %v607_v1 = vadd.f32 %v606_v0, %v605_v61  ;;  %v4549_v3 = vpop.f32.mrf.mxu0 }
 0x105   :  { %v610_v10 = vsel %vm562_vm1, %v4549_v3, 0.0 }
 0x106   :  { %v609_v7 = vadd.f32 %v608_v4, %v607_v1  ;;  %v4553_v8 = vpop.f32.mrf.mxu0 }
 0x107   :  { %v616_v30 = vsel %vm562_vm1, %v4553_v8, 0.0 }
 0x108   :  { %v611_v13 = vadd.f32 %v610_v10, %v609_v7  ;;  %v4557_v15 = vpop.f32.mrf.mxu0 }
 0x109   :  { %v612_v16 = vsel %vm562_vm1, %v4557_v15, 0.0 }
 0x10a   :  { %v613_v20 = vadd.f32 %v612_v16, %v611_v13  ;;  %v4561_v21 = vpop.f32.mrf.mxu0 }
 0x10b   :  { %v622_v44 = vsel %vm562_vm1, %v4561_v21, 0.0 }
 0x10c   :  { %v615_v26 = vadd.f32 %v614_v25, %v613_v20  ;;  %v4565_v28 = vpop.f32.mrf.mxu0 }
 0x10d   :  { %v618_v35 = vsel %vm562_vm1, %v4565_v28, 0.0 }
 0x10e   :  { %v617_v32 = vadd.f32 %v616_v30, %v615_v26  ;;  %v4569_v33 = vpop.f32.mrf.mxu0 }
 0x10f   :  { %6693 = vst [vmem:[#allocation13_spill] sm:$0xff] %v4569_v33  ;;  %v624_v5 = vsel %vm562_vm1, %v4569_v33, 0.0 }
 0x110   :  { %v619_v36 = vadd.f32 %v618_v35, %v617_v32  ;;  %v4573_v38 = vpop.f32.mrf.mxu0 }
 0x111   :  { %v620_v39 = vsel %vm562_vm1, %v4573_v38, 0.0 }
 0x112   :  { %v621_v41 = vadd.f32 %v620_v39, %v619_v36  ;;  %v4577_v42 = vpop.f32.mrf.mxu0 }
 0x113   :  { %6694 = vst [vmem:[#allocation14_spill] sm:$0xff] %v4577_v42  ;;  %v630_v10 = vsel %vm562_vm1, %v4577_v42, 0.0 }
 0x114   :  { %v623_v49 = vadd.f32 %v622_v44, %v621_v41  ;;  %v4581_v51 = vpop.f32.mrf.mxu0 }
 0x115   :  { %6695 = vst [vmem:[#allocation15_spill] sm:$0xff] %v4581_v51  ;;  %v626_v59 = vsel %vm562_vm1, %v4581_v51, 0.0 }
 0x116   :  { %v625_v55 = vadd.f32 %v624_v5, %v623_v49  ;;  %v4585_v56 = vpop.f32.mrf.mxu0 }
 0x117   :  { %6696 = vst [vmem:[#allocation16_spill] sm:$0xff] %v4585_v56  ;;  %v632_v20 = vsel %vm562_vm1, %v4585_v56, 0.0 }
 0x118   :  { %v627_v61 = vadd.f32 %v626_v59, %v625_v55  ;;  %v4589_v0 = vpop.f32.mrf.mxu0 }
 0x119   :  { %6697 = vst [vmem:[#allocation17_spill] sm:$0xff] %v4589_v0  ;;  %v628_v1 = vsel %vm562_vm1, %v4589_v0, 0.0 }
 0x11a   :  { %v629_v4 = vadd.f32 %v628_v1, %v627_v61  ;;  %v4593_v7 = vpop.f32.mrf.mxu0 }
 0x11b   :  { %6698 = vst [vmem:[#allocation18_spill] sm:$0xff] %v4593_v7  ;;  %v638_v44 = vsel %vm562_vm1, %v4593_v7, 0.0 }
 0x11c   :  { %v631_v13 = vadd.f32 %v630_v10, %v629_v4  ;;  %v4597_v16 = vpop.f32.mrf.mxu0 }
 0x11d   :  { %6699 = vst [vmem:[#allocation19_spill] sm:$0xff] %v4597_v16  ;;  %v634_v30 = vsel %vm562_vm1, %v4597_v16, 0.0 }
 0x11e   :  { %v633_v25 = vadd.f32 %v632_v20, %v631_v13  ;;  %v4601_v26 = vpop.f32.mrf.mxu0 }
 0x11f   :  { %6700 = vst [vmem:[#allocation20_spill] sm:$0xff] %v4601_v26  ;;  %v640_v55 = vsel %vm562_vm1, %v4601_v26, 0.0 }
 0x120   :  { %v635_v32 = vadd.f32 %v634_v30, %v633_v25  ;;  %v4605_v35 = vpop.f32.mrf.mxu0 }
 0x121   :  { %6701 = vst [vmem:[#allocation21_spill] sm:$0xff] %v4605_v35  ;;  %v636_v36 = vsel %vm562_vm1, %v4605_v35, 0.0 }
 0x122   :  { %v637_v39 = vadd.f32 %v636_v36, %v635_v32  ;;  %v4609_v41 = vpop.f32.mrf.mxu0 }
 0x123   :  { %6702 = vst [vmem:[#allocation22_spill] sm:$0xff] %v4609_v41  ;;  %v646_v30 = vsel %vm562_vm1, %v4609_v41, 0.0 }
 0x124   :  { %v639_v49 = vadd.f32 %v638_v44, %v637_v39  ;;  %v4613_v5 = vpop.f32.mrf.mxu0 }
 0x125   :  { %6703 = vst [vmem:[#allocation23_spill] sm:$0xff] %v4613_v5  ;;  %v642_v1 = vsel %vm562_vm1, %v4613_v5, 0.0 }
 0x126   :  { %v641_v59 = vadd.f32 %v640_v55, %v639_v49  ;;  %v4617_v61 = vpop.f32.mrf.mxu0 }
 0x127   :  { %6704 = vst [vmem:[#allocation24_spill] sm:$0xff] %v4617_v61  ;;  %v648_v39 = vsel %vm562_vm1, %v4617_v61, 0.0 }
 0x128   :  { %v643_v4 = vadd.f32 %v642_v1, %v641_v59  ;;  %v4621_v10 = vpop.f32.mrf.mxu0 }
 0x129   :  { %6705 = vst [vmem:[#allocation25_spill] sm:$0xff] %v4621_v10  ;;  %v644_v13 = vsel %vm562_vm1, %v4621_v10, 0.0 }
 0x12a   :  { %v645_v20 = vadd.f32 %v644_v13, %v643_v4  ;;  %v4625_v25 = vpop.f32.mrf.mxu0 }
 0x12b   :  { %6706 = vst [vmem:[#allocation26_spill] sm:$0xff] %v4625_v25 }
 0x12c   :  { %v647_v32 = vadd.f32 %v646_v30, %v645_v20  ;;  %v4629_v36 = vpop.f32.mrf.mxu0  ;;  %v654_v20 = vsel %vm562_vm1, %v4625_v25, 0.0 }
 0x12d   :  { %6707 = vst [vmem:[#allocation27_spill] sm:$0xff] %v4629_v36  ;;  %v650_v55 = vsel %vm562_vm1, %v4629_v36, 0.0 }
 0x12e   :  { %v649_v44 = vadd.f32 %v648_v39, %v647_v32  ;;  %v4633_v49 = vpop.f32.mrf.mxu0 }
 0x12f   :  { %6708 = vst [vmem:[#allocation28_spill] sm:$0xff] %v4633_v49  ;;  %v656_v23 = vsel %vm562_vm1, %v4633_v49, 0.0 }
 0x130   :  { %v651_v59 = vadd.f32 %v650_v55, %v649_v44  ;;  %v484_v1 = vpop.f32.mrf.mxu0 }
 0x131   :  { %v652_v4 = vsel %vm562_vm1, %v484_v1, 0.0 }
 0x132   :  { %v653_v13 = vadd.f32 %v652_v4, %v651_v59  ;;  %v3439_v29 = vpop.f32.mrf.mxu0 }
 0x133   :  { %v662_v59 = vsel %vm562_vm1, %v3439_v29, 0.0 }
 0x134   :  { %v655_v30 = vadd.f32 %v654_v20, %v653_v13  ;;  %v497_v24 = vpop.f32.mrf.mxu0 }
 0x135   :  { %v658_v18 = vsel %vm562_vm1, %v497_v24, 0.0 }
 0x136   :  { %v657_v32 = vadd.f32 %v656_v23, %v655_v30  ;;  %v3440_v39 = vpop.f32.mrf.mxu0 }
 0x137   :  { %v664_v13 = vsel %vm562_vm1, %v3440_v39, 0.0 }
 0x138   :  { %v659_v17 = vadd.f32 %v658_v18, %v657_v32  ;;  %v500_v12 = vpop.f32.mrf.mxu0 }
 0x139   :  { %v660_v44 = vsel %vm562_vm1, %v500_v12, 0.0 }
 0x13a   :  { %v661_v55 = vadd.f32 %v660_v44, %v659_v17  ;;  %v3443_v11 = vpop.f32.mrf.mxu0 }
 0x13b   :  { %v670_v41 = vsel %vm562_vm1, %v3443_v11, 0.0 }
 0x13c   :  { %v663_v4 = vadd.f32 %v662_v59, %v661_v55  ;;  %v513_v36 = vpop.f32.mrf.mxu0 }
 0x13d   :  { %v666_v49 = vsel %vm562_vm1, %v513_v36, 0.0 }
 0x13e   :  { %v665_v20 = vadd.f32 %v664_v13, %v663_v4  ;;  %v3444_v25 = vpop.f32.mrf.mxu0 }
 0x13f   :  { %v672_v10 = vsel %vm562_vm1, %v3444_v25, 0.0 }
 0x140   :  { %v667_v23 = vadd.f32 %v666_v49, %v665_v20  ;;  %v516_v30 = vpop.f32.mrf.mxu0 }
 0x141   :  { %v668_v61 = vsel %vm562_vm1, %v516_v30, 0.0 }
 0x142   :  { %v669_v18 = vadd.f32 %v668_v61, %v667_v23  ;;  %v3447_v32 = vpop.f32.mrf.mxu0 }
 0x143   :  { %v678_v7 = vsel %vm562_vm1, %v3447_v32, 0.0 }
 0x144   :  { %v671_v17 = vadd.f32 %v670_v41, %v669_v18  ;;  %v529_v44 = vpop.f32.mrf.mxu0 }
 0x145   :  { %v674_v5 = vsel %vm562_vm1, %v529_v44, 0.0 }
 0x146   :  { %v673_v55 = vadd.f32 %v672_v10, %v671_v17  ;;  %v3448_v59 = vpop.f32.mrf.mxu0 }
 0x147   :  { %v680_v35 = vsel %vm562_vm1, %v3448_v59, 0.0 }
 0x148   :  { %v675_v4 = vadd.f32 %v674_v5, %v673_v55  ;;  %v532_v13 = vpop.f32.mrf.mxu0 }
 0x149   :  { %v676_v26 = vsel %vm562_vm1, %v532_v13, 0.0 }
 0x14a   :  { %v677_v49 = vadd.f32 %v676_v26, %v675_v4  ;;  %v3451_v20 = vpop.f32.mrf.mxu0 }
 0x14b   :  { %v686_v26 = vsel %vm562_vm1, %v3451_v20, 0.0 }
 0x14c   :  { %v679_v61 = vadd.f32 %v678_v7, %v677_v49  ;;  %v545_v23 = vpop.f32.mrf.mxu0 }
 0x14d   :  { %v682_v16 = vsel %vm562_vm1, %v545_v23, 0.0 }
 0x14e   :  { %v681_v41 = vadd.f32 %v680_v35, %v679_v61  ;;  %v3452_v18 = vpop.f32.mrf.mxu0 }
 0x14f   :  { %v688_v56 = vsel %vm562_vm1, %v3452_v18, 0.0 }
 0x150   :  { %v683_v10 = vadd.f32 %v682_v16, %v681_v41  ;;  %v4655_v17 = vpop.f32.mrf.mxu0 }
 0x151   :  { %v684_v5 = vsel %vm562_vm1, %v4655_v17, 0.0 }
 0x152   :  { %v685_v55 = vadd.f32 %v684_v5, %v683_v10 }
 0x154   :  { %v687_v4 = vadd.f32 %v686_v26, %v685_v55 }
 0x156   :  { %v689_v7 = vadd.f32 %v688_v56, %v687_v4 }
 0x158   :  { %v690_v49 = vrot.slane %v689_v7, 4 }
 0x15a   :  { %v691_v42 = vadd.f32 %v690_v49, %v689_v7 }
 0x15c   :  { %v692_v0 = vrot.slane %v691_v42, 2 }
 0x15e   :  { %v693_v35 = vadd.f32 %v692_v0, %v691_v42 }
 0x160   :  { %v694_v61 = vrot.slane %v693_v35, 1 }
 0x162   :  { %v695_v51 = vadd.f32 %v694_v61, %v693_v35 }
 0x164   :  { %v4661_v33 = vmul.f32 0.001953125, %v695_v51 }
 0x166   :  { %v4664_v16 = vsub.f32 %v484_v1, %v4661_v33  ;;  %v4667_v41 = vsub.f32 %v497_v24, %v4661_v33  ;;  %v4670_v10 = vsub.f32 %v500_v12, %v4661_v33  ;;  %v4673_v5 = vsub.f32 %v3439_v29, %v4661_v33 }
 0x167   :  { %v4676_v56 = vsub.f32 %v3440_v39, %v4661_v33  ;;  %v4679_v42 = vsub.f32 %v513_v36, %v4661_v33  ;;  %v4682_v51 = vsub.f32 %v516_v30, %v4661_v33  ;;  %v4685_v0 = vsub.f32 %v3443_v11, %v4661_v33 }
 0x168   :  { %6709 = vst [vmem:[#allocation29_spill] sm:$0xff] %v4664_v16  ;;  %v4688_v24 = vsub.f32 %v3444_v25, %v4661_v33  ;;  %v4691_v12 = vsub.f32 %v529_v44, %v4661_v33  ;;  %v4694_v29 = vsub.f32 %v532_v13, %v4661_v33  ;;  %v4697_v1 = vsub.f32 %v3447_v32, %v4661_v33 }
 0x169   :  { %v4700_v36 = vsub.f32 %v3448_v59, %v4661_v33  ;;  %v4703_v39 = vsub.f32 %v545_v23, %v4661_v33  ;;  %v4706_v11 = vsub.f32 %v3451_v20, %v4661_v33  ;;  %v4709_v25 = vsub.f32 %v3452_v18, %v4661_v33 }
 0x16a   :  { %v4713_v30 = vsub.f32 %v4455_v46, %v4661_v33  ;;  %v4717_v32 = vsub.f32 %v4459_v48, %v4661_v33  ;;  %v4721_v44 = vsub.f32 %v4453_v45, %v4661_v33  ;;  %v4725_v59 = vsub.f32 %v4457_v47, %v4661_v33 }
 0x16b   :  { %6710 = vst [vmem:[#allocation30_spill] sm:$0xff] %v4700_v36  ;;  %6711 = vst [vmem:[#allocation31_spill] sm:$0xff] %v4703_v39  ;;  %v4733_v46 = vsub.f32 %v4469_v54, %v4661_v33  ;;  %v4739_v45 = vsub.f32 %v4477_v60, %v4661_v33  ;;  %v4747_v26 = vsub.f32 %v4465_v52, %v4661_v33 }
 0x16c   :  { %6712 = vst [vmem:[#allocation32_spill] sm:$0xff] %v4706_v11  ;;  %6713 = vst [vmem:[#allocation33_spill] sm:$0xff] %v4709_v25  ;;  %v761_v13 = vmul.f32 %v4713_v30, %v4713_v30  ;;  %v762_v20 = vmul.f32 %v4717_v32, %v4717_v32  ;;  %v763_v48 = vmul.f32 %v4721_v44, %v4721_v44 }
 0x16d   :  { %v764_v47 = vmul.f32 %v4725_v59, %v4725_v59  ;;  %v765_v54 = vmul.f32 %v4733_v46, %v4733_v46  ;;  %v4754_v60 = vsub.f32 %v4473_v57, %v4661_v33  ;;  %v766_v49 = vmul.f32 %v4739_v45, %v4739_v45 }
 0x16e   :  { %v825_v23 = vsel %vm562_vm1, %v761_v13, 0.0  ;;  %v826_v18 = vsel %vm562_vm1, %v762_v20, 0.0  ;;  %v828_v4 = vsel %vm562_vm1, %v763_v48, 0.0  ;;  %v4761_v52 = vsub.f32 %v4485_v2, %v4661_v33 }
 0x16f   :  { %v827_v55 = vadd.f32 %v826_v18, %v825_v23  ;;  %v830_v35 = vsel %vm562_vm1, %v764_v47, 0.0  ;;  %v767_v13 = vmul.f32 %v4747_v26, %v4747_v26  ;;  %v832_v20 = vsel %vm562_vm1, %v765_v54, 0.0 }
 0x170   :  { %v4768_v57 = vsub.f32 %v4493_v9, %v4661_v33  ;;  %v768_v23 = vmul.f32 %v4754_v60, %v4754_v60  ;;  %v834_v47 = vsel %vm562_vm1, %v766_v49, 0.0  ;;  %v4775_v2 = vsub.f32 %v4481_v63, %v4661_v33 }
 0x171   :  { %v829_v7 = vadd.f32 %v828_v4, %v827_v55  ;;  %v769_v55 = vmul.f32 %v4761_v52, %v4761_v52  ;;  %v836_v54 = vsel %vm562_vm1, %v767_v13, 0.0  ;;  %v4782_v9 = vsub.f32 %v4489_v6, %v4661_v33 }
 0x172   :  { %v838_v49 = vsel %vm562_vm1, %v768_v23, 0.0  ;;  %v4789_v63 = vsub.f32 %v4501_v19, %v4661_v33  ;;  %v4796_v6 = vsub.f32 %v4509_v27, %v4661_v33  ;;  %v4803_v19 = vsub.f32 %v4497_v14, %v4661_v33 }
 0x173   :  { %v831_v61 = vadd.f32 %v830_v35, %v829_v7  ;;  %v770_v7 = vmul.f32 %v4768_v57, %v4768_v57  ;;  %v840_v13 = vsel %vm562_vm1, %v769_v55, 0.0  ;;  %v4810_v27 = vsub.f32 %v4505_v22, %v4661_v33 }
 0x174   :  { %v4817_v14 = vsub.f32 %v4517_v34, %v4661_v33  ;;  %v4824_v22 = vsub.f32 %v4525_v40, %v4661_v33  ;;  %v4831_v34 = vsub.f32 %v4513_v31, %v4661_v33  ;;  %v4838_v40 = vsub.f32 %v4521_v37, %v4661_v33 }
 0x175   :  { %v833_v48 = vadd.f32 %v832_v20, %v831_v61  ;;  %v771_v61 = vmul.f32 %v4775_v2, %v4775_v2  ;;  %v842_v23 = vsel %vm562_vm1, %v770_v7, 0.0  ;;  %v4845_v31 = vsub.f32 %v4533_v50, %v4661_v33 }
 0x176   :  { %v4852_v37 = vsub.f32 %v4541_v58, %v4661_v33  ;;  %v4859_v50 = vsub.f32 %v4529_v43, %v4661_v33  ;;  %v4866_v58 = vsub.f32 %v4537_v53, %v4661_v33  ;;  %v4873_v43 = vsub.f32 %v4549_v3, %v4661_v33 }
 0x177   :  { %v835_v18 = vadd.f32 %v834_v47, %v833_v48  ;;  %v772_v48 = vmul.f32 %v4782_v9, %v4782_v9  ;;  %v844_v55 = vsel %vm562_vm1, %v771_v61, 0.0  ;;  %v4880_v53 = vsub.f32 %v4557_v15, %v4661_v33 }
 0x178   :  { %v4887_v3 = vsub.f32 %v4545_v62, %v4661_v33  ;;  %v4894_v15 = vsub.f32 %v4553_v8, %v4661_v33  ;;  %v4901_v62 = vsub.f32 %v4565_v28, %v4661_v33  ;;  %v4908_v8 = vsub.f32 %v4573_v38, %v4661_v33 }
 0x179   :  { %v837_v4 = vadd.f32 %v836_v54, %v835_v18  ;;  %v773_v18 = vmul.f32 %v4789_v63, %v4789_v63  ;;  %v846_v7 = vsel %vm562_vm1, %v772_v48, 0.0  ;;  %v4915_v28 = vsub.f32 %v4561_v21, %v4661_v33 }
 0x17a   :  { %6714 = vst [vmem:[#allocation34_spill] sm:$0xff] %v4908_v8 }
 0x17b   :  { %v839_v35 = vadd.f32 %v838_v49, %v837_v4  ;;  %v774_v4 = vmul.f32 %v4796_v6, %v4796_v6  ;;  %v848_v61 = vsel %vm562_vm1, %v773_v18, 0.0  ;;  %6715 = vst [vmem:[#allocation35_spill] sm:$0xff] %v4915_v28 }
 0x17d   :  { %v841_v20 = vadd.f32 %v840_v13, %v839_v35  ;;  %v775_v35 = vmul.f32 %v4803_v19, %v4803_v19  ;;  %v850_v48 = vsel %vm562_vm1, %v774_v4, 0.0 }
 0x17f   :  { %v843_v47 = vadd.f32 %v842_v23, %v841_v20  ;;  %v776_v20 = vmul.f32 %v4810_v27, %v4810_v27  ;;  %v852_v18 = vsel %vm562_vm1, %v775_v35, 0.0 }
 0x181   :  { %v845_v54 = vadd.f32 %v844_v55, %v843_v47  ;;  %v777_v47 = vmul.f32 %v4817_v14, %v4817_v14  ;;  %v854_v4 = vsel %vm562_vm1, %v776_v20, 0.0 }
 0x183   :  { %v847_v49 = vadd.f32 %v846_v7, %v845_v54  ;;  %v778_v54 = vmul.f32 %v4824_v22, %v4824_v22  ;;  %v856_v35 = vsel %vm562_vm1, %v777_v47, 0.0 }
 0x185   :  { %v849_v13 = vadd.f32 %v848_v61, %v847_v49  ;;  %v779_v49 = vmul.f32 %v4831_v34, %v4831_v34  ;;  %v858_v20 = vsel %vm562_vm1, %v778_v54, 0.0 }
 0x187   :  { %v851_v23 = vadd.f32 %v850_v48, %v849_v13  ;;  %v780_v13 = vmul.f32 %v4838_v40, %v4838_v40  ;;  %v860_v47 = vsel %vm562_vm1, %v779_v49, 0.0 }
 0x189   :  { %v853_v55 = vadd.f32 %v852_v18, %v851_v23  ;;  %v781_v23 = vmul.f32 %v4845_v31, %v4845_v31  ;;  %v862_v54 = vsel %vm562_vm1, %v780_v13, 0.0 }
 0x18b   :  { %v855_v7 = vadd.f32 %v854_v4, %v853_v55  ;;  %v782_v55 = vmul.f32 %v4852_v37, %v4852_v37  ;;  %v864_v49 = vsel %vm562_vm1, %v781_v23, 0.0 }
 0x18d   :  { %v857_v61 = vadd.f32 %v856_v35, %v855_v7  ;;  %v783_v7 = vmul.f32 %v4859_v50, %v4859_v50  ;;  %v866_v13 = vsel %vm562_vm1, %v782_v55, 0.0 }
 0x18f   :  { %v859_v48 = vadd.f32 %v858_v20, %v857_v61  ;;  %v784_v61 = vmul.f32 %v4866_v58, %v4866_v58  ;;  %v868_v23 = vsel %vm562_vm1, %v783_v7, 0.0 }
 0x191   :  { %v861_v18 = vadd.f32 %v860_v47, %v859_v48  ;;  %v785_v48 = vmul.f32 %v4873_v43, %v4873_v43  ;;  %v870_v55 = vsel %vm562_vm1, %v784_v61, 0.0 }
 0x193   :  { %v863_v4 = vadd.f32 %v862_v54, %v861_v18  ;;  %v786_v18 = vmul.f32 %v4880_v53, %v4880_v53  ;;  %v872_v7 = vsel %vm562_vm1, %v785_v48, 0.0 }
 0x195   :  { %v865_v35 = vadd.f32 %v864_v49, %v863_v4  ;;  %v787_v4 = vmul.f32 %v4887_v3, %v4887_v3  ;;  %v874_v61 = vsel %vm562_vm1, %v786_v18, 0.0 }
 0x197   :  { %v867_v20 = vadd.f32 %v866_v13, %v865_v35  ;;  %v788_v35 = vmul.f32 %v4894_v15, %v4894_v15  ;;  %v876_v48 = vsel %vm562_vm1, %v787_v4, 0.0 }
 0x199   :  { %v869_v47 = vadd.f32 %v868_v23, %v867_v20  ;;  %v789_v20 = vmul.f32 %v4901_v62, %v4901_v62  ;;  %v878_v18 = vsel %vm562_vm1, %v788_v35, 0.0 }
 0x19b   :  { %v871_v54 = vadd.f32 %v870_v55, %v869_v47  ;;  %v6716_v47 = vld [vmem:[#allocation13_spill] sm:$0xff]  ;;  %v790_v55 = vmul.f32 %v4908_v8, %v4908_v8  ;;  %v880_v4 = vsel %vm562_vm1, %v789_v20, 0.0 }
 0x19c   :  { %v4922_v38 = vsub.f32 %v6716_v47, %v4661_v33 }
 0x19d   :  { %v873_v49 = vadd.f32 %v872_v7, %v871_v54  ;;  %v6718_v7 = vld [vmem:[#allocation15_spill] sm:$0xff]  ;;  %v882_v35 = vsel %vm562_vm1, %v790_v55, 0.0 }
 0x19e   :  { %6717 = vst [vmem:[#allocation13_spill] sm:$0xff] %v4922_v38  ;;  %v4929_v21 = vsub.f32 %v6718_v7, %v4661_v33  ;;  %v792_v47 = vmul.f32 %v4922_v38, %v4922_v38 }
 0x19f   :  { %v875_v13 = vadd.f32 %v874_v61, %v873_v49  ;;  %v791_v49 = vmul.f32 %v4915_v28, %v4915_v28 }
 0x1a0   :  { %6719 = vst [vmem:[#allocation15_spill] sm:$0xff] %v4929_v21  ;;  %v793_v28 = vmul.f32 %v4929_v21, %v4929_v21  ;;  %v886_v55 = vsel %vm562_vm1, %v792_v47, 0.0 }
 0x1a1   :  { %v877_v23 = vadd.f32 %v876_v48, %v875_v13  ;;  %v6720_v13 = vld [vmem:[#allocation17_spill] sm:$0xff]  ;;  %v884_v20 = vsel %vm562_vm1, %v791_v49, 0.0 }
 0x1a2   :  { %v4936_v48 = vsub.f32 %v6720_v13, %v4661_v33  ;;  %v888_v49 = vsel %vm562_vm1, %v793_v28, 0.0 }
 0x1a3   :  { %v879_v54 = vadd.f32 %v878_v18, %v877_v23  ;;  %v6722_v18 = vld [vmem:[#allocation14_spill] sm:$0xff] }
 0x1a4   :  { %6721 = vst [vmem:[#allocation17_spill] sm:$0xff] %v4936_v48  ;;  %v4943_v7 = vsub.f32 %v6722_v18, %v4661_v33  ;;  %v794_v38 = vmul.f32 %v4936_v48, %v4936_v48 }
 0x1a5   :  { %v881_v61 = vadd.f32 %v880_v4, %v879_v54  ;;  %v6724_v4 = vld [vmem:[#allocation16_spill] sm:$0xff] }
 0x1a6   :  { %6723 = vst [vmem:[#allocation14_spill] sm:$0xff] %v4943_v7  ;;  %v4950_v13 = vsub.f32 %v6724_v4, %v4661_v33  ;;  %v795_v21 = vmul.f32 %v4943_v7, %v4943_v7  ;;  %v890_v47 = vsel %vm562_vm1, %v794_v38, 0.0 }
 0x1a7   :  { %v883_v23 = vadd.f32 %v882_v35, %v881_v61  ;;  %v6726_v35 = vld [vmem:[#allocation19_spill] sm:$0xff] }
 0x1a8   :  { %6725 = vst [vmem:[#allocation16_spill] sm:$0xff] %v4950_v13  ;;  %v4957_v18 = vsub.f32 %v6726_v35, %v4661_v33  ;;  %v796_v48 = vmul.f32 %v4950_v13, %v4950_v13  ;;  %v892_v28 = vsel %vm562_vm1, %v795_v21, 0.0 }
 0x1a9   :  { %v885_v54 = vadd.f32 %v884_v20, %v883_v23  ;;  %v6728_v20 = vld [vmem:[#allocation21_spill] sm:$0xff] }
 0x1aa   :  { %6727 = vst [vmem:[#allocation19_spill] sm:$0xff] %v4957_v18  ;;  %v4964_v4 = vsub.f32 %v6728_v20, %v4661_v33  ;;  %v797_v7 = vmul.f32 %v4957_v18, %v4957_v18  ;;  %v894_v38 = vsel %vm562_vm1, %v796_v48, 0.0 }
 0x1ab   :  { %v887_v61 = vadd.f32 %v886_v55, %v885_v54  ;;  %v6730_v55 = vld [vmem:[#allocation18_spill] sm:$0xff] }
 0x1ac   :  { %6729 = vst [vmem:[#allocation21_spill] sm:$0xff] %v4964_v4  ;;  %v4971_v35 = vsub.f32 %v6730_v55, %v4661_v33  ;;  %v798_v13 = vmul.f32 %v4964_v4, %v4964_v4  ;;  %v896_v21 = vsel %vm562_vm1, %v797_v7, 0.0 }
 0x1ad   :  { %v889_v23 = vadd.f32 %v888_v49, %v887_v61  ;;  %v6732_v49 = vld [vmem:[#allocation20_spill] sm:$0xff] }
 0x1ae   :  { %6731 = vst [vmem:[#allocation18_spill] sm:$0xff] %v4971_v35  ;;  %v4978_v20 = vsub.f32 %v6732_v49, %v4661_v33  ;;  %v799_v18 = vmul.f32 %v4971_v35, %v4971_v35  ;;  %v898_v48 = vsel %vm562_vm1, %v798_v13, 0.0 }
 0x1af   :  { %v891_v54 = vadd.f32 %v890_v47, %v889_v23  ;;  %v6734_v47 = vld [vmem:[#allocation23_spill] sm:$0xff] }
 0x1b0   :  { %6733 = vst [vmem:[#allocation20_spill] sm:$0xff] %v4978_v20  ;;  %v4985_v55 = vsub.f32 %v6734_v47, %v4661_v33  ;;  %v800_v4 = vmul.f32 %v4978_v20, %v4978_v20  ;;  %v900_v7 = vsel %vm562_vm1, %v799_v18, 0.0 }
 0x1b1   :  { %v893_v61 = vadd.f32 %v892_v28, %v891_v54  ;;  %v6736_v28 = vld [vmem:[#allocation25_spill] sm:$0xff] }
 0x1b2   :  { %6735 = vst [vmem:[#allocation23_spill] sm:$0xff] %v4985_v55  ;;  %v4992_v49 = vsub.f32 %v6736_v28, %v4661_v33  ;;  %v801_v35 = vmul.f32 %v4985_v55, %v4985_v55  ;;  %v902_v13 = vsel %vm562_vm1, %v800_v4, 0.0 }
 0x1b3   :  { %v895_v23 = vadd.f32 %v894_v38, %v893_v61  ;;  %v6738_v38 = vld [vmem:[#allocation22_spill] sm:$0xff] }
 0x1b4   :  { %6737 = vst [vmem:[#allocation25_spill] sm:$0xff] %v4992_v49  ;;  %v4999_v47 = vsub.f32 %v6738_v38, %v4661_v33  ;;  %v802_v20 = vmul.f32 %v4992_v49, %v4992_v49  ;;  %v904_v18 = vsel %vm562_vm1, %v801_v35, 0.0  ;;  %v6743_v49 = vld [vmem:[#allocation26_spill] sm:$0xff] }
 0x1b5   :  { %v897_v54 = vadd.f32 %v896_v21, %v895_v23  ;;  %v6740_v21 = vld [vmem:[#allocation24_spill] sm:$0xff]  ;;  %v5023_v4 = vsub.f32 %v6743_v49, %v4661_v33 }
 0x1b6   :  { %6739 = vst [vmem:[#allocation22_spill] sm:$0xff] %v4999_v47  ;;  %v5006_v28 = vsub.f32 %v6740_v21, %v4661_v33  ;;  %v803_v55 = vmul.f32 %v4999_v47, %v4999_v47  ;;  %v906_v21 = vsel %vm562_vm1, %v802_v20, 0.0  ;;  %v6744_v47 = vld [vmem:[#allocation28_spill] sm:$0xff] }
 0x1b7   :  { %v899_v61 = vadd.f32 %v898_v48, %v897_v54  ;;  %v6741_v48 = vld [vmem:[#allocation27_spill] sm:$0xff]  ;;  %v5030_v35 = vsub.f32 %v6744_v47, %v4661_v33  ;;  %v807_v49 = vmul.f32 %v5023_v4, %v5023_v4  ;;  %v809_v47 = vmul.f32 %v4667_v41, %v4667_v41 }
 0x1b8   :  { %v5013_v38 = vsub.f32 %v6741_v48, %v4661_v33 }
 0x1b9   :  { %v901_v23 = vadd.f32 %v900_v7, %v899_v61  ;;  %v804_v7 = vmul.f32 %v5006_v28, %v5006_v28 }
 0x1ba   :  { %6742 = vst [vmem:[#allocation24_spill] sm:$0xff] %v5013_v38 }
 0x1bb   :  { %v903_v54 = vadd.f32 %v902_v13, %v901_v23  ;;  %v805_v23 = vmul.f32 %v5013_v38, %v5013_v38  ;;  %v908_v13 = vsel %vm562_vm1, %v803_v55, 0.0  ;;  %v910_v20 = vsel %vm562_vm1, %v804_v7, 0.0 }
 0x1bc   :  { %v808_v55 = vmul.f32 %v5030_v35, %v5030_v35  ;;  %v810_v7 = vmul.f32 %v4670_v10, %v4670_v10 }
 0x1bd   :  { %v905_v61 = vadd.f32 %v904_v18, %v903_v54  ;;  %v806_v54 = vmul.f32 %v4664_v16, %v4664_v16  ;;  %v916_v16 = vsel %vm562_vm1, %v807_v49, 0.0 }
 0x1bf   :  { %v907_v8 = vadd.f32 %v906_v21, %v905_v61  ;;  %v912_v61 = vsel %vm562_vm1, %v805_v23, 0.0  ;;  %v811_v23 = vmul.f32 %v4673_v5, %v4673_v5 }
 0x1c1   :  { %v909_v48 = vadd.f32 %v908_v13, %v907_v8  ;;  %v914_v8 = vsel %vm562_vm1, %v806_v54, 0.0  ;;  %v812_v54 = vmul.f32 %v4676_v56, %v4676_v56  ;;  %v924_v49 = vsel %vm562_vm1, %v811_v23, 0.0 }
 0x1c2   :  { %v817_v23 = vmul.f32 %v4691_v12, %v4691_v12 }
 0x1c3   :  { %v911_v18 = vadd.f32 %v910_v20, %v909_v48  ;;  %v918_v48 = vsel %vm562_vm1, %v808_v55, 0.0  ;;  %v926_v55 = vsel %vm562_vm1, %v812_v54, 0.0  ;;  %v818_v54 = vmul.f32 %v4694_v29, %v4694_v29 }
 0x1c5   :  { %v913_v21 = vadd.f32 %v912_v61, %v911_v18  ;;  %v920_v18 = vsel %vm562_vm1, %v809_v47, 0.0  ;;  %v815_v47 = vmul.f32 %v4685_v0, %v4685_v0 }
 0x1c7   :  { %v915_v13 = vadd.f32 %v914_v8, %v913_v21  ;;  %v922_v21 = vsel %vm562_vm1, %v810_v7, 0.0  ;;  %v816_v7 = vmul.f32 %v4688_v24, %v4688_v24 }
 0x1c9   :  { %v917_v38 = vadd.f32 %v916_v16, %v915_v13  ;;  %v813_v16 = vmul.f32 %v4679_v42, %v4679_v42 }
 0x1cb   :  { %v919_v20 = vadd.f32 %v918_v48, %v917_v38  ;;  %v814_v38 = vmul.f32 %v4682_v51, %v4682_v51 }
 0x1cd   :  { %v921_v61 = vadd.f32 %v920_v18, %v919_v20  ;;  %v928_v20 = vsel %vm562_vm1, %v813_v16, 0.0  ;;  %v819_v16 = vmul.f32 %v4697_v1, %v4697_v1 }
 0x1cf   :  { %v923_v8 = vadd.f32 %v922_v21, %v921_v61  ;;  %v930_v61 = vsel %vm562_vm1, %v814_v38, 0.0  ;;  %v758_v38 = vsub.f32 %v4655_v17, %v4661_v33 }
 0x1d1   :  { %v925_v13 = vadd.f32 %v924_v49, %v923_v8  ;;  %v932_v8 = vsel %vm562_vm1, %v815_v47, 0.0  ;;  %v938_v47 = vsel %vm562_vm1, %v818_v54, 0.0  ;;  %v824_v54 = vmul.f32 %v4709_v25, %v4709_v25 }
 0x1d3   :  { %v927_v48 = vadd.f32 %v926_v55, %v925_v13  ;;  %v934_v13 = vsel %vm562_vm1, %v816_v7, 0.0  ;;  %v940_v7 = vsel %vm562_vm1, %v819_v16, 0.0 }
 0x1d5   :  { %v929_v18 = vadd.f32 %v928_v20, %v927_v48  ;;  %v936_v48 = vsel %vm562_vm1, %v817_v23, 0.0 }
 0x1d7   :  { %v931_v21 = vadd.f32 %v930_v61, %v929_v18  ;;  %v820_v18 = vmul.f32 %v4700_v36, %v4700_v36 }
 0x1d9   :  { %v933_v49 = vadd.f32 %v932_v8, %v931_v21  ;;  %v821_v21 = vmul.f32 %v4703_v39, %v4703_v39 }
 0x1db   :  { %v935_v55 = vadd.f32 %v934_v13, %v933_v49  ;;  %v822_v49 = vmul.f32 %v758_v38, %v758_v38  ;;  %v942_v13 = vsel %vm562_vm1, %v820_v18, 0.0  ;;  %v944_v33 = vsel %vm562_vm1, %v821_v21, 0.0 }
 0x1dd   :  { %v937_v20 = vadd.f32 %v936_v48, %v935_v55  ;;  %v823_v55 = vmul.f32 %v4706_v11, %v4706_v11  ;;  %v946_v48 = vsel %vm562_vm1, %v822_v49, 0.0  ;;  %v560_v49 = vld [vmem:[%s6627_s2] sm:$0x1] }
 0x1df   :  { %v939_v61 = vadd.f32 %v938_v47, %v937_v20  ;;  %v948_v47 = vsel %vm562_vm1, %v823_v55, 0.0 }
 0x1e1   :  { %v941_v8 = vadd.f32 %v940_v7, %v939_v61  ;;  %v950_v61 = vsel %vm562_vm1, %v824_v54, 0.0 }
 0x1e3   :  { %v943_v23 = vadd.f32 %v942_v13, %v941_v8 }
 0x1e5   :  { %v945_v17 = vadd.f32 %v944_v33, %v943_v23  ;;  %v962_v33 = vlaneseq }
 0x1e7   :  { %v947_v20 = vadd.f32 %v946_v48, %v945_v17  ;;  %v963_v25 = vshrl.u32 %v962_v33, 7 }
 0x1e9   :  { %v949_v16 = vadd.f32 %v948_v47, %v947_v20  ;;  %v5094_v55 = vsub.s32 0, %v963_v25 }
 0x1eb   :  { %v951_v7 = vadd.f32 %v950_v61, %v949_v16  ;;  %6745 = vst [vmem:[#allocation27_spill] sm:$0xff] %v5094_v55 }
 0x1ed   :  { %v952_v18 = vrot.slane %v951_v7, 4 }
 0x1ef   :  { %v953_v8 = vadd.f32 %v952_v18, %v951_v7  ;;  %v6746_v7 = vld [vmem:[#allocation34_spill] sm:$0xff]  ;;  %v6747_v18 = vld [vmem:[#allocation35_spill] sm:$0xff] }
 0x1f1   :  { %v954_v13 = vrot.slane %v953_v8, 2 }
 0x1f3   :  { %v955_v39 = vadd.f32 %v954_v13, %v953_v8  ;;  %v6748_v8 = vld [vmem:[#allocation13_spill] sm:$0xff]  ;;  %v6749_v13 = vld [vmem:[#allocation15_spill] sm:$0xff] }
 0x1f5   :  { %v956_v11 = vrot.slane %v955_v39, 1 }
 0x1f7   :  { %v957_v36 = vadd.f32 %v956_v11, %v955_v39  ;;  %v5102_v39 = vld [vmem:[%s6628_s3] ss:$0 sm:$0xff] }
 0x1f9   :  { %v958_v21 = vmul.f32 0.001953125, %v957_v36 }
 0x1fb   :  { %v959_v23 = vadd.f32 1e-05, %v958_v21  ;;  %v6750_v21 = vld [vmem:[#allocation17_spill] sm:$0xff] }
 0x1fd   :  { %3800 = vrsqrt.f32 %v959_v23  ;;  %v6751_v23 = vld [vmem:[#allocation14_spill] sm:$0xff] }
 0x20a   :  { %v3801_v17 = vpop.eup %3800 }
 0x20b   :  { %v961_v54 = vmul.f32 %v3801_v17, %v560_v49  ;;  %v6752_v49 = vld [vmem:[#allocation16_spill] sm:$0xff] }
 0x20d   :  { %v5097_v48 = vrot.slane %v961_v54, %v5094_v55  ;;  %v6753_v54 = vld [vmem:[#allocation19_spill] sm:$0xff]  ;;  %v6761_v55 = vld [vmem:[#allocation22_spill] sm:$0xff] }
 0x20f   :  { %v1027_v36 = vmul.f32 %v5097_v48, %v758_v38  ;;  %v5107_v11 = vmul.f32 %v5097_v48, %v4713_v30  ;;  %v5111_v25 = vmul.f32 %v5097_v48, %v4717_v32  ;;  %v5115_v20 = vmul.f32 %v5097_v48, %v4721_v44 }
 0x210   :  { %v5119_v47 = vmul.f32 %v5097_v48, %v4725_v59  ;;  %v5123_v16 = vmul.f32 %v5097_v48, %v4733_v46  ;;  %v5127_v30 = vmul.f32 %v5097_v48, %v4739_v45  ;;  %v5131_v32 = vmul.f32 %v5097_v48, %v4747_v26 }
 0x211   :  { %v1097_v38 = vadd.f32 %v5102_v39, %v1027_v36  ;;  %v5136_v44 = vmul.f32 %v5097_v48, %v4754_v60  ;;  %v5140_v59 = vmul.f32 %v5097_v48, %v4761_v52  ;;  %v5144_v46 = vmul.f32 %v5097_v48, %v4768_v57 }
 0x212   :  { %v5148_v45 = vmul.f32 %v5097_v48, %v4775_v2  ;;  %v5152_v26 = vmul.f32 %v5097_v48, %v4782_v9  ;;  %v5156_v60 = vmul.f32 %v5097_v48, %v4789_v63  ;;  %v5160_v52 = vmul.f32 %v5097_v48, %v4796_v6 }
 0x213   :  { %v1161_v61 = vmax.f32 %v1097_v38, 0.0  ;;  %v5164_v57 = vmul.f32 %v5097_v48, %v4803_v19  ;;  %v5168_v2 = vmul.f32 %v5097_v48, %v4810_v27  ;;  %v5172_v9 = vmul.f32 %v5097_v48, %v4817_v14  ;;  %v6754_v38 = vld [vmem:[#allocation21_spill] sm:$0xff] }
 0x214   :  { %v5176_v63 = vmul.f32 %v5097_v48, %v4824_v22  ;;  %v5180_v6 = vmul.f32 %v5097_v48, %v4831_v34  ;;  %v5184_v19 = vmul.f32 %v5097_v48, %v4838_v40  ;;  %v5188_v27 = vmul.f32 %v5097_v48, %v4845_v31 }
 0x215   :  { %1387 = vst.msk [vmem:[#allocation2 + $0x4c1] sm:$0xff] %vm562_vm1, %v1161_v61  ;;  %v5193_v14 = vmul.f32 %v5097_v48, %v4852_v37  ;;  %v5197_v22 = vmul.f32 %v5097_v48, %v4859_v50  ;;  %v5201_v34 = vmul.f32 %v5097_v48, %v4866_v58  ;;  %v5205_v40 = vmul.f32 %v5097_v48, %v4873_v43 }
 0x216   :  { %v5209_v31 = vmul.f32 %v5097_v48, %v4880_v53  ;;  %v5213_v37 = vmul.f32 %v5097_v48, %v4887_v3  ;;  %v5217_v50 = vmul.f32 %v5097_v48, %v4894_v15  ;;  %v5221_v58 = vmul.f32 %v5097_v48, %v4901_v62 }
 0x217   :  { %v5225_v43 = vmul.f32 %v5097_v48, %v6746_v7  ;;  %v5229_v53 = vmul.f32 %v5097_v48, %v6747_v18  ;;  %v5233_v3 = vmul.f32 %v5097_v48, %v6748_v8  ;;  %v5237_v15 = vmul.f32 %v5097_v48, %v6749_v13  ;;  %v6755_v7 = vld [vmem:[#allocation18_spill] sm:$0xff]  ;;  %v6757_v8 = vld [vmem:[#allocation20_spill] sm:$0xff] }
 0x218   :  { %v5241_v62 = vmul.f32 %v5097_v48, %v6750_v21  ;;  %v5245_v33 = vmul.f32 %v5097_v48, %v6751_v23  ;;  %v5249_v17 = vmul.f32 %v5097_v48, %v6752_v49  ;;  %v5253_v36 = vmul.f32 %v5097_v48, %v6753_v54  ;;  %v6759_v21 = vld [vmem:[#allocation23_spill] sm:$0xff]  ;;  %v6760_v49 = vld [vmem:[#allocation25_spill] sm:$0xff] }
 0x219   :  { %v5257_v61 = vmul.f32 %v5097_v48, %v6754_v38  ;;  %v5261_v18 = vmul.f32 %v5097_v48, %v6755_v7  ;;  %v5265_v13 = vmul.f32 %v5097_v48, %v6757_v8  ;;  %v5269_v23 = vmul.f32 %v5097_v48, %v6759_v21 }
 0x21a   :  { %v5273_v54 = vmul.f32 %v5097_v48, %v6760_v49  ;;  %v5277_v38 = vmul.f32 %v5097_v48, %v6761_v55  ;;  %v5281_v7 = vmul.f32 %v5097_v48, %v5006_v28  ;;  %v5293_v49 = vmul.f32 %v5097_v48, %v5023_v4 }
 0x21b   :  { %6756 = vst [vmem:[#allocation26_spill] sm:$0xff] %v5261_v18  ;;  %6758 = vst [vmem:[#allocation28_spill] sm:$0xff] %v5265_v13  ;;  %v6763_v18 = vld [vmem:[#allocation24_spill] sm:$0xff]  ;;  %v6764_v13 = vld [vmem:[#allocation29_spill] sm:$0xff]  ;;  %v5297_v55 = vmul.f32 %v5097_v48, %v5030_v35  ;;  %v1014_v28 = vmul.f32 %v5097_v48, %v4667_v41  ;;  %v5313_v4 = vmul.f32 %v5097_v48, %v4679_v42 }
 0x21c   :  { %6762 = vst [vmem:[#allocation34_spill] sm:$0xff] %v5281_v7  ;;  %v5285_v8 = vmul.f32 %v5097_v48, %v6763_v18  ;;  %v5289_v21 = vmul.f32 %v5097_v48, %v6764_v13  ;;  %v1015_v7 = vmul.f32 %v5097_v48, %v4670_v10  ;;  %v5305_v18 = vmul.f32 %v5097_v48, %v4673_v5  ;;  %v3776_v35 = vld [vmem:[%s6629_s4 + $0x78] sm:$0xff]  }
 0x21d   :  { %v5309_v13 = vmul.f32 %v5097_v48, %v4676_v56  ;;  %6766 = vst [vmem:[#allocation13_spill] sm:$0xff] %v5313_v4  ;;  %v5320_v41 = vmul.f32 %v5097_v48, %v4682_v51  ;;  %v5324_v10 = vmul.f32 %v5097_v48, %v4685_v0  ;;  %v5328_v5 = vmul.f32 %v5097_v48, %v4688_v24  ;;  %v3777_v42 = vld [vmem:[%s6629_s4 + $0x38] sm:$0xff]   ;;  %v3778_v51 = vld [vmem:[%s6629_s4 + $0x70] sm:$0xff]  }
 0x21e   :  { %v5332_v56 = vmul.f32 %v5097_v48, %v4691_v12  ;;  %v5342_v0 = vmul.f32 %v5097_v48, %v4694_v29  ;;  %v5346_v24 = vmul.f32 %v5097_v48, %v4697_v1  ;;  %3285 = vmatprep.subr.bf16.mxu1 %v3776_v35  ;;  %v1084_v1 = vadd.f32 %v5102_v39, %v1014_v28  ;;  %v3780_v28 = vld [vmem:[%s6629_s4 + $0x68] sm:$0xff]  }
 0x21f   :  { %6765 = vst [vmem:[#allocation35_spill] sm:$0xff] %v5309_v13  ;;  %6767 = vst [vmem:[#allocation15_spill] sm:$0xff] %v5320_v41  ;;  %v6774_v41 = vld [vmem:[#allocation32_spill] sm:$0xff]  ;;  %v6775_v13 = vld [vmem:[#allocation33_spill] sm:$0xff]  ;;  %3286 = vmatpush3.bf16.msra.mxu1 %v3777_v42  ;;  %v5371_v35 = vadd.f32 %v5102_v39, %v5107_v11  ;;  %v5406_v42 = vadd.f32 %v5102_v39, %v5140_v59  ;;  %v5428_v59 = vadd.f32 %v5102_v39, %v5160_v52 }
 0x220   :  { %6768 = vst [vmem:[#allocation17_spill] sm:$0xff] %v5324_v10  ;;  %6769 = vst [vmem:[#allocation14_spill] sm:$0xff] %v5328_v5  ;;  %v6772_v5 = vld [vmem:[#allocation30_spill] sm:$0xff]  ;;  %v5358_v4 = vmul.f32 %v5097_v48, %v6774_v41  ;;  %v5362_v29 = vmul.f32 %v5097_v48, %v6775_v13  ;;  %v5375_v41 = vadd.f32 %v5102_v39, %v5111_v25  ;;  %3287 = vmatprep.subr.bf16.mxu1 %v3778_v51 }
 0x221   :  { %6770 = vst [vmem:[#allocation16_spill] sm:$0xff] %v5332_v56  ;;  %6771 = vst [vmem:[#allocation19_spill] sm:$0xff] %v5346_v24  ;;  %v5350_v12 = vmul.f32 %v5097_v48, %v6772_v5  ;;  %v6773_v56 = vld [vmem:[#allocation31_spill] sm:$0xff]  ;;  %v1085_v24 = vadd.f32 %v5102_v39, %v1015_v7  ;;  %v3779_v5 = vld [vmem:[%s6629_s4 + $0x30] sm:$0xff]   ;;  %v5383_v7 = vadd.f32 %v5102_v39, %v5119_v47  ;;  %v1148_v13 = vmax.f32 %v1084_v1, 0.0 }
 0x222   :  { %v5354_v10 = vmul.f32 %v5097_v48, %v6773_v56  ;;  %v5379_v48 = vadd.f32 %v5102_v39, %v5115_v20  ;;  %v5390_v56 = vadd.f32 %v5102_v39, %v5123_v16  ;;  %v5394_v25 = vadd.f32 %v5102_v39, %v5127_v30  ;;  %v3782_v51 = vld [vmem:[%s6629_s4 + $0x60] sm:$0xff]   ;;  %v3784_v1 = vld [vmem:[%s6629_s4 + $0x58] sm:$0xff]  }
 0x223   :  { %v1149_v11 = vmax.f32 %v1085_v24, 0.0  ;;  %v5398_v20 = vadd.f32 %v5102_v39, %v5131_v32  ;;  %v5402_v47 = vadd.f32 %v5102_v39, %v5136_v44  ;;  %v5410_v16 = vadd.f32 %v5102_v39, %v5144_v46  ;;  %1374 = vst.msk [vmem:[#allocation2 + $0x3d1] sm:$0xff] %vm562_vm1, %v1148_v13  ;;  %3288 = vmatpush3.bf16.msra.mxu1 %v3779_v5  ;;  %v3781_v46 = vld [vmem:[%s6629_s4 + $0x28] sm:$0xff]   ;;  %v6778_v13 = vld [vmem:[#allocation26_spill] sm:$0xff] }
 0x224   :  { %v5416_v30 = vadd.f32 %v5102_v39, %v5148_v45  ;;  %v5420_v32 = vadd.f32 %v5102_v39, %v5152_v26  ;;  %v5424_v44 = vadd.f32 %v5102_v39, %v5156_v60  ;;  %v5435_v45 = vadd.f32 %v5102_v39, %v5164_v57  ;;  %3289 = vmatprep.subr.bf16.mxu1 %v3780_v28 }
 0x225   :  { %1375 = vst.msk [vmem:[#allocation2 + $0x3e1] sm:$0xff] %vm562_vm1, %v1149_v11  ;;  %v5439_v26 = vadd.f32 %v5102_v39, %v5168_v2  ;;  %v5443_v60 = vadd.f32 %v5102_v39, %v5172_v9  ;;  %v5447_v52 = vadd.f32 %v5102_v39, %v5176_v63  ;;  %v5454_v57 = vadd.f32 %v5102_v39, %v5180_v6  ;;  %v6780_v11 = vld [vmem:[#allocation28_spill] sm:$0xff] }
 0x226   :  { %v5458_v2 = vadd.f32 %v5102_v39, %v5184_v19  ;;  %v5462_v9 = vadd.f32 %v5102_v39, %v5188_v27  ;;  %v5466_v63 = vadd.f32 %v5102_v39, %v5193_v14  ;;  %v5470_v24 = vadd.f32 %v5102_v39, %v5197_v22 }
 0x227   :  { %v5474_v6 = vadd.f32 %v5102_v39, %v5201_v34  ;;  %v5478_v19 = vadd.f32 %v5102_v39, %v5205_v40  ;;  %v5482_v27 = vadd.f32 %v5102_v39, %v5209_v31  ;;  %v5486_v14 = vadd.f32 %v5102_v39, %v5213_v37  ;;  %3290 = vmatpush3.bf16.msra.mxu1 %v3781_v46  ;;  %v3783_v31 = vld [vmem:[%s6629_s4 + $0x20] sm:$0xff]  }
 0x228   :  { %v5490_v22 = vadd.f32 %v5102_v39, %v5217_v50  ;;  %v5494_v34 = vadd.f32 %v5102_v39, %v5221_v58  ;;  %v5498_v40 = vadd.f32 %v5102_v39, %v5225_v43  ;;  %v5505_v37 = vadd.f32 %v5102_v39, %v5229_v53  ;;  %3291 = vmatprep.subr.bf16.mxu1 %v3782_v51 }
 0x229   :  { %v5509_v50 = vadd.f32 %v5102_v39, %v5233_v3  ;;  %v5513_v58 = vadd.f32 %v5102_v39, %v5237_v15  ;;  %v5517_v43 = vadd.f32 %v5102_v39, %v5241_v62  ;;  %v5524_v53 = vadd.f32 %v5102_v39, %v5245_v33 }
 0x22a   :  { %v5528_v3 = vadd.f32 %v5102_v39, %v5249_v17  ;;  %v5532_v15 = vadd.f32 %v5102_v39, %v5253_v36  ;;  %v5536_v62 = vadd.f32 %v5102_v39, %v5257_v61  ;;  %v5538_v5 = vld [vmem:[#allocation2 + $0x3d0] sm:$0xff]  ;;  %v5544_v33 = vadd.f32 %v5102_v39, %v6778_v13  ;;  %v6781_v13 = vld [vmem:[#allocation34_spill] sm:$0xff] }
 0x22b   :  { %6776 = vst [vmem:[#allocation21_spill] sm:$0xff] %v5538_v5  ;;  %v5548_v17 = vadd.f32 %v5102_v39, %v6780_v11  ;;  %v5552_v36 = vadd.f32 %v5102_v39, %v5269_v23  ;;  %v5556_v61 = vadd.f32 %v5102_v39, %v5273_v54  ;;  %v5562_v51 = vadd.f32 %v5102_v39, %v5277_v38  ;;  %v3785_v23 = vld [vmem:[%s6629_s4 + $0x18] sm:$0xff]  }
 0x22c   :  { %v5540_v28 = vld [vmem:[#allocation2 + $0x3e0] sm:$0xff]  ;;  %6779 = vst [vmem:[#allocation20_spill] sm:$0xff] %v5544_v33  ;;  %v5566_v33 = vadd.f32 %v5102_v39, %v6781_v13  ;;  %v5570_v11 = vadd.f32 %v5102_v39, %v5285_v8  ;;  %3292 = vmatpush3.bf16.msra.mxu1 %v3783_v31  ;;  %v5577_v54 = vadd.f32 %v5102_v39, %v5289_v21  ;;  %v6784_v31 = vld [vmem:[#allocation35_spill] sm:$0xff] }
 0x22d   :  { %6777 = vst [vmem:[#allocation18_spill] sm:$0xff] %v5540_v28  ;;  %v3542_v46 = vpack.i.bf16 %v5540_v28, %v5538_v5  ;;  %v5581_v38 = vadd.f32 %v5102_v39, %v5293_v49  ;;  %v5585_v13 = vadd.f32 %v5102_v39, %v5297_v55  ;;  %v5589_v8 = vadd.f32 %v5102_v39, %v5305_v18  ;;  %v6785_v28 = vld [vmem:[#allocation13_spill] sm:$0xff]  ;;  %v6787_v5 = vld [vmem:[#allocation15_spill] sm:$0xff] }
 0x22e   :  { %3293 = vmatprep.subr.bf16.mxu1 %v3784_v1  ;;  %v5594_v21 = vadd.f32 %v5102_v39, %v6784_v31  ;;  %v5598_v49 = vadd.f32 %v5102_v39, %v6785_v28  ;;  %v5602_v55 = vadd.f32 %v5102_v39, %v6787_v5  ;;  %v6789_v1 = vld [vmem:[#allocation14_spill] sm:$0xff]  ;;  %v5618_v28 = vadd.f32 %v5102_v39, %v5342_v0 }
 0x22f   :  { %6782 = vst [vmem:[#allocation23_spill] sm:$0xff] %v5585_v13  ;;  %6783 = vst [vmem:[#allocation25_spill] sm:$0xff] %v5589_v8  ;;  %3543 = vrot.lane.b32.xlu1 %v3542_v46, %s3831_s20  ;;  %v6788_v13 = vld [vmem:[#allocation17_spill] sm:$0xff]  ;;  %v5610_v8 = vadd.f32 %v5102_v39, %v6789_v1  ;;  %v6790_v46 = vld [vmem:[#allocation16_spill] sm:$0xff]  ;;  %v5630_v1 = vadd.f32 %v5102_v39, %v5354_v10  ;;  %v5638_v0 = vadd.f32 %v5102_v39, %v5362_v29 }
 0x230   :  { %6786 = vst [vmem:[#allocation22_spill] sm:$0xff] %v5598_v49  ;;  %v5606_v18 = vadd.f32 %v5102_v39, %v6788_v13  ;;  %v5614_v31 = vadd.f32 %v5102_v39, %v6790_v46  ;;  %v6791_v49 = vld [vmem:[#allocation19_spill] sm:$0xff]  ;;  %v5626_v13 = vadd.f32 %v5102_v39, %v5350_v12  ;;  %v5634_v46 = vadd.f32 %v5102_v39, %v5358_v4  ;;  %v3787_v12 = vld [vmem:[%s6629_s4 + $0x10] sm:$0xff]  }
 0x231   :  { %v5622_v5 = vadd.f32 %v5102_v39, %v6791_v49  ;;  %6792 = vst [vmem:[#allocation24_spill] sm:$0xff] %v5630_v1  ;;  %6794 = vst [vmem:[#allocation30_spill] sm:$0xff] %v5638_v0  ;;  %3294 = vmatpush3.bf16.msra.mxu1 %v3785_v23  ;;  %v3786_v49 = vld [vmem:[%s6629_s4 + $0x50] sm:$0xff]   ;;  %v1116_v10 = vmax.f32 %v5443_v60, 0.0  ;;  %v1117_v1 = vmax.f32 %v5447_v52, 0.0  ;;  %v1100_v4 = vmax.f32 %v5371_v35, 0.0 }
 0x232   :  { %6793 = vst [vmem:[#allocation29_spill] sm:$0xff] %v5634_v46  ;;  %v1101_v46 = vmax.f32 %v5375_v41, 0.0  ;;  %v1102_v39 = vmax.f32 %v5379_v48, 0.0  ;;  %v1103_v29 = vmax.f32 %v5383_v7, 0.0  ;;  %v1104_v23 = vmax.f32 %v5390_v56, 0.0  ;;  %3295 = vmatprep.subr.bf16.mxu1 %v3786_v49 }
 0x233   :  { %v1105_v0 = vmax.f32 %v5394_v25, 0.0  ;;  %1342 = vst.msk [vmem:[#allocation2 + $0x151] sm:$0xff] %vm562_vm1, %v1116_v10  ;;  %1343 = vst.msk [vmem:[#allocation2 + $0x161] sm:$0xff] %vm562_vm1, %v1117_v1  ;;  %v1106_v60 = vmax.f32 %v5398_v20, 0.0  ;;  %v1107_v52 = vmax.f32 %v5402_v47, 0.0  ;;  %v1108_v35 = vmax.f32 %v5406_v42, 0.0 }
 0x234   :  { %v1109_v41 = vmax.f32 %v5410_v16, 0.0  ;;  %1326 = vst.msk [vmem:[#allocation2 + $0x11] sm:$0xff] %vm562_vm1, %v1100_v4  ;;  %1327 = vst.msk [vmem:[#allocation2 + $0x21] sm:$0xff] %vm562_vm1, %v1101_v46  ;;  %v1110_v48 = vmax.f32 %v5416_v30, 0.0  ;;  %v1111_v7 = vmax.f32 %v5420_v32, 0.0  ;;  %v1112_v56 = vmax.f32 %v5424_v44, 0.0 }
 0x235   :  { %v1113_v25 = vmax.f32 %v5428_v59, 0.0  ;;  %1328 = vst.msk [vmem:[#allocation2 + $0x31] sm:$0xff] %vm562_vm1, %v1102_v39  ;;  %1329 = vst.msk [vmem:[#allocation2 + $0x41] sm:$0xff] %vm562_vm1, %v1103_v29  ;;  %3296 = vmatpush3.bf16.msra.mxu1 %v3787_v12  ;;  %v1114_v20 = vmax.f32 %v5435_v45, 0.0  ;;  %v1115_v47 = vmax.f32 %v5439_v26, 0.0  ;;  %v1118_v42 = vmax.f32 %v5454_v57, 0.0 }
 0x236   :  { %1330 = vst.msk [vmem:[#allocation2 + $0x51] sm:$0xff] %vm562_vm1, %v1104_v23  ;;  %1331 = vst.msk [vmem:[#allocation2 + $0x61] sm:$0xff] %vm562_vm1, %v1105_v0  ;;  %v1119_v16 = vmax.f32 %v5458_v2, 0.0  ;;  %v1120_v30 = vmax.f32 %v5462_v9, 0.0  ;;  %v1121_v32 = vmax.f32 %v5466_v63, 0.0  ;;  %v1122_v44 = vmax.f32 %v5470_v24, 0.0 }
 0x237   :  { %1332 = vst.msk [vmem:[#allocation2 + $0x71] sm:$0xff] %vm562_vm1, %v1106_v60  ;;  %1333 = vst.msk [vmem:[#allocation2 + $0x81] sm:$0xff] %vm562_vm1, %v1107_v52  ;;  %v1123_v59 = vmax.f32 %v5474_v6, 0.0  ;;  %v1124_v45 = vmax.f32 %v5478_v19, 0.0  ;;  %v1125_v26 = vmax.f32 %v5482_v27, 0.0  ;;  %v1126_v57 = vmax.f32 %v5486_v14, 0.0 }
 0x238   :  { %1334 = vst.msk [vmem:[#allocation2 + $0xb1] sm:$0xff] %vm562_vm1, %v1108_v35  ;;  %1335 = vst.msk [vmem:[#allocation2 + $0xc1] sm:$0xff] %vm562_vm1, %v1109_v41  ;;  %v1127_v2 = vmax.f32 %v5490_v22, 0.0  ;;  %v1128_v9 = vmax.f32 %v5494_v34, 0.0  ;;  %v1129_v63 = vmax.f32 %v5498_v40, 0.0  ;;  %v1130_v24 = vmax.f32 %v5505_v37, 0.0 }
 0x239   :  { %1336 = vst.msk [vmem:[#allocation2 + $0xd1] sm:$0xff] %vm562_vm1, %v1110_v48  ;;  %1337 = vst.msk [vmem:[#allocation2 + $0xe1] sm:$0xff] %vm562_vm1, %v1111_v7  ;;  %v1131_v6 = vmax.f32 %v5509_v50, 0.0  ;;  %v1132_v19 = vmax.f32 %v5513_v58, 0.0  ;;  %v1133_v27 = vmax.f32 %v5517_v43, 0.0  ;;  %v1134_v14 = vmax.f32 %v5524_v53, 0.0 }
 0x23a   :  { %1338 = vst.msk [vmem:[#allocation2 + $0xf1] sm:$0xff] %vm562_vm1, %v1112_v56  ;;  %1339 = vst.msk [vmem:[#allocation2 + $0x101] sm:$0xff] %vm562_vm1, %v1113_v25  ;;  %v1135_v22 = vmax.f32 %v5528_v3, 0.0  ;;  %v1473_v34 = vld [vmem:[#allocation2 + $0x151] sm:$0xff]  ;;  %v1474_v40 = vld [vmem:[#allocation2 + $0x161] sm:$0xff]  ;;  %v1136_v37 = vmax.f32 %v5532_v15, 0.0 }
 0x23b   :  { %1340 = vst.msk [vmem:[#allocation2 + $0x111] sm:$0xff] %vm562_vm1, %v1114_v20  ;;  %1341 = vst.msk [vmem:[#allocation2 + $0x121] sm:$0xff] %vm562_vm1, %v1115_v47  ;;  %v1137_v50 = vmax.f32 %v5536_v62, 0.0  ;;  %v6795_v58 = vld [vmem:[#allocation20_spill] sm:$0xff]  ;;  %v1139_v53 = vmax.f32 %v5548_v17, 0.0  ;;  %v3532_v3 = vpack.i.bf16 %v1474_v40, %v1473_v34  ;;  %v1140_v1 = vmax.f32 %v5552_v36, 0.0 }
 0x23c   :  { %1344 = vst.msk [vmem:[#allocation2 + $0x171] sm:$0xff] %vm562_vm1, %v1118_v42  ;;  %1345 = vst.msk [vmem:[#allocation2 + $0x181] sm:$0xff] %vm562_vm1, %v1119_v16  ;;  %v1138_v43 = vmax.f32 %v6795_v58, 0.0  ;;  %v1141_v46 = vmax.f32 %v5556_v61, 0.0  ;;  %v1142_v15 = vmax.f32 %v5562_v51, 0.0  ;;  %v3788_v62 = vld [vmem:[%s6629_s4 + $0x48] sm:$0xff]  }
 0x23d   :  { %1346 = vst.msk [vmem:[#allocation2 + $0x191] sm:$0xff] %vm562_vm1, %v1120_v30  ;;  %1347 = vst.msk [vmem:[#allocation2 + $0x1a1] sm:$0xff] %vm562_vm1, %v1121_v32  ;;  %v1143_v17 = vmax.f32 %v5566_v33, 0.0  ;;  %v1144_v36 = vmax.f32 %v5570_v11, 0.0  ;;  %v1145_v61 = vmax.f32 %v5577_v54, 0.0  ;;  %v1146_v51 = vmax.f32 %v5581_v38, 0.0  ;;  %3533 = vrot.lane.b32.xlu0 %v3532_v3, %s3832_s28  ;;  %3297 = vmatprep.subr.bf16.mxu1 %v3788_v62 }
 0x23e   :  { %1348 = vst.msk [vmem:[#allocation2 + $0x1b1] sm:$0xff] %vm562_vm1, %v1122_v44  ;;  %1349 = vst.msk [vmem:[#allocation2 + $0x1c1] sm:$0xff] %vm562_vm1, %v1123_v59  ;;  %v3789_v0 = vld [vmem:[%s6629_s4 + $0x8] sm:$0xff]   ;;  %v3790_v33 = vld [vmem:[%s6629_s4 + $0x40] sm:$0xff]   ;;  %v1151_v12 = vmax.f32 %v5594_v21, 0.0  ;;  %v1153_v23 = vmax.f32 %v5602_v55, 0.0 }
 0x23f   :  { %1350 = vst.msk [vmem:[#allocation2 + $0x1f1] sm:$0xff] %vm562_vm1, %v1124_v45  ;;  %1351 = vst.msk [vmem:[#allocation2 + $0x201] sm:$0xff] %vm562_vm1, %v1125_v26  ;;  %v6796_v11 = vld [vmem:[#allocation23_spill] sm:$0xff]  ;;  %v6797_v38 = vld [vmem:[#allocation25_spill] sm:$0xff]  ;;  %v1154_v60 = vmax.f32 %v5606_v18, 0.0  ;;  %v1155_v52 = vmax.f32 %v5610_v8, 0.0  ;;  %3298 = vmatpush3.bf16.msra.mxu1 %v3789_v0 }
 0x240   :  { %1352 = vst.msk [vmem:[#allocation2 + $0x211] sm:$0xff] %vm562_vm1, %v1126_v57  ;;  %1353 = vst.msk [vmem:[#allocation2 + $0x221] sm:$0xff] %vm562_vm1, %v1127_v2  ;;  %v1147_v54 = vmax.f32 %v6796_v11, 0.0  ;;  %v1150_v49 = vmax.f32 %v6797_v38, 0.0  ;;  %v6798_v10 = vld [vmem:[#allocation22_spill] sm:$0xff]  ;;  %v1425_v29 = vld [vmem:[#allocation2 + $0x3d1] sm:$0xff]  ;;  %3299 = vmatprep.subr.bf16.mxu1 %v3790_v33 }
 0x241   :  { %1354 = vst.msk [vmem:[#allocation2 + $0x231] sm:$0xff] %vm562_vm1, %v1128_v9  ;;  %1355 = vst.msk [vmem:[#allocation2 + $0x241] sm:$0xff] %vm562_vm1, %v1129_v63  ;;  %v1152_v4 = vmax.f32 %v6798_v10, 0.0  ;;  %v1424_v39 = vld [vmem:[#allocation2 + $0x3c1] sm:$0xff]  ;;  %v1156_v35 = vmax.f32 %v5614_v31, 0.0  ;;  %v1157_v55 = vmax.f32 %v5618_v28, 0.0 }
 0x242   :  { %1356 = vst.msk [vmem:[#allocation2 + $0x251] sm:$0xff] %vm562_vm1, %v1130_v24  ;;  %1357 = vst.msk [vmem:[#allocation2 + $0x261] sm:$0xff] %vm562_vm1, %v1131_v6  ;;  %v3791_v21 = vld [vmem:[%s6629_s4] sm:$0xff]   ;;  %v1158_v18 = vmax.f32 %v5622_v5, 0.0  ;;  %v1159_v8 = vmax.f32 %v5626_v13, 0.0  ;;  %v6799_v31 = vld [vmem:[#allocation24_spill] sm:$0xff]  ;;  %v3547_v28 = vpack.i.bf16 %v1425_v29, %v1424_v39 }
 0x243   :  { %1358 = vst.msk [vmem:[#allocation2 + $0x291] sm:$0xff] %vm562_vm1, %v1132_v19  ;;  %1359 = vst.msk [vmem:[#allocation2 + $0x2a1] sm:$0xff] %vm562_vm1, %v1133_v27  ;;  %v1160_v41 = vmax.f32 %v6799_v31, 0.0  ;;  %v6800_v48 = vld [vmem:[#allocation29_spill] sm:$0xff]  ;;  %v6801_v56 = vld [vmem:[#allocation30_spill] sm:$0xff]  ;;  %3300 = vmatpush3.bf16.msra.mxu1 %v3791_v21 }
 0x244   :  { %1360 = vst.msk [vmem:[#allocation2 + $0x2b1] sm:$0xff] %vm562_vm1, %v1134_v14  ;;  %1361 = vst.msk [vmem:[#allocation2 + $0x2c1] sm:$0xff] %vm562_vm1, %v1135_v22  ;;  %v1162_v7 = vmax.f32 %v6800_v48, 0.0  ;;  %v1163_v25 = vmax.f32 %v6801_v56, 0.0  ;;  %v1408_v5 = vld [vmem:[#allocation2 + $0x281] sm:$0xff]  ;;  %v1441_v13 = vld [vmem:[#allocation2 + $0x150] sm:$0xff]  ;;  %3548 = vrot.lane.b32.xlu1 %v3547_v28, %s3831_s20 }
 0x245   :  { %1362 = vst.msk [vmem:[#allocation2 + $0x2d1] sm:$0xff] %vm562_vm1, %v1136_v37  ;;  %1363 = vst.msk [vmem:[#allocation2 + $0x2e1] sm:$0xff] %vm562_vm1, %v1137_v50  ;;  %v1442_v20 = vld [vmem:[#allocation2 + $0x160] sm:$0xff]  ;;  %v1475_v59 = vld [vmem:[#allocation2 + $0x171] sm:$0xff] }
 0x246   :  { %1364 = vst.msk [vmem:[#allocation2 + $0x2f1] sm:$0xff] %vm562_vm1, %v1138_v43  ;;  %1365 = vst.msk [vmem:[#allocation2 + $0x301] sm:$0xff] %vm562_vm1, %v1139_v53  ;;  %v3557_v30 = vpack.i.bf16 %v1442_v20, %v1441_v13  ;;  %v1476_v45 = vld [vmem:[#allocation2 + $0x181] sm:$0xff]  ;;  %v1443_v27 = vld [vmem:[#allocation2 + $0x170] sm:$0xff] }
 0x247   :  { %1366 = vst.msk [vmem:[#allocation2 + $0x331] sm:$0xff] %vm562_vm1, %v1140_v1  ;;  %1367 = vst.msk [vmem:[#allocation2 + $0x341] sm:$0xff] %vm562_vm1, %v1141_v46  ;;  %v1426_v57 = vld [vmem:[#allocation2 + $0x3e1] sm:$0xff]  ;;  %v3562_v9 = vpack.i.bf16 %v1476_v45, %v1475_v59 }
 0x248   :  { %1368 = vst.msk [vmem:[#allocation2 + $0x351] sm:$0xff] %vm562_vm1, %v1142_v15  ;;  %1369 = vst.msk [vmem:[#allocation2 + $0x361] sm:$0xff] %vm562_vm1, %v1143_v17  ;;  %3558 = vrot.lane.b32.xlu1 %v3557_v30, %s3833_s14  ;;  %v1444_v14 = vld [vmem:[#allocation2 + $0x180] sm:$0xff]  ;;  %v1477_v17 = vld [vmem:[#allocation2 + $0x191] sm:$0xff] }
 0x249   :  { %1370 = vst.msk [vmem:[#allocation2 + $0x371] sm:$0xff] %vm562_vm1, %v1144_v36  ;;  %1371 = vst.msk [vmem:[#allocation2 + $0x381] sm:$0xff] %vm562_vm1, %v1145_v61  ;;  %v5802_v50 = vld [vmem:[#allocation2 + $0x4c1] sm:$0xff]  ;;  %v3587_v43 = vpack.i.bf16 %v1444_v14, %v1443_v27 }
 0x24a   :  { %1372 = vst.msk [vmem:[#allocation2 + $0x391] sm:$0xff] %vm562_vm1, %v1146_v51  ;;  %1373 = vst.msk [vmem:[#allocation2 + $0x3a1] sm:$0xff] %vm562_vm1, %v1147_v54  ;;  %v1409_v47 = vld [vmem:[#allocation2 + $0x291] sm:$0xff]  ;;  %v1508_v16 = vld [vmem:[#allocation2 + $0x2a1] sm:$0xff] }
 0x24b   :  { %1376 = vst.msk [vmem:[#allocation2 + $0x3f1] sm:$0xff] %vm562_vm1, %v1150_v49  ;;  %1377 = vst.msk [vmem:[#allocation2 + $0x401] sm:$0xff] %vm562_vm1, %v1151_v12  ;;  %v3537_v42 = vpack.i.bf16 %v1409_v47, %v1408_v5  ;;  %v1411_v32 = vld [vmem:[#allocation2 + $0x2b1] sm:$0xff]  ;;  %v3552_v44 = vpack.i.bf16 %v1508_v16, %v1409_v47  ;;  %v1510_v58 = vld [vmem:[#allocation2 + $0x2c1] sm:$0xff] }
 0x24c   :  { %1378 = vst.msk [vmem:[#allocation2 + $0x411] sm:$0xff] %vm562_vm1, %v1152_v4  ;;  %1379 = vst.msk [vmem:[#allocation2 + $0x421] sm:$0xff] %vm562_vm1, %v1153_v23  ;;  %v3567_v26 = vpack.i.bf16 %v1411_v32, %v1508_v16  ;;  %v1413_v3 = vld [vmem:[#allocation2 + $0x2d1] sm:$0xff]  ;;  %v3582_v62 = vpack.i.bf16 %v1510_v58, %v1411_v32  ;;  %v1478_v36 = vld [vmem:[#allocation2 + $0x1a1] sm:$0xff] }
 0x24d   :  { %1380 = vst.msk [vmem:[#allocation2 + $0x431] sm:$0xff] %vm562_vm1, %v1154_v60  ;;  %1381 = vst.msk [vmem:[#allocation2 + $0x441] sm:$0xff] %vm562_vm1, %v1155_v52  ;;  %3538 = vrot.lane.b32.xlu0 %v3537_v42, %s3832_s28  ;;  %v3597_v61 = vpack.i.bf16 %v1413_v3, %v1510_v58  ;;  %v3592_v33 = vpack.i.bf16 %v1478_v36, %v1477_v17  ;;  %v1445_v49 = vld [vmem:[#allocation2 + $0x190] sm:$0xff]  ;;  %v1446_v12 = vld [vmem:[#allocation2 + $0x1a0] sm:$0xff] }
 0x24e   :  { %1382 = vst.msk [vmem:[#allocation2 + $0x471] sm:$0xff] %vm562_vm1, %v1156_v35  ;;  %1383 = vst.msk [vmem:[#allocation2 + $0x481] sm:$0xff] %vm562_vm1, %v1157_v55  ;;  %3568 = vrot.lane.b32.xlu1 %v3567_v26, %s3832_s28  ;;  %v1512_v4 = vld [vmem:[#allocation2 + $0x2e1] sm:$0xff]  ;;  %v3617_v39 = vpack.i.bf16 %v1446_v12, %v1445_v49  ;;  %v1415_v29 = vld [vmem:[#allocation2 + $0x2f1] sm:$0xff] }
 0x24f   :  { %1384 = vst.msk [vmem:[#allocation2 + $0x491] sm:$0xff] %vm562_vm1, %v1158_v18  ;;  %1385 = vst.msk [vmem:[#allocation2 + $0x4a1] sm:$0xff] %vm562_vm1, %v1159_v8  ;;  %v5829_v23 = vld [vmem:[%s6629_s4 + $0x88] sm:$0xff]   ;;  %v3612_v60 = vpack.i.bf16 %v1512_v4, %v1413_v3  ;;  %v1479_v52 = vld [vmem:[#allocation2 + $0x1b1] sm:$0xff]  ;;  %v3627_v21 = vpack.i.bf16 %v1415_v29, %v1512_v4 }
 0x250   :  { %1386 = vst.msk [vmem:[#allocation2 + $0x4b1] sm:$0xff] %vm562_vm1, %v1160_v41  ;;  %1388 = vst.msk [vmem:[#allocation2 + $0x4d1] sm:$0xff] %vm562_vm1, %v1162_v7  ;;  %v1480_v35 = vld [vmem:[#allocation2 + $0x1c1] sm:$0xff]  ;;  %3453 = vmatprep.subr.bf16.mxu1 %v5829_v23  ;;  %v1447_v7 = vld [vmem:[#allocation2 + $0x1b0] sm:$0xff] }
 0x251   :  { %1389 = vst.msk [vmem:[#allocation2 + $0x4e1] sm:$0xff] %vm562_vm1, %v1163_v25  ;;  %3553 = vrot.lane.b32.xlu0 %v3552_v44, %s3833_s14  ;;  %v3622_v8 = vpack.i.bf16 %v1480_v35, %v1479_v52  ;;  %v1448_v56 = vld [vmem:[#allocation2 + $0x1c0] sm:$0xff]  ;;  %v1417_v20 = vld [vmem:[#allocation2 + $0x331] sm:$0xff] }
 0x252   :  { %v1427_v2 = vld [vmem:[#allocation2 + $0x3f1] sm:$0xff]  ;;  %v5790_v6 = vld [vmem:[#allocation2 + $0x400] sm:$0xff]  ;;  %v3647_v5 = vpack.i.bf16 %v1448_v56, %v1447_v7 }
 0x253   :  { %v5788_v24 = vld [vmem:[#allocation2 + $0x3f0] sm:$0xff]  ;;  %v3577_v19 = vpack.i.bf16 %v1427_v2, %v1426_v57  ;;  %v1428_v51 = vld [vmem:[#allocation2 + $0x401] sm:$0xff] }
 0x254   :  { %v3572_v37 = vpack.i.bf16 %v5790_v6, %v5788_v24  ;;  %v1429_v0 = vld [vmem:[#allocation2 + $0x411] sm:$0xff]  ;;  %v5818_v54 = vld [vmem:[#allocation2 + $0x420] sm:$0xff] }
 0x255   :  { %v5786_v63 = vld [vmem:[#allocation2 + $0x471] sm:$0xff]  ;;  %3563 = vrot.lane.b32.xlu0 %v3562_v9, %s3832_s28  ;;  %v5793_v22 = vld [vmem:[#allocation2 + $0x481] sm:$0xff]  ;;  %3578 = vrot.lane.b32.xlu1 %v3577_v19, %s3831_s20  ;;  %v3607_v38 = vpack.i.bf16 %v1429_v0, %v1428_v51 }
 0x256   :  { %v5796_v34 = vld [vmem:[#allocation2 + $0x491] sm:$0xff]  ;;  %v2034_v40 = vpack.c.bf16 %v5793_v22, %v5786_v63  ;;  %v5804_v53 = vld [vmem:[#allocation2 + $0x4a1] sm:$0xff] }
 0x257   :  { %v5807_v1 = vld [vmem:[#allocation2 + $0x4b1] sm:$0xff]  ;;  %v2037_v46 = vpack.c.bf16 %v5804_v53, %v5796_v34  ;;  %v5833_v55 = vld [vmem:[#allocation2 + $0x421] sm:$0xff] }
 0x258   :  { %v2040_v15 = vpack.c.bf16 %v5802_v50, %v5807_v1  ;;  %v5816_v11 = vld [vmem:[#allocation2 + $0x410] sm:$0xff]  ;;  %v1497_v41 = vld [vmem:[#allocation2 + $0x440] sm:$0xff] }
 0x259   :  { %3573 = vrot.lane.b32.xlu0 %v3572_v37, %s3831_s20  ;;  %3588 = vrot.lane.b32.xlu1 %v3587_v43, %s3833_s14  ;;  %v3602_v10 = vpack.i.bf16 %v5818_v54, %v5816_v11  ;;  %v5835_v18 = vld [vmem:[#allocation2 + $0x431] sm:$0xff]  ;;  %v1514_v28 = vld [vmem:[#allocation2 + $0x301] sm:$0xff] }
 0x25a   :  { %v5838_v31 = vld [vmem:[#allocation2 + $0x430] sm:$0xff]  ;;  %v3637_v48 = vpack.i.bf16 %v5835_v18, %v5833_v55  ;;  %v1416_v13 = vld [vmem:[#allocation2 + $0x321] sm:$0xff]  ;;  %v3642_v47 = vpack.i.bf16 %v1514_v28, %v1415_v29 }
 0x25b   :  { %v3632_v25 = vpack.i.bf16 %v1497_v41, %v5838_v31  ;;  %v1481_v42 = vld [vmem:[#allocation2 + $0x1f1] sm:$0xff]  ;;  %v1482_v16 = vld [vmem:[#allocation2 + $0x201] sm:$0xff]  ;;  %v3657_v30 = vpack.i.bf16 %v1417_v20, %v1416_v13 }
 0x25c   :  { %v1432_v32 = vld [vmem:[#allocation2 + $0x461] sm:$0xff]  ;;  %v3652_v44 = vpack.i.bf16 %v1482_v16, %v1481_v42  ;;  %v5849_v59 = vld [vmem:[#allocation2 + $0x470] sm:$0xff] }
 0x25d   :  { %3583 = vrot.lane.b32.xlu0 %v3582_v62, %s3833_s14  ;;  %3598 = vrot.lane.b32.xlu1 %v3597_v61, %s3832_s28  ;;  %v5851_v45 = vld [vmem:[#allocation2 + $0x480] sm:$0xff]  ;;  %v3667_v26 = vpack.i.bf16 %v5786_v63, %v1432_v32  ;;  %v1449_v57 = vld [vmem:[#allocation2 + $0x1f0] sm:$0xff]  ;;  %v3697_v61 = vpack.i.bf16 %v5796_v34, %v5793_v22  ;;  %v6039_v63 = vld [vmem:[%s6635_s10 + $0x18] sm:$0xff]  }
 0x25e   :  { %v1450_v2 = vld [vmem:[#allocation2 + $0x200] sm:$0xff]  ;;  %v3662_v9 = vpack.i.bf16 %v5851_v45, %v5849_v59  ;;  %v1419_v14 = vld [vmem:[#allocation2 + $0x351] sm:$0xff]  ;;  %3493 = vmatprep.subr.bf16.mxu0 %v6039_v63 }
 0x25f   :  { %v1516_v19 = vld [vmem:[#allocation2 + $0x341] sm:$0xff]  ;;  %v3677_v27 = vpack.i.bf16 %v1450_v2, %v1449_v57  ;;  %v1483_v58 = vld [vmem:[#allocation2 + $0x211] sm:$0xff]  ;;  %3494 = vmatpush3.bf16.msra.mxu0 %v6039_v63 }
 0x260   :  { %v3672_v37 = vpack.i.bf16 %v1516_v19, %v1417_v20  ;;  %v1484_v43 = vld [vmem:[#allocation2 + $0x221] sm:$0xff]  ;;  %v3687_v3 = vpack.i.bf16 %v1419_v14, %v1516_v19  ;;  %v5862_v17 = vld [vmem:[#allocation2 + $0x490] sm:$0xff] }
 0x261   :  { %3593 = vrot.lane.b32.xlu0 %v3592_v33, %s3832_s28  ;;  %3608 = vrot.lane.b32.xlu1 %v3607_v38, %s3831_s20  ;;  %v3682_v62 = vpack.i.bf16 %v1484_v43, %v1483_v58  ;;  %v5864_v36 = vld [vmem:[#allocation2 + $0x4a0] sm:$0xff]  ;;  %v1451_v51 = vld [vmem:[#allocation2 + $0x210] sm:$0xff] }
 0x262   :  { %v1452_v0 = vld [vmem:[#allocation2 + $0x220] sm:$0xff]  ;;  %v3692_v33 = vpack.i.bf16 %v5864_v36, %v5862_v17  ;;  %v1421_v12 = vld [vmem:[#allocation2 + $0x371] sm:$0xff] }
 0x263   :  { %v1518_v38 = vld [vmem:[#allocation2 + $0x361] sm:$0xff]  ;;  %v3707_v49 = vpack.i.bf16 %v1452_v0, %v1451_v51  ;;  %v1485_v4 = vld [vmem:[#allocation2 + $0x231] sm:$0xff] }
 0x264   :  { %v3717_v29 = vpack.i.bf16 %v1421_v12, %v1518_v38  ;;  %v5876_v52 = vld [vmem:[#allocation2 + $0x4b0] sm:$0xff]  ;;  %v5878_v35 = vld [vmem:[#allocation2 + $0x4c0] sm:$0xff] }
 0x265   :  { %3603 = vrot.lane.b32.xlu0 %v3602_v10, %s3831_s20  ;;  %3618 = vrot.lane.b32.xlu1 %v3617_v39, %s3833_s14  ;;  %v3702_v10 = vpack.i.bf16 %v1518_v38, %v1419_v14  ;;  %v1486_v39 = vld [vmem:[#allocation2 + $0x241] sm:$0xff]  ;;  %v5892_v16 = vld [vmem:[#allocation2 + $0x4d0] sm:$0xff] }
 0x266   :  { %v1454_v41 = vld [vmem:[#allocation2 + $0x240] sm:$0xff] }
 0x267   :  { %v1520_v7 = vld [vmem:[#allocation2 + $0x381] sm:$0xff] }
 0x268   :  { %v3732_v28 = vpack.i.bf16 %v1520_v7, %v1421_v12  ;;  %v1488_v13 = vld [vmem:[#allocation2 + $0x261] sm:$0xff] }
 0x269   :  { %3613 = vrot.lane.b32.xlu0 %v3612_v60, %s3833_s14  ;;  %3628 = vrot.lane.b32.xlu1 %v3627_v21, %s3832_s28  ;;  %v3712_v60 = vpack.i.bf16 %v1486_v39, %v1485_v4  ;;  %v3727_v21 = vpack.i.bf16 %v5807_v1, %v5804_v53  ;;  %v1522_v2 = vld [vmem:[#allocation2 + $0x3a1] sm:$0xff]  ;;  %v1457_v39 = vld [vmem:[#allocation2 + $0x11] sm:$0xff] }
 0x26d   :  { %3623 = vrot.lane.b32.xlu0 %v3622_v8, %s3832_s28  ;;  %3638 = vrot.lane.b32.xlu1 %v3637_v48, %s3831_s20  ;;  %v1453_v8 = vld [vmem:[#allocation2 + $0x230] sm:$0xff]  ;;  %v3722_v48 = vpack.i.bf16 %v5878_v35, %v5876_v52 }
 0x26e   :  { %v3737_v56 = vpack.i.bf16 %v1454_v41, %v1453_v8 }
 0x271   :  { %3633 = vrot.lane.b32.xlu0 %v3632_v25, %s3831_s20  ;;  %3648 = vrot.lane.b32.xlu1 %v3647_v5, %s3833_s14  ;;  %v1423_v25 = vld [vmem:[#allocation2 + $0x391] sm:$0xff] }
 0x272   :  { %v1487_v5 = vld [vmem:[#allocation2 + $0x251] sm:$0xff]  ;;  %v3747_v20 = vpack.i.bf16 %v1423_v25, %v1520_v7  ;;  %v3762_v19 = vpack.i.bf16 %v1522_v2, %v1423_v25 }
 0x273   :  { %v3742_v42 = vpack.i.bf16 %v1488_v13, %v1487_v5 }
 0x275   :  { %3643 = vrot.lane.b32.xlu0 %v3642_v47, %s3833_s14  ;;  %3658 = vrot.lane.b32.xlu1 %v3657_v30, %s3832_s28  ;;  %v5889_v47 = vld [vmem:[#allocation2 + $0x4d1] sm:$0xff]  ;;  %v1505_v30 = vld [vmem:[#allocation2 + $0x4e0] sm:$0xff] }
 0x276   :  { %v3757_v32 = vpack.i.bf16 %v5889_v47, %v5802_v50  ;;  %v3752_v57 = vpack.i.bf16 %v1505_v30, %v5892_v16 }
 0x279   :  { %3653 = vrot.lane.b32.xlu0 %v3652_v44, %s3832_s28  ;;  %3668 = vrot.lane.b32.xlu1 %v3667_v26, %s3831_s20  ;;  %v1455_v44 = vld [vmem:[#allocation2 + $0x250] sm:$0xff]  ;;  %v1456_v26 = vld [vmem:[#allocation2 + $0x260] sm:$0xff] }
 0x27d   :  { %3663 = vrot.lane.b32.xlu0 %v3662_v9, %s3831_s20  ;;  %3678 = vrot.lane.b32.xlu1 %v3677_v27, %s3833_s14  ;;  %v3767_v9 = vpack.i.bf16 %v1456_v26, %v1455_v44 }
 0x281   :  { %3673 = vrot.lane.b32.xlu0 %v3672_v37, %s3833_s14  ;;  %3688 = vrot.lane.b32.xlu1 %v3687_v3, %s3832_s28 }
 0x285   :  { %3683 = vrot.lane.b32.xlu0 %v3682_v62, %s3832_s28  ;;  %3698 = vrot.lane.b32.xlu1 %v3697_v61, %s3831_s20  ;;  %v1391_v61 = vld [vmem:[#allocation2 + $0x3c0] sm:$0xff] }
 0x289   :  { %3693 = vrot.lane.b32.xlu0 %v3692_v33, %s3831_s20  ;;  %3708 = vrot.lane.b32.xlu1 %v3707_v49, %s3833_s14 }
 0x28d   :  { %3703 = vrot.lane.b32.xlu0 %v3702_v10, %s3833_s14  ;;  %3718 = vrot.lane.b32.xlu1 %v3717_v29, %s3832_s28  ;;  %v1458_v29 = vld [vmem:[#allocation2 + $0x21] sm:$0xff] }
 0x291   :  { %3713 = vrot.lane.b32.xlu0 %v3712_v60, %s3832_s28  ;;  %3728 = vrot.lane.b32.xlu1 %v3727_v21, %s3831_s20  ;;  %v6802_v60 = vld [vmem:[#allocation21_spill] sm:$0xff] }
 0x295   :  { %3723 = vrot.lane.b32.xlu0 %v3722_v48, %s3831_s20  ;;  %3738 = vrot.lane.b32.xlu1 %v3737_v56, %s3833_s14 }
 0x299   :  { %3733 = vrot.lane.b32.xlu0 %v3732_v28, %s3833_s14  ;;  %3748 = vrot.lane.b32.xlu1 %v3747_v20, %s3832_s28 }
 0x29d   :  { %3743 = vrot.lane.b32.xlu0 %v3742_v42, %s3832_s28  ;;  %3758 = vrot.lane.b32.xlu1 %v3757_v32, %s3831_s20 }
 0x2a1   :  { %3753 = vrot.lane.b32.xlu0 %v3752_v57, %s3831_s20  ;;  %3768 = vrot.lane.b32.xlu1 %v3767_v9, %s3833_s14  ;;  %v3544_v27 = vpop.permute.xlu1 %3543 }
 0x2a2   :  { %v3546_v49 = vunpack.i.h.bf16 %v3544_v27  ;;  %v3545_v12 = vunpack.i.l.bf16 %v3544_v27 }
 0x2a5   :  { %3763 = vrot.lane.b32.xlu0 %v3762_v19, %s3833_s14 }
 0x2af   :  { %v3534_v14 = vpop.permute.xlu0 %3533 }
 0x2b0   :  { %v3536_v58 = vunpack.i.h.bf16 %v3534_v14  ;;  %v3535_v43 = vunpack.i.l.bf16 %v3534_v14 }
 0x2b2   :  { %v1972_v41 = vsel %vm562_vm1, %v1457_v39, %v3535_v43  ;;  %v1973_v48 = vsel %vm562_vm1, %v1458_v29, %v3536_v58 }
 0x2b3   :  { %v1988_v30 = vsel %vm174_vm0, %v1972_v41, %v3545_v12  ;;  %v1989_v32 = vsel %vm174_vm0, %v1973_v48, %v3546_v49 }
 0x2b6   :  { %v3549_v37 = vpop.permute.xlu1 %3548 }
 0x2b7   :  { %v3551_v3 = vunpack.i.h.bf16 %v3549_v37  ;;  %v3550_v62 = vunpack.i.l.bf16 %v3549_v37  ;;  %v3793_v37 = vld [vmem:[%s6629_s4 + $0x80] sm:$0xff]  }
 0x2ba   :  { %v3559_v38 = vpop.permute.xlu1 %3558 }
 0x2bb   :  { %v3561_v10 = vunpack.i.h.bf16 %v3559_v38  ;;  %v3560_v4 = vunpack.i.l.bf16 %v3559_v38 }
 0x2bf   :  { %v3539_v51 = vpop.permute.xlu0 %3538 }
 0x2c0   :  { %v3541_v0 = vunpack.i.h.bf16 %v3539_v51  ;;  %v3540_v33 = vunpack.i.l.bf16 %v3539_v51  ;;  %v3569_v13 = vpop.permute.xlu1 %3568 }
 0x2c1   :  { %v3571_v19 = vunpack.i.h.bf16 %v3569_v13  ;;  %v3570_v27 = vunpack.i.l.bf16 %v3569_v13 }
 0x2c2   :  { %v1924_v21 = vsel %vm562_vm1, %v6802_v60, %v3541_v0  ;;  %v1923_v8 = vsel %vm562_vm1, %v1391_v61, %v3540_v33  ;;  %v6803_v0 = vld [vmem:[#allocation18_spill] sm:$0xff]  ;;  %v1459_v60 = vld [vmem:[#allocation2 + $0x31] sm:$0xff] }
 0x2c3   :  { %v3554_v7 = vpop.permute.xlu0 %3553  ;;  %v1939_v56 = vsel %vm174_vm0, %v1923_v8, %v3550_v62  ;;  %v1940_v25 = vsel %vm174_vm0, %v1924_v21, %v3551_v3  ;;  %v1926_v51 = vsel %vm562_vm1, %v5788_v24, %v3571_v19  ;;  %v1925_v33 = vsel %vm562_vm1, %v6803_v0, %v3570_v27 }
 0x2c4   :  { %v3556_v28 = vunpack.i.h.bf16 %v3554_v7  ;;  %v3555_v5 = vunpack.i.l.bf16 %v3554_v7  ;;  %v1956_v20 = vsel %vm1955_vm3, %v1939_v56, %v3560_v4  ;;  %v1957_v42 = vsel %vm1955_vm3, %v1940_v25, %v3561_v10 }
 0x2c5   :  { %v2020_v57 = vpack.c.bf16 %v1957_v42, %v1956_v20 }
 0x2c6   :  { %v2004_v44 = vsel %vm1955_vm3, %v1988_v30, %v3555_v5  ;;  %v2005_v26 = vsel %vm1955_vm3, %v1989_v32, %v3556_v28 }
 0x2c7   :  { %v3564_v2 = vpop.permute.xlu0 %3563  ;;  %v2021_v9 = vpack.c.bf16 %v2005_v26, %v2004_v44  ;;  %v3579_v14 = vpop.permute.xlu1 %3578 }
 0x2c8   :  { %v3581_v58 = vunpack.i.h.bf16 %v3579_v14  ;;  %v3580_v43 = vunpack.i.l.bf16 %v3579_v14  ;;  %v3566_v62 = vunpack.i.h.bf16 %v3564_v2  ;;  %v3565_v61 = vunpack.i.l.bf16 %v3564_v2 }
 0x2c9   :  { %2244 = vmatprep.mubr.bf16.mxu1 %v2021_v9 }
 0x2ca   :  { %2245 = vmatmul.mubr.bf16.vlgmr.msra.gmra.mxu1 %v2020_v57  ;;  %v1941_v39 = vsel %vm174_vm0, %v1925_v33, %v3580_v43  ;;  %v1942_v29 = vsel %vm174_vm0, %v1926_v51, %v3581_v58  ;;  %v1974_v41 = vsel %vm562_vm1, %v1459_v60, %v3565_v61 }
 0x2cb   :  { %v3574_v3 = vpop.permute.xlu0 %3573  ;;  %3454 = vmatpush3.bf16.msra.mxu1 %v5829_v23  ;;  %v3589_v38 = vpop.permute.xlu1 %3588  ;;  %v1460_v23 = vld [vmem:[#allocation2 + $0x41] sm:$0xff] }
 0x2cc   :  { %3455 = vmatprep.subr.bf16.mxu1 %v3793_v37  ;;  %v3576_v49 = vunpack.i.h.bf16 %v3574_v3  ;;  %v3575_v12 = vunpack.i.l.bf16 %v3574_v3  ;;  %v3591_v10 = vunpack.i.h.bf16 %v3589_v38  ;;  %v3590_v4 = vunpack.i.l.bf16 %v3589_v38  ;;  %v1461_v38 = vld [vmem:[#allocation2 + $0x51] sm:$0xff] }
 0x2cd   :  { %v1975_v48 = vsel %vm562_vm1, %v1460_v23, %v3566_v62 }
 0x2ce   :  { %v1958_v8 = vsel %vm1955_vm3, %v1941_v39, %v3590_v4  ;;  %v1959_v24 = vsel %vm1955_vm3, %v1942_v29, %v3591_v10  ;;  %v1990_v28 = vsel %vm174_vm0, %v1974_v41, %v3575_v12  ;;  %v1991_v5 = vsel %vm174_vm0, %v1975_v48, %v3576_v49  ;;  %v1462_v49 = vld [vmem:[#allocation2 + $0x61] sm:$0xff] }
 0x2cf   :  { %v3584_v21 = vpop.permute.xlu0 %3583  ;;  %3456 = vmatpush3.bf16.msra.mxu1 %v3793_v37  ;;  %v3599_v25 = vpop.permute.xlu1 %3598  ;;  %v2023_v42 = vpack.c.bf16 %v1959_v24, %v1958_v8 }
 0x2d0   :  { %v3586_v7 = vunpack.i.h.bf16 %v3584_v21  ;;  %v3585_v56 = vunpack.i.l.bf16 %v3584_v21  ;;  %v3601_v44 = vunpack.i.h.bf16 %v3599_v25  ;;  %v3600_v26 = vunpack.i.l.bf16 %v3599_v25 }
 0x2d2   :  { %v2006_v13 = vsel %vm1955_vm3, %v1990_v28, %v3585_v56  ;;  %v2007_v20 = vsel %vm1955_vm3, %v1991_v5, %v3586_v7  ;;  %v1928_v37 = vsel %vm562_vm1, %v5816_v11, %v3601_v44  ;;  %v1927_v58 = vsel %vm562_vm1, %v5790_v6, %v3600_v26 }
 0x2d3   :  { %v3594_v30 = vpop.permute.xlu0 %3593  ;;  %v2024_v32 = vpack.c.bf16 %v2007_v20, %v2006_v13  ;;  %v3609_v57 = vpop.permute.xlu1 %3608 }
 0x2d4   :  { %v3611_v2 = vunpack.i.h.bf16 %v3609_v57  ;;  %v3610_v9 = vunpack.i.l.bf16 %v3609_v57  ;;  %v3596_v27 = vunpack.i.h.bf16 %v3594_v30  ;;  %v3595_v14 = vunpack.i.l.bf16 %v3594_v30 }
 0x2d5   :  { %2252 = vmatprep.mubr.bf16.mxu1 %v2024_v32 }
 0x2d6   :  { %2253 = vmatmul.mubr.bf16.gmra.mxu1 %v2023_v42  ;;  %v1943_v0 = vsel %vm174_vm0, %v1927_v58, %v3610_v9  ;;  %v1944_v33 = vsel %vm174_vm0, %v1928_v37, %v3611_v2  ;;  %v1976_v11 = vsel %vm562_vm1, %v1461_v38, %v3595_v14  ;;  %v1977_v6 = vsel %vm562_vm1, %v1462_v49, %v3596_v27  ;;  %v1463_v37 = vld [vmem:[#allocation2 + $0x71] sm:$0xff]  ;;  %v1464_v58 = vld [vmem:[#allocation2 + $0x81] sm:$0xff] }
 0x2d7   :  { %v3604_v19 = vpop.permute.xlu0 %3603  ;;  %v3619_v43 = vpop.permute.xlu1 %3618 }
 0x2d8   :  { %v3606_v3 = vunpack.i.h.bf16 %v3604_v19  ;;  %v3605_v62 = vunpack.i.l.bf16 %v3604_v19  ;;  %v3621_v61 = vunpack.i.h.bf16 %v3619_v43  ;;  %v3620_v51 = vunpack.i.l.bf16 %v3619_v43 }
 0x2da   :  { %v1960_v10 = vsel %vm1955_vm3, %v1943_v0, %v3620_v51  ;;  %v1961_v4 = vsel %vm1955_vm3, %v1944_v33, %v3621_v61  ;;  %v1992_v23 = vsel %vm174_vm0, %v1976_v11, %v3605_v62  ;;  %v1993_v21 = vsel %vm174_vm0, %v1977_v6, %v3606_v3 }
 0x2db   :  { %v3614_v12 = vpop.permute.xlu0 %3613  ;;  %v3629_v60 = vpop.permute.xlu1 %3628  ;;  %v2026_v41 = vpack.c.bf16 %v1961_v4, %v1960_v10 }
 0x2dc   :  { %v3616_v39 = vunpack.i.h.bf16 %v3614_v12  ;;  %v3615_v29 = vunpack.i.l.bf16 %v3614_v12  ;;  %v3631_v56 = vunpack.i.h.bf16 %v3629_v60  ;;  %v3630_v25 = vunpack.i.l.bf16 %v3629_v60  ;;  %v1399_v60 = vld [vmem:[#allocation2 + $0x460] sm:$0xff] }
 0x2de   :  { %v2008_v8 = vsel %vm1955_vm3, %v1992_v23, %v3615_v29  ;;  %v2009_v24 = vsel %vm1955_vm3, %v1993_v21, %v3616_v39  ;;  %v1930_v32 = vsel %vm562_vm1, %v5838_v31, %v3631_v56  ;;  %v1929_v44 = vsel %vm562_vm1, %v5818_v54, %v3630_v25 }
 0x2df   :  { %v3624_v48 = vpop.permute.xlu0 %3623  ;;  %v2027_v7 = vpack.c.bf16 %v2009_v24, %v2008_v8  ;;  %v3639_v28 = vpop.permute.xlu1 %3638 }
 0x2e0   :  { %v3641_v5 = vunpack.i.h.bf16 %v3639_v28  ;;  %v3640_v13 = vunpack.i.l.bf16 %v3639_v28  ;;  %v3626_v42 = vunpack.i.h.bf16 %v3624_v48  ;;  %v3625_v30 = vunpack.i.l.bf16 %v3624_v48 }
 0x2e1   :  { %2260 = vmatprep.mubr.bf16.mxu1 %v2027_v7 }
 0x2e2   :  { %2261 = vmatmul.mubr.bf16.gmra.mxu1 %v2026_v41  ;;  %v1945_v27 = vsel %vm174_vm0, %v1929_v44, %v3640_v13  ;;  %v1946_v14 = vsel %vm174_vm0, %v1930_v32, %v3641_v5  ;;  %v1978_v31 = vsel %vm562_vm1, %v1463_v37, %v3625_v30  ;;  %v1979_v54 = vsel %vm562_vm1, %v1464_v58, %v3626_v42  ;;  %v1465_v30 = vld [vmem:[#allocation2 + $0xb1] sm:$0xff]  ;;  %v1466_v32 = vld [vmem:[#allocation2 + $0xc1] sm:$0xff] }
 0x2e3   :  { %v3634_v20 = vpop.permute.xlu0 %3633  ;;  %v3649_v26 = vpop.permute.xlu1 %3648 }
 0x2e4   :  { %v3636_v57 = vunpack.i.h.bf16 %v3634_v20  ;;  %v3635_v2 = vunpack.i.l.bf16 %v3634_v20  ;;  %v3651_v9 = vunpack.i.h.bf16 %v3649_v26  ;;  %v3650_v19 = vunpack.i.l.bf16 %v3649_v26 }
 0x2e6   :  { %v1962_v3 = vsel %vm1955_vm3, %v1945_v27, %v3650_v19  ;;  %v1963_v62 = vsel %vm1955_vm3, %v1946_v14, %v3651_v9  ;;  %v1994_v33 = vsel %vm174_vm0, %v1978_v31, %v3635_v2  ;;  %v1995_v38 = vsel %vm174_vm0, %v1979_v54, %v3636_v57 }
 0x2e7   :  { %v3644_v43 = vpop.permute.xlu0 %3643  ;;  %v3659_v0 = vpop.permute.xlu1 %3658  ;;  %v2029_v10 = vpack.c.bf16 %v1963_v62, %v1962_v3 }
 0x2e8   :  { %v3646_v61 = vunpack.i.h.bf16 %v3644_v43  ;;  %v3645_v51 = vunpack.i.l.bf16 %v3644_v43  ;;  %v3661_v6 = vunpack.i.h.bf16 %v3659_v0  ;;  %v3660_v39 = vunpack.i.l.bf16 %v3659_v0 }
 0x2ea   :  { %v2010_v49 = vsel %vm1955_vm3, %v1994_v33, %v3645_v51  ;;  %v2011_v12 = vsel %vm1955_vm3, %v1995_v38, %v3646_v61  ;;  %v1932_v48 = vsel %vm562_vm1, %v5849_v59, %v3661_v6  ;;  %v1931_v7 = vsel %vm562_vm1, %v1399_v60, %v3660_v39 }
 0x2eb   :  { %v3654_v4 = vpop.permute.xlu0 %3653  ;;  %v2030_v11 = vpack.c.bf16 %v2011_v12, %v2010_v49  ;;  %v3669_v29 = vpop.permute.xlu1 %3668 }
 0x2ec   :  { %v3671_v23 = vunpack.i.h.bf16 %v3669_v29  ;;  %v3670_v21 = vunpack.i.l.bf16 %v3669_v29  ;;  %v3656_v24 = vunpack.i.h.bf16 %v3654_v4  ;;  %v3655_v41 = vunpack.i.l.bf16 %v3654_v4 }
 0x2ed   :  { %2268 = vmatprep.mubr.bf16.mxu1 %v2030_v11 }
 0x2ee   :  { %2269 = vmatmul.mubr.bf16.gmra.mxu1 %v2029_v10  ;;  %v1947_v20 = vsel %vm174_vm0, %v1931_v7, %v3670_v21  ;;  %v1948_v42 = vsel %vm174_vm0, %v1932_v48, %v3671_v23  ;;  %v1980_v59 = vsel %vm562_vm1, %v1465_v30, %v3655_v41  ;;  %v1981_v2 = vsel %vm562_vm1, %v1466_v32, %v3656_v24  ;;  %v1468_v24 = vld [vmem:[#allocation2 + $0xe1] sm:$0xff] }
 0x2ef   :  { %v3664_v8 = vpop.permute.xlu0 %3663  ;;  %v3679_v56 = vpop.permute.xlu1 %3678 }
 0x2f0   :  { %v3666_v25 = vunpack.i.h.bf16 %v3664_v8  ;;  %v3665_v28 = vunpack.i.l.bf16 %v3664_v8  ;;  %v3681_v5 = vunpack.i.h.bf16 %v3679_v56  ;;  %v3680_v13 = vunpack.i.l.bf16 %v3679_v56  ;;  %v1467_v8 = vld [vmem:[#allocation2 + $0xd1] sm:$0xff] }
 0x2f2   :  { %v1964_v26 = vsel %vm1955_vm3, %v1947_v20, %v3680_v13  ;;  %v1965_v57 = vsel %vm1955_vm3, %v1948_v42, %v3681_v5  ;;  %v1996_v14 = vsel %vm174_vm0, %v1980_v59, %v3665_v28  ;;  %v1997_v37 = vsel %vm174_vm0, %v1981_v2, %v3666_v25 }
 0x2f3   :  { %v3674_v44 = vpop.permute.xlu0 %3673  ;;  %v3689_v27 = vpop.permute.xlu1 %3688  ;;  %v2032_v3 = vpack.c.bf16 %v1965_v57, %v1964_v26 }
 0x2f4   :  { %v3676_v9 = vunpack.i.h.bf16 %v3674_v44  ;;  %v3675_v19 = vunpack.i.l.bf16 %v3674_v44  ;;  %v3691_v54 = vunpack.i.h.bf16 %v3689_v27  ;;  %v3690_v61 = vunpack.i.l.bf16 %v3689_v27 }
 0x2f6   :  { %v2012_v58 = vsel %vm1955_vm3, %v1996_v14, %v3675_v19  ;;  %v2013_v43 = vsel %vm1955_vm3, %v1997_v37, %v3676_v9  ;;  %v1934_v10 = vsel %vm562_vm1, %v5862_v17, %v3691_v54  ;;  %v1933_v4 = vsel %vm562_vm1, %v5851_v45, %v3690_v61 }
 0x2f7   :  { %v3684_v62 = vpop.permute.xlu0 %3683  ;;  %v2033_v31 = vpack.c.bf16 %v2013_v43, %v2012_v58  ;;  %v3699_v51 = vpop.permute.xlu1 %3698 }
 0x2f8   :  { %v3701_v0 = vunpack.i.h.bf16 %v3699_v51  ;;  %v3700_v33 = vunpack.i.l.bf16 %v3699_v51  ;;  %v3686_v49 = vunpack.i.h.bf16 %v3684_v62  ;;  %v3685_v12 = vunpack.i.l.bf16 %v3684_v62 }
 0x2f9   :  { %2276 = vmatprep.mubr.bf16.mxu1 %v2033_v31 }
 0x2fa   :  { %2277 = vmatmul.mubr.bf16.gmra.mxu1 %v2032_v3  ;;  %v1949_v23 = vsel %vm174_vm0, %v1933_v4, %v3700_v33  ;;  %v1950_v21 = vsel %vm174_vm0, %v1934_v10, %v3701_v0  ;;  %v1982_v17 = vsel %vm562_vm1, %v1467_v8, %v3685_v12  ;;  %v1983_v45 = vsel %vm562_vm1, %v1468_v24, %v3686_v49  ;;  %v1469_v0 = vld [vmem:[#allocation2 + $0xf1] sm:$0xff]  ;;  %v1470_v33 = vld [vmem:[#allocation2 + $0x101] sm:$0xff] }
 0x2fb   :  { %v3694_v38 = vpop.permute.xlu0 %3693  ;;  %v3709_v11 = vpop.permute.xlu1 %3708 }
 0x2fc   :  { %v3696_v6 = vunpack.i.h.bf16 %v3694_v38  ;;  %v3695_v39 = vunpack.i.l.bf16 %v3694_v38  ;;  %v3711_v29 = vunpack.i.h.bf16 %v3709_v11  ;;  %v3710_v60 = vunpack.i.l.bf16 %v3709_v11 }
 0x2fe   :  { %v1966_v48 = vsel %vm1955_vm3, %v1949_v23, %v3710_v60  ;;  %v1967_v7 = vsel %vm1955_vm3, %v1950_v21, %v3711_v29  ;;  %v1998_v5 = vsel %vm174_vm0, %v1982_v17, %v3695_v39  ;;  %v1999_v13 = vsel %vm174_vm0, %v1983_v45, %v3696_v6 }
 0x2ff   :  { %v3704_v41 = vpop.permute.xlu0 %3703  ;;  %v3719_v28 = vpop.permute.xlu1 %3718  ;;  %v2035_v30 = vpack.c.bf16 %v1967_v7, %v1966_v48 }
 0x300   :  { %v3706_v56 = vunpack.i.h.bf16 %v3704_v41  ;;  %v3705_v25 = vunpack.i.l.bf16 %v3704_v41  ;;  %v3721_v26 = vunpack.i.h.bf16 %v3719_v28  ;;  %v3720_v57 = vunpack.i.l.bf16 %v3719_v28 }
 0x302   :  { %v2014_v20 = vsel %vm1955_vm3, %v1998_v5, %v3705_v25  ;;  %v2015_v42 = vsel %vm1955_vm3, %v1999_v13, %v3706_v56  ;;  %v1936_v37 = vsel %vm562_vm1, %v5876_v52, %v3721_v26  ;;  %v1935_v58 = vsel %vm562_vm1, %v5864_v36, %v3720_v57  ;;  %v1471_v57 = vld [vmem:[#allocation2 + $0x111] sm:$0xff] }
 0x303   :  { %v3714_v32 = vpop.permute.xlu0 %3713  ;;  %v2036_v44 = vpack.c.bf16 %v2015_v42, %v2014_v20  ;;  %v3729_v59 = vpop.permute.xlu1 %3728 }
 0x304   :  { %v3731_v2 = vunpack.i.h.bf16 %v3729_v59  ;;  %v3730_v9 = vunpack.i.l.bf16 %v3729_v59  ;;  %v3716_v27 = vunpack.i.h.bf16 %v3714_v32  ;;  %v3715_v14 = vunpack.i.l.bf16 %v3714_v32  ;;  %v1472_v59 = vld [vmem:[#allocation2 + $0x121] sm:$0xff] }
 0x305   :  { %2284 = vmatprep.mubr.bf16.mxu1 %v2036_v44 }
 0x306   :  { %2285 = vmatmul.mubr.bf16.gmra.mxu1 %v2035_v30  ;;  %v1951_v61 = vsel %vm174_vm0, %v1935_v58, %v3730_v9  ;;  %v1952_v51 = vsel %vm174_vm0, %v1936_v37, %v3731_v2  ;;  %v1984_v52 = vsel %vm562_vm1, %v1469_v0, %v3715_v14  ;;  %v1985_v36 = vsel %vm562_vm1, %v1470_v33, %v3716_v27  ;;  %v1525_v0 = vld [vmem:[#allocation2 + $0x3f1] sm:$0xff]  ;;  %v1526_v33 = vld [vmem:[#allocation2 + $0x401] sm:$0xff] }
 0x307   :  { %v3724_v19 = vpop.permute.xlu0 %3723  ;;  %v3739_v43 = vpop.permute.xlu1 %3738 }
 0x308   :  { %v3726_v3 = vunpack.i.h.bf16 %v3724_v19  ;;  %v3725_v62 = vunpack.i.l.bf16 %v3724_v19  ;;  %v3741_v31 = vunpack.i.h.bf16 %v3739_v43  ;;  %v3740_v54 = vunpack.i.l.bf16 %v3739_v43 }
 0x30a   :  { %v1968_v49 = vsel %vm1955_vm3, %v1951_v61, %v3740_v54  ;;  %v1969_v12 = vsel %vm1955_vm3, %v1952_v51, %v3741_v31  ;;  %v2000_v6 = vsel %vm174_vm0, %v1984_v52, %v3725_v62  ;;  %v2001_v39 = vsel %vm174_vm0, %v1985_v36, %v3726_v3  ;;  %v1523_v31 = vld [vmem:[#allocation2 + $0x3d1] sm:$0xff]  ;;  %v1524_v54 = vld [vmem:[#allocation2 + $0x3e1] sm:$0xff] }
 0x30b   :  { %v3734_v38 = vpop.permute.xlu0 %3733  ;;  %v3749_v11 = vpop.permute.xlu1 %3748  ;;  %v2038_v23 = vpack.c.bf16 %v1969_v12, %v1968_v49  ;;  %v2022_v51 = vpack.c.bf16 %v1524_v54, %v1523_v31  ;;  %v2025_v49 = vpack.c.bf16 %v1526_v33, %v1525_v0  ;;  %v1530_v52 = vld [vmem:[#allocation2 + $0x441] sm:$0xff] }
 0x30c   :  { %v3736_v10 = vunpack.i.h.bf16 %v3734_v38  ;;  %v3735_v4 = vunpack.i.l.bf16 %v3734_v38  ;;  %v3751_v24 = vunpack.i.h.bf16 %v3749_v11  ;;  %v3750_v41 = vunpack.i.l.bf16 %v3749_v11  ;;  %v1527_v38 = vld [vmem:[#allocation2 + $0x411] sm:$0xff] }
 0x30d   :  { %v2028_v12 = vpack.c.bf16 %v5833_v55, %v1527_v38  ;;  %v2031_v36 = vpack.c.bf16 %v1530_v52, %v5835_v18  ;;  %v1538_v55 = vld [vmem:[#allocation2 + $0x4e1] sm:$0xff] }
 0x30e   :  { %v2016_v29 = vsel %vm1955_vm3, %v2000_v6, %v3735_v4  ;;  %v2017_v60 = vsel %vm1955_vm3, %v2001_v39, %v3736_v10  ;;  %v1938_v28 = vsel %vm562_vm1, %v5892_v16, %v3751_v24  ;;  %v1937_v5 = vsel %vm562_vm1, %v5878_v35, %v3750_v41 }
 0x30f   :  { %v3744_v21 = vpop.permute.xlu0 %3743  ;;  %v2039_v8 = vpack.c.bf16 %v2017_v60, %v2016_v29  ;;  %v3759_v48 = vpop.permute.xlu1 %3758  ;;  %v2043_v18 = vpack.c.bf16 %v1538_v55, %v5889_v47 }
 0x310   :  { %v3761_v7 = vunpack.i.h.bf16 %v3759_v48  ;;  %v3760_v17 = vunpack.i.l.bf16 %v3759_v48  ;;  %v3746_v56 = vunpack.i.h.bf16 %v3744_v21  ;;  %v3745_v25 = vunpack.i.l.bf16 %v3744_v21 }
 0x311   :  { %2292 = vmatprep.mubr.bf16.mxu1 %v2039_v8 }
 0x312   :  { %2293 = vmatmul.mubr.bf16.gmra.mxu1 %v2038_v23  ;;  %v1953_v44 = vsel %vm174_vm0, %v1937_v5, %v3760_v17  ;;  %v1954_v26 = vsel %vm174_vm0, %v1938_v28, %v3761_v7  ;;  %v1986_v16 = vsel %vm562_vm1, %v1471_v57, %v3745_v25  ;;  %v1987_v35 = vsel %vm562_vm1, %v1472_v59, %v3746_v56  ;;  %v6083_v57 = vld [vmem:[%s6635_s10 + $0x8] sm:$0xff]  }
 0x313   :  { %v3754_v45 = vpop.permute.xlu0 %3753  ;;  %v3769_v13 = vpop.permute.xlu1 %3768  ;;  %v3797_v59 = vld [vmem:[%s6632_s7 + $0x8] sm:$0xff]  }
 0x314   :  { %v3756_v20 = vunpack.i.h.bf16 %v3754_v45  ;;  %v3755_v42 = vunpack.i.l.bf16 %v3754_v45  ;;  %v3771_v30 = vunpack.i.h.bf16 %v3769_v13  ;;  %v3770_v32 = vunpack.i.l.bf16 %v3769_v13  ;;  %3473 = vmatprep.subr.bf16.mxu1 %v3797_v59 }
 0x316   :  { %v1970_v9 = vsel %vm1955_vm3, %v1953_v44, %v3770_v32  ;;  %v1971_v19 = vsel %vm1955_vm3, %v1954_v26, %v3771_v30  ;;  %v2002_v37 = vsel %vm174_vm0, %v1986_v16, %v3755_v42  ;;  %v2003_v58 = vsel %vm174_vm0, %v1987_v35, %v3756_v20  ;;  %v6078_v26 = vld [vmem:[%s6635_s10 + $0x10] sm:$0xff]  }
 0x317   :  { %v3764_v2 = vpop.permute.xlu0 %3763  ;;  %v2041_v62 = vpack.c.bf16 %v1971_v19, %v1970_v9  ;;  %v3799_v9 = vld [vmem:[%s6632_s7] sm:$0xff]   ;;  %3495 = vmatprep.subr.bf16.mxu0 %v6078_v26 }
 0x318   :  { %v3766_v27 = vunpack.i.h.bf16 %v3764_v2  ;;  %v3765_v14 = vunpack.i.l.bf16 %v3764_v2  ;;  %3496 = vmatpush3.bf16.msra.mxu0 %v6078_v26 }
 0x319   :  { %3497 = vmatprep.subr.bf16.mxu0 %v6083_v57 }
 0x31a   :  { %v2018_v43 = vsel %vm1955_vm3, %v2002_v37, %v3765_v14  ;;  %v2019_v3 = vsel %vm1955_vm3, %v2003_v58, %v3766_v27 }
 0x31b   :  { %v2042_v61 = vpack.c.bf16 %v2019_v3, %v2018_v43  ;;  %v6103_v43 = vld [vmem:[%s6635_s10] sm:$0xff]  }
 0x31c   :  { %3498 = vmatpush3.bf16.msra.mxu0 %v6083_v57 }
 0x31d   :  { %2300 = vmatprep.mubr.bf16.mxu1 %v2042_v61  ;;  %3499 = vmatprep.subr.bf16.mxu0 %v6103_v43 }
 0x31e   :  { %2301 = vmatmul.mubr.bf16.gmra.mxu1 %v2041_v62 }
 0x31f   :  { %3457 = vmatprep.mubr.msk.bf16.mxu1 %vm562_vm1, %v2022_v51 }
 0x320   :  { %3500 = vmatpush3.bf16.msra.mxu0 %v6103_v43 }
 0x326   :  { %3458 = vmatmul.mubr.msk.bf16.vlgmr.msra.gmra.mxu1 %vm562_vm1, %v2025_v49 }
 0x327   :  { %3461 = vmatprep.mubr.msk.bf16.mxu1 %vm562_vm1, %v2028_v12  ;;  %3474 = vmatpush3.bf16.msra.mxu1 %v3797_v59 }
 0x328   :  { %3475 = vmatprep.subr.bf16.mxu1 %v3799_v9 }
 0x32b   :  { %3476 = vmatpush3.bf16.msra.mxu1 %v3799_v9 }
 0x32c   :  { %3517 = vmatprep.subr.bf16.mxu1 %v6039_v63 }
 0x32e   :  { %3462 = vmatmul.mubr.msk.bf16.gmra.mxu1 %vm562_vm1, %v2031_v36 }
 0x32f   :  { %3465 = vmatprep.mubr.msk.bf16.mxu1 %vm562_vm1, %v2034_v40 }
 0x336   :  { %3466 = vmatmul.mubr.msk.bf16.gmra.mxu1 %vm562_vm1, %v2037_v46 }
 0x337   :  { %3469 = vmatprep.mubr.msk.bf16.mxu1 %vm562_vm1, %v2040_v15 }
 0x33e   :  { %3470 = vmatmul.mubr.msk.bf16.gmra.mxu1 %vm562_vm1, %v2043_v18 }
 0x38a   :  { %v3301_v22 = vpop.f32.mrf.mxu1 }
 0x38c   :  { %v3302_v34 = vpop.f32.mrf.mxu1 }
 0x38d   :  { %v3303_v40 = vadd.f32 %v3302_v34, %v3301_v22 }
 0x38e   :  { %v3304_v50 = vpop.f32.mrf.mxu1 }
 0x390   :  { %v3305_v53 = vpop.f32.mrf.mxu1 }
 0x391   :  { %v3306_v19 = vadd.f32 %v3305_v53, %v3304_v50 }
 0x396   :  { %v3307_v1 = vpop.f32.mrf.mxu1 }
 0x398   :  { %v3308_v46 = vpop.f32.mrf.mxu1 }
 0x399   :  { %v3309_v16 = vadd.f32 %v3308_v46, %v3307_v1 }
 0x39a   :  { %v3310_v15 = vpop.f32.mrf.mxu1 }
 0x39c   :  { %v3311_v47 = vpop.f32.mrf.mxu1 }
 0x39d   :  { %v3312_v14 = vadd.f32 %v3311_v47, %v3310_v15 }
 0x3a2   :  { %v3313_v10 = vpop.f32.mrf.mxu1 }
 0x3a4   :  { %v3314_v4 = vpop.f32.mrf.mxu1 }
 0x3a5   :  { %v3315_v62 = vadd.f32 %v3314_v4, %v3313_v10  ;;  %v6804_v4 = vld [vmem:[#allocation6_spill] sm:$0xff] }
 0x3a6   :  { %v3316_v11 = vpop.f32.mrf.mxu1  ;;  %3502 = vmatmul.mubr.msk.bf16.vlgmr.msra.gmra.mxu0 %vm174_vm0, %v6804_v4 }
 0x3a8   :  { %v3317_v6 = vpop.f32.mrf.mxu1 }
 0x3a9   :  { %v3318_v52 = vadd.f32 %v3317_v6, %v3316_v11 }
 0x3ae   :  { %v3319_v39 = vpop.f32.mrf.mxu1 }
 0x3b0   :  { %v3320_v29 = vpop.f32.mrf.mxu1 }
 0x3b1   :  { %v3321_v36 = vadd.f32 %v3320_v29, %v3319_v39  ;;  %v6805_v39 = vld [vmem:[#allocation7_spill] sm:$0xff] }
 0x3b2   :  { %v3322_v60 = vpop.f32.mrf.mxu1  ;;  %3505 = vmatprep.mubr.msk.bf16.mxu0 %vm174_vm0, %v6805_v39 }
 0x3b4   :  { %v3323_v23 = vpop.f32.mrf.mxu1 }
 0x3b5   :  { %v3324_v34 = vadd.f32 %v3323_v23, %v3322_v60 }
 0x3ba   :  { %v6043_v21 = vpop.f32.mrf.mxu1 }
 0x3bc   :  { %v6045_v8 = vpop.f32.mrf.mxu1 }
 0x3bd   :  { %v3327_v15 = vadd.f32 %v6045_v8, %v6043_v21 }
 0x3be   :  { %v6047_v24 = vpop.f32.mrf.mxu1 }
 0x3c0   :  { %v6049_v41 = vpop.f32.mrf.mxu1 }
 0x3c1   :  { %v3330_v8 = vadd.f32 %v6049_v41, %v6047_v24 }
 0x3c6   :  { %v6051_v48 = vpop.f32.mrf.mxu1 }
 0x3c8   :  { %v6053_v7 = vpop.f32.mrf.mxu1 }
 0x3ca   :  { %v6055_v17 = vpop.f32.mrf.mxu1 }
 0x3cc   :  { %v6057_v45 = vpop.f32.mrf.mxu1 }
 0x3cd   :  { %v3336_v9 = vadd.f32 %v6057_v45, %v6055_v17 }
 0x3d2   :  { %v6059_v56 = vpop.f32.mrf.mxu1 }
 0x3d4   :  { %v6061_v25 = vpop.f32.mrf.mxu1 }
 0x3d5   :  { %v3339_v41 = vadd.f32 %v6061_v25, %v6059_v56 }
 0x3d6   :  { %v6063_v28 = vpop.f32.mrf.mxu1 }
 0x3d8   :  { %v6065_v5 = vpop.f32.mrf.mxu1 }
 0x3d9   :  { %v3342_v25 = vadd.f32 %v6065_v5, %v6063_v28  ;;  %v6808_v5 = vld [vmem:[#allocation10_spill] sm:$0xff] }
 0x3de   :  { %v6067_v13 = vpop.f32.mrf.mxu1 }
 0x3e0   :  { %v6069_v20 = vpop.f32.mrf.mxu1 }
 0x3e2   :  { %v6071_v42 = vpop.f32.mrf.mxu1 }
 0x3e4   :  { %v6073_v30 = vpop.f32.mrf.mxu1 }
 0x3e6   :  { %v3459_v32 = vpop.f32.mrf.mxu1 }
 0x3e7   :  { %v6095_v37 = vadd.f32 %v3459_v32, %v3309_v16  ;;  %v3333_v32 = vadd.f32 %v6053_v7, %v6051_v48 }
 0x3e8   :  { %v2343_v44 = vpop.f32.mrf.mxu1 }
 0x3e9   :  { %v6091_v35 = vadd.f32 %v3303_v40, %v2343_v44  ;;  %v2411_v33 = vsel %vm562_vm1, %v6095_v37, 0.0 }
 0x3ea   :  { %v3460_v2 = vpop.f32.mrf.mxu1 }
 0x3eb   :  { %v2408_v31 = vsel %vm562_vm1, %v6091_v35, 0.0  ;;  %v6107_v54 = vadd.f32 %v3460_v2, %v3312_v14 }
 0x3ec   :  { %v2346_v27 = vpop.f32.mrf.mxu1 }
 0x3ed   :  { %v6097_v58 = vadd.f32 %v3306_v19, %v2346_v27  ;;  %v2413_v55 = vsel %vm562_vm1, %v6107_v54, 0.0 }
 0x3ee   :  { %v3463_v3 = vpop.f32.mrf.mxu1 }
 0x3ef   :  { %v2409_v61 = vsel %vm562_vm1, %v6097_v58, 0.0  ;;  %v6121_v40 = vadd.f32 %v3463_v3, %v3321_v36  ;;  %v6806_v3 = vld [vmem:[#allocation8_spill] sm:$0xff] }
 0x3f0   :  { %v2410_v51 = vadd.f32 %v2409_v61, %v2408_v31  ;;  %v2359_v0 = vpop.f32.mrf.mxu1  ;;  %3506 = vmatmul.mubr.msk.bf16.gmra.mxu0 %vm174_vm0, %v6806_v3 }
 0x3f1   :  { %v6114_v38 = vadd.f32 %v3315_v62, %v2359_v0  ;;  %v2419_v29 = vsel %vm562_vm1, %v6121_v40, 0.0  ;;  %v6807_v62 = vld [vmem:[#allocation9_spill] sm:$0xff]  ;;  %v3345_v0 = vadd.f32 %v6069_v20, %v6067_v13 }
 0x3f2   :  { %v2412_v49 = vadd.f32 %v2411_v33, %v2410_v51  ;;  %v3464_v12 = vpop.f32.mrf.mxu1  ;;  %3509 = vmatprep.mubr.msk.bf16.mxu0 %vm174_vm0, %v6807_v62 }
 0x3f3   :  { %v2415_v50 = vsel %vm562_vm1, %v6114_v38, 0.0  ;;  %v6129_v47 = vadd.f32 %v3464_v12, %v3324_v34 }
 0x3f4   :  { %v2414_v18 = vadd.f32 %v2413_v55, %v2412_v49  ;;  %v2362_v22 = vpop.f32.mrf.mxu1 }
 0x3f5   :  { %v6125_v53 = vadd.f32 %v3318_v52, %v2362_v22  ;;  %v2421_v44 = vsel %vm562_vm1, %v6129_v47, 0.0  ;;  %v3348_v52 = vadd.f32 %v6073_v30, %v6071_v42 }
 0x3f6   :  { %v2416_v1 = vadd.f32 %v2415_v50, %v2414_v18  ;;  %v3467_v46 = vpop.f32.mrf.mxu1 }
 0x3f7   :  { %v2417_v10 = vsel %vm562_vm1, %v6125_v53, 0.0  ;;  %v6149_v19 = vadd.f32 %v3467_v46, %v3333_v32 }
 0x3f8   :  { %v2418_v11 = vadd.f32 %v2417_v10, %v2416_v1  ;;  %v2375_v6 = vpop.f32.mrf.mxu1  ;;  %3510 = vmatmul.mubr.msk.bf16.gmra.mxu0 %vm174_vm0, %v6808_v5 }
 0x3f9   :  { %v6139_v60 = vadd.f32 %v3327_v15, %v2375_v6  ;;  %v2427_v31 = vsel %vm562_vm1, %v6149_v19, 0.0 }
 0x3fa   :  { %v2420_v23 = vadd.f32 %v2419_v29, %v2418_v11  ;;  %v3468_v21 = vpop.f32.mrf.mxu1 }
 0x3fb   :  { %v2423_v16 = vsel %vm562_vm1, %v6139_v60, 0.0  ;;  %v6157_v48 = vadd.f32 %v3468_v21, %v3336_v9 }
 0x3fc   :  { %v2422_v59 = vadd.f32 %v2421_v44, %v2420_v23  ;;  %v2378_v2 = vpop.f32.mrf.mxu1 }
 0x3fd   :  { %v6153_v27 = vadd.f32 %v3330_v8, %v2378_v2  ;;  %v2429_v33 = vsel %vm562_vm1, %v6157_v48, 0.0 }
 0x3fe   :  { %v2424_v14 = vadd.f32 %v2423_v16, %v2422_v59  ;;  %v3471_v24 = vpop.f32.mrf.mxu1 }
 0x3ff   :  { %v2425_v7 = vsel %vm562_vm1, %v6153_v27, 0.0  ;;  %v6177_v36 = vadd.f32 %v3471_v24, %v3345_v0 }
 0x400   :  { %v2426_v17 = vadd.f32 %v2425_v7, %v2424_v14  ;;  %v2391_v45 = vpop.f32.mrf.mxu1 }
 0x401   :  { %v6167_v61 = vadd.f32 %v3339_v41, %v2391_v45  ;;  %v2435_v20 = vsel %vm562_vm1, %v6177_v36, 0.0 }
 0x402   :  { %v2428_v51 = vadd.f32 %v2427_v31, %v2426_v17  ;;  %v3472_v56 = vpop.f32.mrf.mxu1 }
 0x403   :  { %v2431_v55 = vsel %vm562_vm1, %v6167_v61, 0.0  ;;  %v6181_v34 = vadd.f32 %v3472_v56, %v3348_v52 }
 0x404   :  { %v2430_v49 = vadd.f32 %v2429_v33, %v2428_v51  ;;  %v2394_v12 = vpop.f32.mrf.mxu1 }
 0x405   :  { %v2395_v18 = vadd.f32 %v3342_v25, %v2394_v12  ;;  %v2437_v42 = vsel %vm562_vm1, %v6181_v34, 0.0 }
 0x406   :  { %v2432_v22 = vadd.f32 %v2431_v55, %v2430_v49 }
 0x407   :  { %v2433_v28 = vsel %vm562_vm1, %v2395_v18, 0.0 }
 0x408   :  { %v2434_v13 = vadd.f32 %v2433_v28, %v2432_v22 }
 0x40a   :  { %v2436_v50 = vadd.f32 %v2435_v20, %v2434_v13 }
 0x40c   :  { %v2438_v30 = vadd.f32 %v2437_v42, %v2436_v50 }
 0x40e   :  { %v2439_v1 = vrot.slane %v2438_v30, 4 }
 0x410   :  { %v2440_v46 = vadd.f32 %v2439_v1, %v2438_v30 }
 0x412   :  { %v2441_v15 = vrot.slane %v2440_v46, 2 }
 0x414   :  { %v2442_v10 = vadd.f32 %v2441_v15, %v2440_v46 }
 0x416   :  { %v2443_v4 = vrot.slane %v2442_v10, 1 }
 0x418   :  { %v2444_v11 = vadd.f32 %v2443_v4, %v2442_v10 }
 0x41a   :  { %v2445_v6 = vmul.f32 0.0078125, %v2444_v11 }
 0x41c   :  { %v6191_v39 = vsub.f32 %v6091_v35, %v2445_v6  ;;  %v6194_v29 = vsub.f32 %v6097_v58, %v2445_v6  ;;  %v6197_v23 = vsub.f32 %v6095_v37, %v2445_v6  ;;  %v6200_v21 = vsub.f32 %v6107_v54, %v2445_v6 }
 0x41d   :  { %v6207_v44 = vsub.f32 %v6114_v38, %v2445_v6  ;;  %v6212_v58 = vsub.f32 %v6125_v53, %v2445_v6  ;;  %v6219_v9 = vsub.f32 %v6121_v40, %v2445_v6  ;;  %v6225_v53 = vsub.f32 %v6129_v47, %v2445_v6 }
 0x41e   :  { %v2462_v8 = vmul.f32 %v6191_v39, %v6191_v39  ;;  %v2463_v32 = vmul.f32 %v6194_v29, %v6194_v29  ;;  %v2464_v35 = vmul.f32 %v6197_v23, %v6197_v23  ;;  %v2465_v37 = vmul.f32 %v6200_v21, %v6200_v21 }
 0x41f   :  { %v2466_v38 = vmul.f32 %v6207_v44, %v6207_v44  ;;  %v2467_v24 = vmul.f32 %v6212_v58, %v6212_v58  ;;  %v6231_v3 = vsub.f32 %v6139_v60, %v2445_v6  ;;  %v2468_v40 = vmul.f32 %v6219_v9, %v6219_v9 }
 0x420   :  { %v2478_v54 = vsel %vm562_vm1, %v2462_v8, 0.0  ;;  %v2479_v59 = vsel %vm562_vm1, %v2463_v32, 0.0  ;;  %v2481_v16 = vsel %vm562_vm1, %v2464_v35, 0.0  ;;  %v2483_v41 = vsel %vm562_vm1, %v2465_v37, 0.0 }
 0x421   :  { %v2480_v2 = vadd.f32 %v2479_v59, %v2478_v54  ;;  %v2485_v17 = vsel %vm562_vm1, %v2466_v38, 0.0  ;;  %v6237_v62 = vsub.f32 %v6153_v27, %v2445_v6  ;;  %v2469_v47 = vmul.f32 %v6225_v53, %v6225_v53 }
 0x422   :  { %v2487_v31 = vsel %vm562_vm1, %v2467_v24, 0.0  ;;  %v6243_v56 = vsub.f32 %v6149_v19, %v2445_v6  ;;  %v2470_v60 = vmul.f32 %v6231_v3, %v6231_v3  ;;  %v2489_v25 = vsel %vm562_vm1, %v2468_v40, 0.0 }
 0x423   :  { %v2482_v14 = vadd.f32 %v2481_v16, %v2480_v2  ;;  %v6249_v33 = vsub.f32 %v6157_v48, %v2445_v6  ;;  %v2471_v27 = vmul.f32 %v6237_v62, %v6237_v62  ;;  %v2491_v49 = vsel %vm562_vm1, %v2469_v47, 0.0  ;;  %v3224_v47 = vld [vmem:[%s6631_s6] ss:$0 sm:$0xff] }
 0x424   :  { %v6255_v52 = vsub.f32 %v6167_v61, %v2445_v6  ;;  %v2472_v19 = vmul.f32 %v6243_v56, %v6243_v56  ;;  %v2493_v55 = vsel %vm562_vm1, %v2470_v60, 0.0  ;;  %v2459_v28 = vsub.f32 %v2395_v18, %v2445_v6 }
 0x425   :  { %v2484_v7 = vadd.f32 %v2483_v41, %v2482_v14  ;;  %v2473_v48 = vmul.f32 %v6249_v33, %v6249_v33  ;;  %v2495_v5 = vsel %vm562_vm1, %v2471_v27, 0.0  ;;  %v6264_v20 = vsub.f32 %v6177_v36, %v2445_v6  ;;  %v2406_v41 = vld [vmem:[%s6630_s5] sm:$0x1] }
 0x426   :  { %v2474_v61 = vmul.f32 %v6255_v52, %v6255_v52  ;;  %v2497_v50 = vsel %vm562_vm1, %v2472_v19, 0.0  ;;  %v6270_v30 = vsub.f32 %v6181_v34, %v2445_v6  ;;  %v2475_v1 = vmul.f32 %v2459_v28, %v2459_v28 }
 0x427   :  { %v2486_v45 = vadd.f32 %v2485_v17, %v2484_v7  ;;  %v2499_v18 = vsel %vm562_vm1, %v2473_v48, 0.0  ;;  %v2476_v15 = vmul.f32 %v6264_v20, %v6264_v20  ;;  %v6809_v17 = vld [vmem:[#allocation27_spill] sm:$0xff] }
 0x428   :  { %v2501_v10 = vsel %vm562_vm1, %v2474_v61, 0.0  ;;  %v2477_v4 = vmul.f32 %v6270_v30, %v6270_v30  ;;  %v2503_v11 = vsel %vm562_vm1, %v2475_v1, 0.0 }
 0x429   :  { %v2488_v51 = vadd.f32 %v2487_v31, %v2486_v45  ;;  %v2505_v32 = vsel %vm562_vm1, %v2476_v15, 0.0 }
 0x42a   :  { %v2507_v6 = vsel %vm562_vm1, %v2477_v4, 0.0 }
 0x42b   :  { %v2490_v0 = vadd.f32 %v2489_v25, %v2488_v51 }
 0x42d   :  { %v2492_v12 = vadd.f32 %v2491_v49, %v2490_v0 }
 0x42f   :  { %v2494_v22 = vadd.f32 %v2493_v55, %v2492_v12 }
 0x431   :  { %v2496_v13 = vadd.f32 %v2495_v5, %v2494_v22 }
 0x433   :  { %v2498_v42 = vadd.f32 %v2497_v50, %v2496_v13 }
 0x435   :  { %v2500_v46 = vadd.f32 %v2499_v18, %v2498_v42 }
 0x437   :  { %v2502_v36 = vadd.f32 %v2501_v10, %v2500_v46 }
 0x439   :  { %v2504_v8 = vadd.f32 %v2503_v11, %v2502_v36 }
 0x43b   :  { %v2506_v34 = vadd.f32 %v2505_v32, %v2504_v8 }
 0x43d   :  { %v2508_v35 = vadd.f32 %v2507_v6, %v2506_v34 }
 0x43f   :  { %v2509_v37 = vrot.slane %v2508_v35, 4 }
 0x441   :  { %v2510_v54 = vadd.f32 %v2509_v37, %v2508_v35 }
 0x443   :  { %v2511_v59 = vrot.slane %v2510_v54, 2 }
 0x445   :  { %v2512_v2 = vadd.f32 %v2511_v59, %v2510_v54 }
 0x447   :  { %v2513_v38 = vrot.slane %v2512_v2, 1 }
 0x449   :  { %v2514_v16 = vadd.f32 %v2513_v38, %v2512_v2 }
 0x44b   :  { %v2515_v14 = vmul.f32 0.0078125, %v2514_v16 }
 0x44d   :  { %v2516_v24 = vadd.f32 1e-05, %v2515_v14 }
 0x44f   :  { %3802 = vrsqrt.f32 %v2516_v24 }
 0x45c   :  { %v3803_v7 = vpop.eup %3802 }
 0x45d   :  { %v2518_v40 = vmul.f32 %v3803_v7, %v2406_v41  ;;  %v6811_v7 = vld [vmem:[#allocation12_spill] sm:$0xff] }
 0x45f   :  { %v2522_v45 = vrot.slane %v2518_v40, %v6809_v17 }
 0x461   :  { %v2536_v31 = vmul.f32 %v2522_v45, %v2459_v28  ;;  %v2523_v51 = vmul.f32 %v2522_v45, %v6191_v39  ;;  %v2524_v60 = vmul.f32 %v2522_v45, %v6194_v29  ;;  %v2525_v25 = vmul.f32 %v2522_v45, %v6197_v23 }
 0x462   :  { %v2526_v0 = vmul.f32 %v2522_v45, %v6200_v21  ;;  %v2527_v27 = vmul.f32 %v2522_v45, %v6207_v44  ;;  %v2528_v49 = vmul.f32 %v2522_v45, %v6212_v58  ;;  %v2529_v12 = vmul.f32 %v2522_v45, %v6219_v9 }
 0x463   :  { %v2558_v19 = vadd.f32 %v3224_v47, %v2536_v31  ;;  %v2545_v55 = vadd.f32 %v3224_v47, %v2523_v51  ;;  %v2546_v22 = vadd.f32 %v3224_v47, %v2524_v60  ;;  %v2547_v48 = vadd.f32 %v3224_v47, %v2525_v25 }
 0x464   :  { %v2548_v5 = vadd.f32 %v3224_v47, %v2526_v0  ;;  %v2549_v28 = vadd.f32 %v3224_v47, %v2527_v27  ;;  %v2550_v13 = vadd.f32 %v3224_v47, %v2528_v49  ;;  %v2530_v39 = vmul.f32 %v2522_v45, %v6225_v53 }
 0x465   :  { %v2574_v29 = vmax.f32 %v2558_v19, 0.0  ;;  %v2561_v61 = vmax.f32 %v2545_v55, 0.0  ;;  %v2562_v23 = vmax.f32 %v2546_v22, 0.0  ;;  %v2563_v50 = vmax.f32 %v2547_v48, 0.0 }
 0x466   :  { %v2564_v21 = vmax.f32 %v2548_v5, 0.0  ;;  %v2565_v42 = vmax.f32 %v2549_v28, 0.0  ;;  %v2566_v44 = vmax.f32 %v2550_v13, 0.0  ;;  %v2551_v1 = vadd.f32 %v3224_v47, %v2529_v12  ;;  %v6322_v40 = vpop.f32.mrf.mxu0 }
 0x467   :  { %v2577_v58 = vpack.c.bf16 %v2562_v23, %v2561_v61  ;;  %v2552_v18 = vadd.f32 %v3224_v47, %v2530_v39  ;;  %v2531_v9 = vmul.f32 %v2522_v45, %v6231_v3  ;;  %v2532_v46 = vmul.f32 %v2522_v45, %v6237_v62 }
 0x468   :  { %v2578_v15 = vpack.c.bf16 %v2564_v21, %v2563_v50  ;;  %v2579_v10 = vpack.c.bf16 %v2566_v44, %v2565_v42  ;;  %v2567_v36 = vmax.f32 %v2551_v1, 0.0  ;;  %v2533_v4 = vmul.f32 %v2522_v45, %v6243_v56 }
 0x469   :  { %3477 = vmatprep.mubr.msk.bf16.mxu1 %vm562_vm1, %v2577_v58  ;;  %v2568_v53 = vmax.f32 %v2552_v18, 0.0  ;;  %v2553_v11 = vadd.f32 %v3224_v47, %v2531_v9  ;;  %v2554_v8 = vadd.f32 %v3224_v47, %v2532_v46  ;;  %v2534_v32 = vmul.f32 %v2522_v45, %v6249_v33 }
 0x46a   :  { %3478 = vmatmul.mubr.msk.bf16.vlgmr.msra.gmra.mxu1 %vm562_vm1, %v2578_v15  ;;  %v2555_v34 = vadd.f32 %v3224_v47, %v2533_v4  ;;  %v2535_v6 = vmul.f32 %v2522_v45, %v6255_v52  ;;  %v2537_v3 = vmul.f32 %v2522_v45, %v6264_v20  ;;  %v2538_v62 = vmul.f32 %v2522_v45, %v6270_v30  ;;  %v6324_v45 = vpop.f32.mrf.mxu0 }
 0x46b   :  { %3521 = vmatpush3.bf16.msra.mxu1 %v6039_v63  ;;  %3481 = vmatprep.mubr.msk.bf16.mxu1 %vm562_vm1, %v2579_v10  ;;  %v2580_v56 = vpack.c.bf16 %v2568_v53, %v2567_v36  ;;  %v2569_v35 = vmax.f32 %v2553_v11, 0.0  ;;  %v2570_v37 = vmax.f32 %v2554_v8, 0.0  ;;  %v2556_v54 = vadd.f32 %v3224_v47, %v2534_v32 }
 0x46c   :  { %3518 = vmatprep.subr.bf16.mxu1 %v6078_v26  ;;  %v2571_v33 = vmax.f32 %v2555_v34, 0.0  ;;  %v2557_v59 = vadd.f32 %v3224_v47, %v2535_v6  ;;  %v2559_v2 = vadd.f32 %v3224_v47, %v2537_v3  ;;  %v2560_v38 = vadd.f32 %v3224_v47, %v2538_v62 }
 0x46d   :  { %v2581_v16 = vpack.c.bf16 %v2570_v37, %v2569_v35  ;;  %v2572_v52 = vmax.f32 %v2556_v54, 0.0 }
 0x46e   :  { %v2573_v14 = vmax.f32 %v2557_v59, 0.0  ;;  %v2575_v20 = vmax.f32 %v2559_v2, 0.0  ;;  %v2576_v24 = vmax.f32 %v2560_v38, 0.0 }
 0x46f   :  { %3522 = vmatpush3.bf16.msra.mxu1 %v6078_v26  ;;  %v2582_v63 = vpack.c.bf16 %v2572_v52, %v2571_v33  ;;  %v6810_v26 = vld [vmem:[#allocation11_spill] sm:$0xff] }
 0x470   :  { %3519 = vmatprep.subr.bf16.mxu1 %v6083_v57  ;;  %v2583_v30 = vpack.c.bf16 %v2574_v29, %v2573_v14  ;;  %v2584_v41 = vpack.c.bf16 %v2576_v24, %v2575_v20 }
 0x472   :  { %3482 = vmatmul.mubr.msk.bf16.gmra.mxu1 %vm562_vm1, %v2580_v56 }
 0x473   :  { %3485 = vmatprep.mubr.msk.bf16.mxu1 %vm562_vm1, %v2581_v16  ;;  %3523 = vmatpush3.bf16.msra.mxu1 %v6083_v57  ;;  %v6326_v57 = vpop.f32.mrf.mxu0 }
 0x474   :  { %3520 = vmatprep.subr.bf16.mxu1 %v6103_v43 }
 0x475   :  { %v6328_v47 = vpop.f32.mrf.mxu0 }
 0x477   :  { %3524 = vmatpush3.bf16.msra.mxu1 %v6103_v43  ;;  %v2976_v43 = vadd.f32 %v6328_v47, %v6324_v45 }
 0x479   :  { %v2977_v51 = vadd.f32 %v6322_v40, %v2976_v43 }
 0x47a   :  { %3486 = vmatmul.mubr.msk.bf16.gmra.mxu1 %vm562_vm1, %v2582_v63 }
 0x47b   :  { %3489 = vmatprep.mubr.msk.bf16.mxu1 %vm562_vm1, %v2583_v30  ;;  %v2978_v27 = vadd.f32 %v6326_v57, %v2977_v51 }
 0x482   :  { %3490 = vmatmul.mubr.msk.bf16.gmra.mxu1 %vm562_vm1, %v2584_v41 }
 0x483   :  { %3513 = vmatprep.mubr.msk.bf16.mxu1 %vm174_vm0, %v6810_v26 }
 0x48a   :  { %3514 = vmatmul.mubr.msk.bf16.vlgmr.msra.gmra.mxu1 %vm174_vm0, %v6811_v7 }
 0x4b0   :  { %v6332_v31 = vpop.f32.mrf.mxu0 }
 0x4b2   :  { %v6337_v25 = vpop.f32.mrf.mxu0 }
 0x4b3   :  { %v2979_v22 = vadd.f32 %v2978_v27, %v6337_v25 }
 0x4b4   :  { %v6342_v12 = vpop.f32.mrf.mxu0 }
 0x4b6   :  { %v6347_v5 = vpop.f32.mrf.mxu0 }
 0x4b7   :  { %v2980_v29 = vadd.f32 %v2979_v22, %v6347_v5 }
 0x4b8   :  { %v6354_v23 = vpop.f32.mrf.mxu0 }
 0x4b9   :  { %v2981_v42 = vadd.f32 %v6332_v31, %v2980_v29 }
 0x4ba   :  { %v6359_v58 = vpop.f32.mrf.mxu0 }
 0x4bb   :  { %v2982_v46 = vadd.f32 %v6342_v12, %v2981_v42 }
 0x4bc   :  { %v6366_v10 = vpop.f32.mrf.mxu0 }
 0x4bd   :  { %v2983_v11 = vadd.f32 %v2982_v46, %v6359_v58 }
 0x4be   :  { %v6372_v32 = vpop.f32.mrf.mxu0 }
 0x4bf   :  { %v2984_v62 = vadd.f32 %v2983_v11, %v6372_v32 }
 0x4c1   :  { %v2985_v33 = vadd.f32 %v6354_v23, %v2984_v62 }
 0x4c3   :  { %v2986_v14 = vadd.f32 %v6366_v10, %v2985_v33 }
 0x52a   :  { %v6335_v60 = vpop.f32.mrf.mxu1 }
 0x52c   :  { %v2659_v0 = vpop.f32.mrf.mxu1 }
 0x52e   :  { %v6340_v49 = vpop.f32.mrf.mxu1 }
 0x530   :  { %v2662_v19 = vpop.f32.mrf.mxu1 }
 0x531   :  { %v2724_v55 = vadd.f32 %v2662_v19, %v2659_v0 }
 0x532   :  { %v6345_v48 = vpop.f32.mrf.mxu1 }
 0x533   :  { %v2725_v28 = vadd.f32 %v6335_v60, %v2724_v55 }
 0x534   :  { %v2675_v13 = vpop.f32.mrf.mxu1 }
 0x535   :  { %v2726_v39 = vadd.f32 %v6340_v49, %v2725_v28 }
 0x536   :  { %v6352_v61 = vpop.f32.mrf.mxu1 }
 0x537   :  { %v2727_v50 = vadd.f32 %v2726_v39, %v2675_v13 }
 0x538   :  { %v2678_v21 = vpop.f32.mrf.mxu1 }
 0x539   :  { %v2728_v44 = vadd.f32 %v2727_v50, %v2678_v21 }
 0x53a   :  { %v6357_v1 = vpop.f32.mrf.mxu1 }
 0x53b   :  { %v2729_v18 = vadd.f32 %v6345_v48, %v2728_v44 }
 0x53c   :  { %v6362_v9 = vpop.f32.mrf.mxu1 }
 0x53d   :  { %v2730_v15 = vadd.f32 %v6352_v61, %v2729_v18 }
 0x53e   :  { %v6368_v36 = vpop.f32.mrf.mxu1 }
 0x53f   :  { %v2731_v4 = vadd.f32 %v2730_v15, %v6362_v9 }
 0x540   :  { %v2694_v53 = vpop.f32.mrf.mxu1 }
 0x541   :  { %v2732_v8 = vadd.f32 %v2731_v4, %v2694_v53 }
 0x542   :  { %v6374_v34 = vpop.f32.mrf.mxu1 }
 0x543   :  { %v2733_v6 = vadd.f32 %v6357_v1, %v2732_v8 }
 0x544   :  { %v6377_v3 = vpop.f32.mrf.mxu1 }
 0x545   :  { %v2734_v56 = vadd.f32 %v6368_v36, %v2733_v6 }
 0x546   :  { %v6381_v35 = vpop.f32.mrf.mxu1 }
 0x547   :  { %v2735_v37 = vadd.f32 %v2734_v56, %v6377_v3 }
 0x548   :  { %v6384_v54 = vpop.f32.mrf.mxu1 }
 0x549   :  { %v2736_v59 = vadd.f32 %v2735_v37, %v6384_v54 }
 0x54a   :  { %v6388_v2 = vpop.f32.mrf.mxu1 }
 0x54b   :  { %v2737_v38 = vadd.f32 %v6374_v34, %v2736_v59 }
 0x54c   :  { %v6391_v16 = vpop.f32.mrf.mxu1 }
 0x54d   :  { %v2738_v52 = vadd.f32 %v6381_v35, %v2737_v38  ;;  %v2987_v63 = vadd.f32 %v2986_v14, %v6391_v16 }
 0x54e   :  { %v6395_v20 = vpop.f32.mrf.mxu1 }
 0x54f   :  { %v2739_v24 = vrot.slane %v2738_v52, 4 }
 0x550   :  { %v6398_v30 = vpop.f32.mrf.mxu1 }
 0x551   :  { %v2740_v41 = vadd.f32 %v2739_v24, %v2738_v52  ;;  %v2988_v26 = vadd.f32 %v2987_v63, %v6398_v30 }
 0x553   :  { %v2741_v7 = vrot.slane %v2740_v41, 2  ;;  %v2989_v43 = vadd.f32 %v6388_v2, %v2988_v26 }
 0x555   :  { %v2742_v51 = vadd.f32 %v2741_v7, %v2740_v41  ;;  %v2990_v27 = vadd.f32 %v6395_v20, %v2989_v43 }
 0x557   :  { %v2743_v55 = vrot.slane %v2742_v51, 1  ;;  %v2991_v28 = vrot.slane %v2990_v27, 4 }
 0x559   :  { %v2744_v22 = vadd.f32 %v2743_v55, %v2742_v51  ;;  %v2992_v42 = vadd.f32 %v2991_v28, %v2990_v27 }
 0x55b   :  { %v2745_v39 = vmul.f32 0.0078125, %v2744_v22  ;;  %v2993_v15 = vrot.slane %v2992_v42, 2 }
 0x55d   :  { %v6403_v29 = vsub.f32 %v2659_v0, %v2745_v39  ;;  %v6405_v50 = vsub.f32 %v2662_v19, %v2745_v39  ;;  %v6408_v44 = vsub.f32 %v6335_v60, %v2745_v39  ;;  %v6415_v4 = vsub.f32 %v6340_v49, %v2745_v39 }
 0x55e   :  { %v6417_v11 = vsub.f32 %v2675_v13, %v2745_v39  ;;  %v2994_v8 = vadd.f32 %v2993_v15, %v2992_v42  ;;  %v6421_v6 = vsub.f32 %v2678_v21, %v2745_v39  ;;  %v6426_v37 = vsub.f32 %v6345_v48, %v2745_v39 }
 0x55f   :  { %v2762_v18 = vmul.f32 %v6403_v29, %v6403_v29  ;;  %v2763_v46 = vmul.f32 %v6405_v50, %v6405_v50  ;;  %v2764_v0 = vmul.f32 %v6408_v44, %v6408_v44  ;;  %v2765_v60 = vmul.f32 %v6415_v4, %v6415_v4 }
 0x560   :  { %v2995_v56 = vrot.slane %v2994_v8, 1  ;;  %v2766_v49 = vmul.f32 %v6417_v11, %v6417_v11  ;;  %v6431_v59 = vsub.f32 %v6352_v61, %v2745_v39  ;;  %v2767_v21 = vmul.f32 %v6421_v6, %v6421_v6 }
 0x561   :  { %v2778_v19 = vadd.f32 %v2763_v46, %v2762_v18  ;;  %v6438_v14 = vsub.f32 %v6362_v9, %v2745_v39  ;;  %v2768_v48 = vmul.f32 %v6426_v37, %v6426_v37  ;;  %v6450_v41 = vsub.f32 %v2694_v53, %v2745_v39 }
 0x562   :  { %v2996_v33 = vadd.f32 %v2995_v56, %v2994_v8  ;;  %v2769_v26 = vmul.f32 %v6431_v59, %v6431_v59  ;;  %v6455_v9 = vsub.f32 %v6357_v1, %v2745_v39  ;;  %v6468_v27 = vsub.f32 %v6368_v36, %v2745_v39 }
 0x563   :  { %v2779_v62 = vadd.f32 %v2778_v19, %v2764_v0  ;;  %v2770_v43 = vmul.f32 %v6438_v14, %v6438_v14  ;;  %v2771_v1 = vmul.f32 %v6450_v41, %v6450_v41  ;;  %v6488_v15 = vsub.f32 %v6384_v54, %v2745_v39 }
 0x564   :  { %v6435_v52 = vmul.f32 0.0078125, %v2996_v33  ;;  %v2772_v28 = vmul.f32 %v6455_v9, %v6455_v9  ;;  %v6499_v8 = vsub.f32 %v6374_v34, %v2745_v39 }
 0x565   :  { %v2780_v13 = vadd.f32 %v2779_v62, %v2765_v60 }
 0x566   :  { %v6444_v63 = vsub.f32 %v6324_v45, %v6435_v52  ;;  %v6448_v61 = vsub.f32 %v6328_v47, %v6435_v52  ;;  %v6461_v45 = vsub.f32 %v6322_v40, %v6435_v52  ;;  %v6474_v22 = vsub.f32 %v6326_v57, %v6435_v52 }
 0x567   :  { %v2781_v38 = vadd.f32 %v2780_v13, %v2766_v49  ;;  %v6477_v40 = vsub.f32 %v6377_v3, %v2745_v39  ;;  %v6483_v18 = vsub.f32 %v6337_v25, %v6435_v52  ;;  %v2773_v57 = vmul.f32 %v6468_v27, %v6468_v27 }
 0x568   :  { %v3014_v47 = vmul.f32 %v6444_v63, %v6444_v63  ;;  %v3015_v53 = vmul.f32 %v6448_v61, %v6448_v61  ;;  %v3016_v36 = vmul.f32 %v6461_v45, %v6461_v45  ;;  %v6494_v0 = vsub.f32 %v6347_v5, %v6435_v52 }
 0x569   :  { %v2782_v24 = vadd.f32 %v2781_v38, %v2767_v21  ;;  %v3017_v19 = vmul.f32 %v6474_v22, %v6474_v22  ;;  %v2774_v60 = vmul.f32 %v6477_v40, %v6477_v40  ;;  %v6505_v62 = vsub.f32 %v6332_v31, %v6435_v52 }
 0x56a   :  { %v3030_v46 = vadd.f32 %v3015_v53, %v3014_v47  ;;  %v3018_v56 = vmul.f32 %v6483_v18, %v6483_v18  ;;  %v6510_v49 = vsub.f32 %v6381_v35, %v2745_v39  ;;  %v2775_v13 = vmul.f32 %v6488_v15, %v6488_v15 }
 0x56b   :  { %v2783_v7 = vadd.f32 %v2782_v24, %v2768_v48  ;;  %v6516_v33 = vsub.f32 %v6342_v12, %v6435_v52  ;;  %v3019_v21 = vmul.f32 %v6494_v0, %v6494_v0  ;;  %v2776_v38 = vmul.f32 %v6499_v8, %v6499_v8 }
 0x56c   :  { %v3031_v25 = vadd.f32 %v3030_v46, %v3016_v36  ;;  %v6524_v35 = vsub.f32 %v6359_v58, %v6435_v52  ;;  %v3020_v39 = vmul.f32 %v6505_v62, %v6505_v62  ;;  %v2777_v12 = vmul.f32 %v6510_v49, %v6510_v49 }
 0x56d   :  { %v2784_v51 = vadd.f32 %v2783_v7, %v2769_v26  ;;  %v6532_v7 = vsub.f32 %v6372_v32, %v6435_v52  ;;  %v6538_v58 = vsub.f32 %v6354_v23, %v6435_v52  ;;  %v6550_v46 = vsub.f32 %v6391_v16, %v6435_v52 }
 0x56e   :  { %v3032_v5 = vadd.f32 %v3031_v25, %v3017_v19  ;;  %v3022_v53 = vmul.f32 %v6524_v35, %v6524_v35  ;;  %v6556_v19 = vsub.f32 %v6398_v30, %v6435_v52 }
 0x56f   :  { %v2785_v55 = vadd.f32 %v2784_v51, %v2770_v43  ;;  %v3021_v43 = vmul.f32 %v6516_v33, %v6516_v33  ;;  %v3023_v32 = vmul.f32 %v6532_v7, %v6532_v7  ;;  %v3024_v23 = vmul.f32 %v6538_v58, %v6538_v58 }
 0x570   :  { %v3033_v31 = vadd.f32 %v3032_v5, %v3018_v56  ;;  %v3026_v16 = vmul.f32 %v6550_v46, %v6550_v46  ;;  %v3027_v30 = vmul.f32 %v6556_v19, %v6556_v19 }
 0x571   :  { %v2786_v42 = vadd.f32 %v2785_v55, %v2771_v1 }
 0x572   :  { %v3034_v24 = vadd.f32 %v3033_v31, %v3019_v21 }
 0x573   :  { %v2787_v3 = vadd.f32 %v2786_v42, %v2772_v28  ;;  %v6544_v28 = vsub.f32 %v6366_v10, %v6435_v52 }
 0x574   :  { %v3035_v51 = vadd.f32 %v3034_v24, %v3020_v39 }
 0x575   :  { %v2788_v54 = vadd.f32 %v2787_v3, %v2773_v57  ;;  %v3025_v10 = vmul.f32 %v6544_v28, %v6544_v28 }
 0x576   :  { %v3036_v1 = vadd.f32 %v3035_v51, %v3021_v43 }
 0x577   :  { %v2789_v34 = vadd.f32 %v2788_v54, %v2774_v60  ;;  %v6562_v54 = vsub.f32 %v6388_v2, %v6435_v52 }
 0x578   :  { %v3037_v42 = vadd.f32 %v3036_v1, %v3022_v53 }
 0x579   :  { %v2790_v48 = vadd.f32 %v2789_v34, %v2775_v13  ;;  %v6568_v13 = vsub.f32 %v6395_v20, %v6435_v52  ;;  %v3028_v31 = vmul.f32 %v6562_v54, %v6562_v54 }
 0x57a   :  { %v3038_v57 = vadd.f32 %v3037_v42, %v3023_v32 }
 0x57b   :  { %v2791_v26 = vadd.f32 %v2790_v48, %v2776_v38  ;;  %v3029_v48 = vmul.f32 %v6568_v13, %v6568_v13 }
 0x57c   :  { %v3039_v25 = vadd.f32 %v3038_v57, %v3024_v23 }
 0x57d   :  { %v2792_v47 = vadd.f32 %v2791_v26, %v2777_v12 }
 0x57e   :  { %v3040_v56 = vadd.f32 %v3039_v25, %v3025_v10 }
 0x57f   :  { %v2793_v55 = vrot.slane %v2792_v47, 4 }
 0x580   :  { %v3041_v34 = vadd.f32 %v3040_v56, %v3026_v16 }
 0x581   :  { %v2794_v36 = vadd.f32 %v2793_v55, %v2792_v47  ;;  %v2722_v55 = vld [vmem:[%s6633_s8] sm:$0x1] }
 0x582   :  { %v3042_v38 = vadd.f32 %v3041_v34, %v3027_v30  ;;  %v2974_v30 = vld [vmem:[%s6636_s11] sm:$0x1] }
 0x583   :  { %v2795_v3 = vrot.slane %v2794_v36, 2 }
 0x584   :  { %v3043_v39 = vadd.f32 %v3042_v38, %v3028_v31 }
 0x585   :  { %v2796_v60 = vadd.f32 %v2795_v3, %v2794_v36  ;;  %v3235_v3 = vld [vmem:[%s6634_s9] ss:$0 sm:$0xff] }
 0x586   :  { %v3044_v12 = vadd.f32 %v3043_v39, %v3029_v48 }
 0x587   :  { %v2797_v5 = vrot.slane %v2796_v60, 1 }
 0x588   :  { %v3045_v26 = vrot.slane %v3044_v12, 4 }
 0x589   :  { %v2798_v21 = vadd.f32 %v2797_v5, %v2796_v60 }
 0x58a   :  { %v3046_v20 = vadd.f32 %v3045_v26, %v3044_v12 }
 0x58b   :  { %v2799_v2 = vmul.f32 0.0078125, %v2798_v21 }
 0x58c   :  { %v3047_v52 = vrot.slane %v3046_v20, 2 }
 0x58d   :  { %v2800_v24 = vadd.f32 1e-05, %v2799_v2 }
 0x58e   :  { %v3048_v43 = vadd.f32 %v3047_v52, %v3046_v20 }
 0x58f   :  { %3804 = vrsqrt.f32 %v2800_v24 }
 0x590   :  { %v3049_v51 = vrot.slane %v3048_v43, 1 }
 0x592   :  { %v3050_v47 = vadd.f32 %v3049_v51, %v3048_v43 }
 0x594   :  { %v3051_v53 = vmul.f32 0.0078125, %v3050_v47 }
 0x596   :  { %v3052_v32 = vadd.f32 1e-05, %v3051_v53  ;;  %v3248_v53 = vld [vmem:[%s6637_s12] ss:$0 sm:$0xff]  ;;  %s3834_s12 = smov [#allocation3]  }
 0x597   :  { %s3150_s14 = sshll.u32 %s3834_s12, 4  ;;  %s3151_s14 = int_to_ptr.vmem [resolvable:$true] %s3150_s14 }
 0x598   :  { %3806 = vrsqrt.f32 %v3052_v32  ;;  %s3808_s15 = scalar_lea.vmem %s3151_s14, 2048  ;;  %p3813_p1 = scmp.lt.s32.totalorder %s3151_s14, %s3151_s14 }
 0x599   :  { %p3809_p0 = scmp.ne.s32.totalorder %s3151_s14, %s3808_s15  ;;  %p3814_p2 = scmp.lt.s32.totalorder %s3808_s15, %s3808_s15 }
 0x59b   :  { %p3815_p3 = por %p3814_p2, %p3813_p1 }
 0x59c   :  { %v3805_v1 = vpop.eup %3804 }
 0x59d   :  { %v2802_v42 = vmul.f32 %v3805_v1, %v2722_v55  ;;  %p3816_p4 = pnand %p3815_p3, %p3809_p0 }
 0x59f   :  { %v2806_v36 = vrot.slane %v2802_v42, %v6809_v17 }
 0x5a1   :  { %v2807_v23 = vmul.f32 %v2806_v36, %v6403_v29  ;;  %v2808_v57 = vmul.f32 %v2806_v36, %v6405_v50  ;;  %v2809_v10 = vmul.f32 %v2806_v36, %v6408_v44  ;;  %v2810_v25 = vmul.f32 %v2806_v36, %v6415_v4 }
 0x5a2   :  { %v2811_v60 = vmul.f32 %v2806_v36, %v6417_v11  ;;  %v2812_v16 = vmul.f32 %v2806_v36, %v6421_v6  ;;  %v2813_v56 = vmul.f32 %v2806_v36, %v6426_v37  ;;  %v2814_v5 = vmul.f32 %v2806_v36, %v6431_v59 }
 0x5a3   :  { %v2815_v29 = vmul.f32 %v2806_v36, %v6438_v14  ;;  %v2816_v50 = vmul.f32 %v2806_v36, %v6450_v41  ;;  %v2817_v44 = vmul.f32 %v2806_v36, %v6455_v9  ;;  %v2818_v4 = vmul.f32 %v2806_v36, %v6468_v27 }
 0x5a4   :  { %v2819_v11 = vmul.f32 %v2806_v36, %v6477_v40  ;;  %v2820_v6 = vmul.f32 %v2806_v36, %v6488_v15  ;;  %v2821_v37 = vmul.f32 %v2806_v36, %v6499_v8  ;;  %v2822_v59 = vmul.f32 %v2806_v36, %v6510_v49 }
 0x5a5   :  { %v3807_v34 = vpop.eup %3806  ;;  %v2829_v14 = vadd.f32 %v3235_v3, %v2807_v23  ;;  %v2830_v21 = vadd.f32 %v3235_v3, %v2808_v57  ;;  %v2831_v41 = vadd.f32 %v3235_v3, %v2809_v10  ;;  %v2832_v31 = vadd.f32 %v3235_v3, %v2810_v25 }
 0x5a6   :  { %v2833_v38 = vadd.f32 %v3235_v3, %v2811_v60  ;;  %v3054_v2 = vmul.f32 %v3807_v34, %v2974_v30  ;;  %v2834_v48 = vadd.f32 %v3235_v3, %v2812_v16  ;;  %v2835_v39 = vadd.f32 %v3235_v3, %v2813_v56 }
 0x5a7   :  { %v2836_v9 = vadd.f32 %v3235_v3, %v2814_v5  ;;  %v2837_v24 = vadd.f32 %v3235_v3, %v2815_v29  ;;  %v2838_v27 = vadd.f32 %v3235_v3, %v2816_v50  ;;  %v2839_v12 = vadd.f32 %v3235_v3, %v2817_v44 }
 0x5a8   :  { %v2840_v40 = vadd.f32 %v3235_v3, %v2818_v4  ;;  %v3058_v15 = vrot.slane %v3054_v2, %v6809_v17  ;;  %v2841_v26 = vadd.f32 %v3235_v3, %v2819_v11  ;;  %v2842_v20 = vadd.f32 %v3235_v3, %v2820_v6 }
 0x5a9   :  { %v2843_v8 = vadd.f32 %v3235_v3, %v2821_v37  ;;  %v2844_v52 = vadd.f32 %v3235_v3, %v2822_v59 }
 0x5aa   :  { %v3059_v49 = vmul.f32 %v3058_v15, %v6444_v63  ;;  %v3060_v43 = vmul.f32 %v3058_v15, %v6448_v61  ;;  %v3061_v51 = vmul.f32 %v3058_v15, %v6461_v45  ;;  %v3062_v47 = vmul.f32 %v3058_v15, %v6474_v22 }
 0x5ab   :  { %v3063_v1 = vmul.f32 %v3058_v15, %v6483_v18  ;;  %v3064_v17 = vmul.f32 %v3058_v15, %v6494_v0  ;;  %v3065_v55 = vmul.f32 %v3058_v15, %v6505_v62  ;;  %v3066_v32 = vmul.f32 %v3058_v15, %v6516_v33 }
 0x5ac   :  { %v3067_v63 = vmul.f32 %v3058_v15, %v6524_v35  ;;  %v3068_v61 = vmul.f32 %v3058_v15, %v6532_v7  ;;  %v3069_v45 = vmul.f32 %v3058_v15, %v6538_v58  ;;  %v3070_v22 = vmul.f32 %v3058_v15, %v6544_v28 }
 0x5ad   :  { %v3071_v42 = vmul.f32 %v3058_v15, %v6550_v46  ;;  %v3072_v36 = vmul.f32 %v3058_v15, %v6556_v19  ;;  %v3073_v18 = vmul.f32 %v3058_v15, %v6562_v54  ;;  %v3074_v0 = vmul.f32 %v3058_v15, %v6568_v13 }
 0x5ae   :  { %v3081_v23 = vadd.f32 %v3248_v53, %v3059_v49  ;;  %v3082_v62 = vadd.f32 %v3248_v53, %v3060_v43  ;;  %v3083_v57 = vadd.f32 %v3248_v53, %v3061_v51  ;;  %v3084_v33 = vadd.f32 %v3248_v53, %v3062_v47 }
 0x5af   :  { %v3085_v3 = vadd.f32 %v3248_v53, %v3063_v1  ;;  %v3086_v35 = vadd.f32 %v3248_v53, %v3064_v17  ;;  %v3087_v10 = vadd.f32 %v3248_v53, %v3065_v55  ;;  %v3088_v7 = vadd.f32 %v3248_v53, %v3066_v32 }
 0x5b0   :  { %v3089_v25 = vadd.f32 %v3248_v53, %v3067_v63  ;;  %v3090_v58 = vadd.f32 %v3248_v53, %v3068_v61  ;;  %v3091_v60 = vadd.f32 %v3248_v53, %v3069_v45  ;;  %v3092_v28 = vadd.f32 %v3248_v53, %v3070_v22 }
 0x5b1   :  { %v3093_v16 = vadd.f32 %v3248_v53, %v3071_v42  ;;  %v3094_v46 = vadd.f32 %v3248_v53, %v3072_v36  ;;  %v3095_v56 = vadd.f32 %v3248_v53, %v3073_v18  ;;  %v3096_v19 = vadd.f32 %v3248_v53, %v3074_v0 }
 0x5b2   :  { %v3097_v5 = vadd.f32 %v3081_v23, %v2829_v14  ;;  %v3098_v54 = vadd.f32 %v3082_v62, %v2830_v21  ;;  %v3099_v29 = vadd.f32 %v3083_v57, %v2831_v41  ;;  %v3100_v13 = vadd.f32 %v3084_v33, %v2832_v31 }
 0x5b3   :  { %v3101_v50 = vadd.f32 %v3085_v3, %v2833_v38  ;;  %v3102_v30 = vadd.f32 %v3086_v35, %v2834_v48  ;;  %v3103_v44 = vadd.f32 %v3087_v10, %v2835_v39  ;;  %v3104_v4 = vadd.f32 %v3088_v7, %v2836_v9 }
 0x5b4   :  { %v3105_v11 = vadd.f32 %v3089_v25, %v2837_v24  ;;  %v3106_v6 = vadd.f32 %v3090_v58, %v2838_v27  ;;  %v3107_v34 = vadd.f32 %v3091_v60, %v2839_v12  ;;  %v3108_v37 = vadd.f32 %v3092_v28, %v2840_v40 }
 0x5b5   :  { %v3109_v59 = vadd.f32 %v3093_v16, %v2841_v26  ;;  %v3110_v2 = vadd.f32 %v3094_v46, %v2842_v20  ;;  %v3111_v15 = vadd.f32 %v3095_v56, %v2843_v8  ;;  %v3112_v49 = vadd.f32 %v3096_v19, %v2844_v52 }
 0x5b6   :  { %v3113_v43 = vmax.f32 %v3097_v5, 0.0  ;;  %v3114_v51 = vmax.f32 %v3098_v54, 0.0  ;;  %v3115_v47 = vmax.f32 %v3099_v29, 0.0  ;;  %v3116_v53 = vmax.f32 %v3100_v13, 0.0 }
 0x5b7   :  { %v3117_v14 = vmax.f32 %v3101_v50, 0.0  ;;  %v3118_v21 = vmax.f32 %v3102_v30, 0.0  ;;  %v3119_v41 = vmax.f32 %v3103_v44, 0.0  ;;  %v3120_v31 = vmax.f32 %v3104_v4, 0.0 }
 0x5b8   :  { %v3121_v38 = vmax.f32 %v3105_v11, 0.0  ;;  %v3122_v48 = vmax.f32 %v3106_v6, 0.0  ;;  %v3123_v39 = vmax.f32 %v3107_v34, 0.0  ;;  %v3124_v9 = vmax.f32 %v3108_v37, 0.0  ;;  %3129 = vst [vmem:[#allocation3] sm:$0xff] %v3113_v43  ;;  %3130 = vst [vmem:[#allocation3 + $0x8] sm:$0xff] %v3114_v51 }
 0x5b9   :  { %3131 = vst [vmem:[#allocation3 + $0x10] sm:$0xff] %v3115_v47  ;;  %3132 = vst [vmem:[#allocation3 + $0x18] sm:$0xff] %v3116_v53  ;;  %v3125_v24 = vmax.f32 %v3109_v59, 0.0  ;;  %v3126_v27 = vmax.f32 %v3110_v2, 0.0  ;;  %v3127_v12 = vmax.f32 %v3111_v15, 0.0  ;;  %v3128_v40 = vmax.f32 %v3112_v49, 0.0 }
 0x5ba   :  { %3133 = vst [vmem:[#allocation3 + $0x20] sm:$0xff] %v3117_v14  ;;  %3134 = vst [vmem:[#allocation3 + $0x28] sm:$0xff] %v3118_v21 }
 0x5bb   :  { %3135 = vst [vmem:[#allocation3 + $0x30] sm:$0xff] %v3119_v41  ;;  %3136 = vst [vmem:[#allocation3 + $0x38] sm:$0xff] %v3120_v31 }
 0x5bc   :  { %3137 = vst [vmem:[#allocation3 + $0x40] sm:$0xff] %v3121_v38  ;;  %3138 = vst [vmem:[#allocation3 + $0x48] sm:$0xff] %v3122_v48 }
 0x5bd   :  { %3139 = vst [vmem:[#allocation3 + $0x50] sm:$0xff] %v3123_v39  ;;  %3140 = vst [vmem:[#allocation3 + $0x58] sm:$0xff] %v3124_v9 }
 0x5be   :  { %3141 = vst [vmem:[#allocation3 + $0x60] sm:$0xff] %v3125_v24  ;;  %3142 = vst [vmem:[#allocation3 + $0x68] sm:$0xff] %v3126_v27 }
 0x5bf   :  { %3143 = vst [vmem:[#allocation3 + $0x70] sm:$0xff] %v3127_v12  ;;  %3144 = vst [vmem:[#allocation3 + $0x78] sm:$0xff] %v3128_v40 }
 0x5c0   :  { %3819 = shalt.err (!%p3816_p4)
}
 0x5c1   :  { %s3835_s16 = smov 128   ;;  %s3836_s17 = smov 8  }
 0x5c2   :  { %3156 = dma.vmem_to_hbm [thread:$0]  %s3151_s14, 2048, %s6638_s13, [#allocation4], %s3835_s16, %s3835_s16, %s3836_s17  }
 0x5c3   :  { %3828 = dma.done.wait [#allocation4], 2048  }
 0x5c4   :  { %3829 = vsyncadd [#allocation4], 4294965248 }
 0x5c5   :  { %3160 = vsyncpa [#allocation4], 1 }

</bundles_post_ra>
